<compile_context>
chip_gen: v7x
topology: tpu7x:2x2x1
jax: 0.10.0
libtpu: 0.0.40
codegen_flags: <defaults>
</compile_context>

<pallas_src>
import math
import functools

import jax
import jax.numpy as jnp
from jax.experimental import pallas as pl
from jax.experimental.pallas import tpu as pltpu

PAD = 0


# ----------------------------------------------------------------------------
# Fused kernel: MHA + BiLSTM + masked mean + linear + sigmoid (one batch tile)
# ----------------------------------------------------------------------------
def _qe_fused_kernel(pad_ref, valid_ref, emb_ref, embbt_ref,
                     wq_ref, bq_ref, wk_ref, bk_ref, wv_ref, bv_ref,
                     wo_ref, bo_ref,
                     wihf_ref, whhf_ref, bf_ref,
                     wihb_ref, whhb_ref, bb_ref,
                     wout_ref, bout_ref,
                     pre_ref, *, n_head):
    f32 = jnp.float32
    bf16 = jnp.bfloat16

    Bt, T, D = emb_ref.shape
    Ts = embbt_ref.shape[1]
    H = whhf_ref.shape[0]
    dph = D // n_head

    emb = emb_ref[...]                       # (Bt, T, D)  f32
    kv = embbt_ref[...]                      # (Bt, Ts, D) f32
    pad = pad_ref[...]                       # (Bt, Ts)    1.0 where src == PAD
    valid = valid_ref[...]                   # (Bt, T)     1.0 where tgt != PAD

    emb2 = emb.reshape(Bt * T, D)
    kv2 = kv.reshape(Bt * Ts, D)
    emb2_b = emb2.astype(bf16)
    kv2_b = kv2.astype(bf16)

    # ---- Q/K/V projections: one fat matmul each over the whole batch tile ----
    q = jnp.dot(emb2_b, wq_ref[...], preferred_element_type=f32) + bq_ref[...]
    k = jnp.dot(kv2_b, wk_ref[...], preferred_element_type=f32) + bk_ref[...]
    v = jnp.dot(kv2_b, wv_ref[...], preferred_element_type=f32) + bv_ref[...]

    scale = 1.0 / math.sqrt(dph)
    qb = (q * scale).astype(bf16).reshape(Bt, T, D)
    kb = k.astype(bf16).reshape(Bt, Ts, D)
    vb = v.astype(bf16).reshape(Bt, Ts, D)

    pad_b = pad.reshape(Bt, 1, Ts)           # broadcast over query positions

    # ---- per-head masked-softmax attention, batched over the tile ----
    ctx_heads = []
    for h in range(n_head):
        lo = h * dph
        qh = qb[:, :, lo:lo + dph]
        kh = kb[:, :, lo:lo + dph]
        vh = vb[:, :, lo:lo + dph]
        s = jnp.einsum('bqd,bkd->bqk', qh, kh, preferred_element_type=f32)
        s = jnp.where(pad_b > 0.5, -1e18, s)          # masked_fill(mask, -1e18)
        s = s - jnp.max(s, axis=-1, keepdims=True)
        p = jnp.exp(s)
        p = p * pl.reciprocal(jnp.sum(p, axis=-1, keepdims=True), approx=True)
        ctx_heads.append(jnp.einsum('bqk,bkd->bqd', p.astype(bf16), vh,
                                    preferred_element_type=f32))
    ctx = jnp.concatenate(ctx_heads, axis=-1)          # (Bt, T, D)

    # ---- single output projection for all heads ----
    mid = (jnp.dot(ctx.reshape(Bt * T, D).astype(bf16), wo_ref[...],
                   preferred_element_type=f32)
           + bo_ref[...])                              # (Bt*T, D)

    # ---- LSTM input projection hoisted out of the recurrence.
    #      mid_1 = cat(mid, emb) is never materialised: Wih is split instead ----
    mid_b = mid.astype(bf16)
    wihf = wihf_ref[...]
    wihb = wihb_ref[...]
    gx_f = (jnp.dot(mid_b, wihf[:D, :], preferred_element_type=f32)
            + jnp.dot(emb2_b, wihf[D:, :], preferred_element_type=f32)
            + bf_ref[...]).reshape(Bt, T, 4 * H)
    gx_b = (jnp.dot(mid_b, wihb[:D, :], preferred_element_type=f32)
            + jnp.dot(emb2_b, wihb[D:, :], preferred_element_type=f32)
            + bb_ref[...]).reshape(Bt, T, 4 * H)

    whhf = whhf_ref[...]
    whhb = whhb_ref[...]

    def cell(gx_t, h, c, whh):
        gates = gx_t + jnp.dot(h.astype(bf16), whh, preferred_element_type=f32)
        i = jax.nn.sigmoid(gates[:, 0:H])              # gate order i, f, g, o
        f = jax.nn.sigmoid(gates[:, H:2 * H])
        g = jnp.tanh(gates[:, 2 * H:3 * H])
        o = jax.nn.sigmoid(gates[:, 3 * H:4 * H])
        c_new = f * c + i * g
        h_new = o * jnp.tanh(c_new)
        return h_new, c_new

    z = jnp.zeros((Bt, H), f32)
    h_f, c_f, acc_f = z, z, z
    h_b, c_b, acc_b = z, z, z

    # Batched (Bt, H) recurrence; forward and backward directions interleaved in
    # one unrolled loop so their latency chains overlap.  Padded steps keep the
    # previous state (backward dir therefore starts from zeros at the last valid
    # token, matching pack_padded_sequence; padding assumed at sequence end) and
    # contribute nothing to the masked mean.
    # TODO(synk): for long sequences switch to a fori_loop over VMEM-resident
    # gates bounded by scalar-prefetched lengths instead of a full unroll.
    for t in range(T):
        tb = T - 1 - t
        vf = valid[:, t:t + 1] > 0.5                   # (Bt, 1)
        vb = valid[:, tb:tb + 1] > 0.5
        hf_new, cf_new = cell(gx_f[:, t, :], h_f, c_f, whhf)
        hb_new, cb_new = cell(gx_b[:, tb, :], h_b, c_b, whhb)
        h_f = jnp.where(vf, hf_new, h_f)
        c_f = jnp.where(vf, cf_new, c_f)
        h_b = jnp.where(vb, hb_new, h_b)
        c_b = jnp.where(vb, cb_new, c_b)
        acc_f = acc_f + jnp.where(vf, hf_new, 0.0)
        acc_b = acc_b + jnp.where(vb, hb_new, 0.0)

    # ---- masked mean over valid steps + final Linear(2H -> 1) + sigmoid ----
    count = jnp.sum(valid, axis=1, keepdims=True)      # (Bt, 1)
    inv = pl.reciprocal(jnp.maximum(count, 1.0), approx=True)   # guard all-PAD rows
    mean_f = acc_f * inv
    mean_b = acc_b * inv

    w_out = wout_ref[...]                              # (1, 2H)
    logit = (jnp.sum(mean_f * w_out[:, 0:H], axis=-1, keepdims=True)
             + jnp.sum(mean_b * w_out[:, H:2 * H], axis=-1, keepdims=True)
             + bout_ref[...])
    pre_ref[...] = jax.nn.sigmoid(logit)               # (Bt, 1)


# ----------------------------------------------------------------------------
# Wrapper: batch-tiled grid, bf16 weight casting, PAD-mask preparation
# ----------------------------------------------------------------------------
def qe_attention_forward(emb, x, emb_bt, x_bt, params, *, n_head, hidden_size,
                         batch_tile=None):
    B, Tq, D = emb.shape
    Ts = emb_bt.shape[1]
    del hidden_size  # implied by parameter shapes

    if batch_tile is None:
        batch_tile = B if B <= 8 else 8
    Bt = batch_tile
    nb = pl.cdiv(B, Bt)
    Bp = nb * Bt

    enc_pad = (x_bt == PAD).astype(jnp.float32)        # (B, Ts)
    valid = (x != PAD).astype(jnp.float32)             # (B, Tq)

    if Bp != B:                                        # pad batch to a tile multiple
        pn = Bp - B
        emb = jnp.pad(emb, ((0, pn), (0, 0), (0, 0)))
        emb_bt = jnp.pad(emb_bt, ((0, pn), (0, 0), (0, 0)))
        enc_pad = jnp.pad(enc_pad, ((0, pn), (0, 0)))
        valid = jnp.pad(valid, ((0, pn), (0, 0)))

    bf16, f32 = jnp.bfloat16, jnp.float32
    p = params
    weights = [
        p["wq"].astype(bf16), p["bq"].astype(f32),
        p["wk"].astype(bf16), p["bk"].astype(f32),
        p["wv"].astype(bf16), p["bv"].astype(f32),
        p["wo"].astype(bf16), p["bo"].astype(f32),
        p["wih_f"].astype(bf16), p["whh_f"].astype(bf16), p["b_f"].astype(f32),
        p["wih_b"].astype(bf16), p["whh_b"].astype(bf16), p["b_b"].astype(f32),
        p["w_out"].astype(f32), p["b_out"].astype(f32),
    ]

    def full(a):
        nd = a.ndim
        return pl.BlockSpec(a.shape, lambda i, _nd=nd: (0,) * _nd)

    kernel = functools.partial(_qe_fused_kernel, n_head=n_head)

    grid_spec = pltpu.PrefetchScalarGridSpec(
        num_scalar_prefetch=0,
        grid=(nb,),
        in_specs=[
            pl.BlockSpec((Bt, Ts), lambda i: (i, 0)),          # enc PAD mask
            pl.BlockSpec((Bt, Tq), lambda i: (i, 0)),          # tgt valid mask
            pl.BlockSpec((Bt, Tq, D), lambda i: (i, 0, 0)),    # emb (query)
            pl.BlockSpec((Bt, Ts, D), lambda i: (i, 0, 0)),    # emb_bt (key/value)
        ] + [full(w) for w in weights],
        out_specs=pl.BlockSpec((Bt, 1), lambda i: (i, 0)),
    )

    pre = pl.pallas_call(
        kernel,
        out_shape=jax.ShapeDtypeStruct((Bp, 1), jnp.float32),
        grid_spec=grid_spec,
        compiler_params=pltpu.CompilerParams(
            dimension_semantics=("parallel",)),                # batch axis is parallel
    )(enc_pad, valid, emb, emb_bt, *weights)
    return pre[:B]


# ----------------------------------------------------------------------------
# Deterministic parameter init (synthetic weights; shapes follow the module)
# ----------------------------------------------------------------------------
def init_params(key, d_model, feature_size, hidden_size):
    H = hidden_size
    keys = jax.random.split(key, 20)
    s = 0.1

    def w(k, shape):
        return jax.random.normal(k, shape, jnp.float32) * s

    return dict(
        # MultiHeadedAttention: stored as (in, out) so the kernel does x @ W + b
        wq=w(keys[0], (d_model, d_model)), bq=w(keys[1], (1, d_model)),
        wk=w(keys[2], (d_model, d_model)), bk=w(keys[3], (1, d_model)),
        wv=w(keys[4], (d_model, d_model)), bv=w(keys[5], (1, d_model)),
        wo=w(keys[6], (d_model, d_model)), bo=w(keys[7], (1, d_model)),
        # Bidirectional LSTM (gate order i,f,g,o); b = b_ih + b_hh folded together
        wih_f=w(keys[8], (feature_size, 4 * H)),
        whh_f=w(keys[9], (H, 4 * H)),
        b_f=w(keys[10], (1, 4 * H)),
        wih_b=w(keys[11], (feature_size, 4 * H)),
        whh_b=w(keys[12], (H, 4 * H)),
        b_b=w(keys[13], (1, 4 * H)),
        # Final Linear(2H -> 1)
        w_out=w(keys[14], (1, 2 * H)),
        b_out=w(keys[15], (1, 1)),
    )


if __name__ == "__main__":
    key = jax.random.PRNGKey(0)
    B, Tq, Ts = 2, 8, 8
    d_model, n_head = 32, 4
    feature_size = 2 * d_model      # LSTM input = cat(mid, emb) width
    hidden_size = 32

    k1, k2, k3 = jax.random.split(key, 3)
    emb = jax.random.normal(k1, (B, Tq, d_model), jnp.float32)
    emb_bt = jax.random.normal(k2, (B, Ts, d_model), jnp.float32)

    # token ids with PAD=0 padding at the end (pack_padded_sequence assumption)
    x = jnp.array([[5, 6, 7, 8, 9, 0, 0, 0],
                   [3, 4, 5, 6, 7, 8, 9, 2]], dtype=jnp.int32)
    x_bt = jnp.array([[11, 12, 13, 14, 0, 0, 0, 0],
                      [21, 22, 23, 24, 25, 26, 0, 0]], dtype=jnp.int32)

    params = init_params(k3, d_model, feature_size, hidden_size)

    pre = qe_attention_forward(emb, x, emb_bt, x_bt, params,
                               n_head=n_head, hidden_size=hidden_size)
    pre = jax.block_until_ready(pre)
    assert pre.shape == (B, 1)
    assert bool(jnp.all(jnp.isfinite(pre)))
    print("KERNEL_OK")
</pallas_src>

<mosaic_0001>
module attributes {stable_mosaic.version = 11 : i64} {
  func.func @_qe_fused_kernel(%arg0: i32, %arg1: memref<2x8xf32, #tpu.memory_space<vmem>>, %arg2: memref<2x8xf32, #tpu.memory_space<vmem>>, %arg3: memref<2x8x32xf32, #tpu.memory_space<vmem>>, %arg4: memref<2x8x32xf32, #tpu.memory_space<vmem>>, %arg5: memref<32x32xbf16, #tpu.memory_space<vmem>>, %arg6: memref<1x32xf32, #tpu.memory_space<vmem>>, %arg7: memref<32x32xbf16, #tpu.memory_space<vmem>>, %arg8: memref<1x32xf32, #tpu.memory_space<vmem>>, %arg9: memref<32x32xbf16, #tpu.memory_space<vmem>>, %arg10: memref<1x32xf32, #tpu.memory_space<vmem>>, %arg11: memref<32x32xbf16, #tpu.memory_space<vmem>>, %arg12: memref<1x32xf32, #tpu.memory_space<vmem>>, %arg13: memref<64x128xbf16, #tpu.memory_space<vmem>>, %arg14: memref<32x128xbf16, #tpu.memory_space<vmem>>, %arg15: memref<1x128xf32, #tpu.memory_space<vmem>>, %arg16: memref<64x128xbf16, #tpu.memory_space<vmem>>, %arg17: memref<32x128xbf16, #tpu.memory_space<vmem>>, %arg18: memref<1x128xf32, #tpu.memory_space<vmem>>, %arg19: memref<1x64xf32, #tpu.memory_space<vmem>>, %arg20: memref<1x1xf32, #tpu.memory_space<vmem>>, %arg21: memref<2x1xf32, #tpu.memory_space<vmem>>) attributes {dimension_semantics = [#tpu.dimension_semantics<parallel>], iteration_bounds = array<i64: 1>, scalar_prefetch = 0 : i64, scratch_operands = 0 : i64, tpu.core_type = #tpu.core_type<tc>, window_params = [{transform_indices = @transform_0, window_bounds = array<i64: 2, 8>}, {transform_indices = @transform_1, window_bounds = array<i64: 2, 8>}, {transform_indices = @transform_2, window_bounds = array<i64: 2, 8, 32>}, {transform_indices = @transform_3, window_bounds = array<i64: 2, 8, 32>}, {pipeline_mode = #tpu.pipeline_mode<synchronous>, transform_indices = @transform_4, window_bounds = array<i64: 32, 32>}, {pipeline_mode = #tpu.pipeline_mode<synchronous>, transform_indices = @transform_5, window_bounds = array<i64: 1, 32>}, {pipeline_mode = #tpu.pipeline_mode<synchronous>, transform_indices = @transform_6, window_bounds = array<i64: 32, 32>}, {pipeline_mode = #tpu.pipeline_mode<synchronous>, transform_indices = @transform_7, window_bounds = array<i64: 1, 32>}, {pipeline_mode = #tpu.pipeline_mode<synchronous>, transform_indices = @transform_8, window_bounds = array<i64: 32, 32>}, {pipeline_mode = #tpu.pipeline_mode<synchronous>, transform_indices = @transform_9, window_bounds = array<i64: 1, 32>}, {pipeline_mode = #tpu.pipeline_mode<synchronous>, transform_indices = @transform_10, window_bounds = array<i64: 32, 32>}, {pipeline_mode = #tpu.pipeline_mode<synchronous>, transform_indices = @transform_11, window_bounds = array<i64: 1, 32>}, {pipeline_mode = #tpu.pipeline_mode<synchronous>, transform_indices = @transform_12, window_bounds = array<i64: 64, 128>}, {pipeline_mode = #tpu.pipeline_mode<synchronous>, transform_indices = @transform_13, window_bounds = array<i64: 32, 128>}, {pipeline_mode = #tpu.pipeline_mode<synchronous>, transform_indices = @transform_14, window_bounds = array<i64: 1, 128>}, {pipeline_mode = #tpu.pipeline_mode<synchronous>, transform_indices = @transform_15, window_bounds = array<i64: 64, 128>}, {pipeline_mode = #tpu.pipeline_mode<synchronous>, transform_indices = @transform_16, window_bounds = array<i64: 32, 128>}, {pipeline_mode = #tpu.pipeline_mode<synchronous>, transform_indices = @transform_17, window_bounds = array<i64: 1, 128>}, {pipeline_mode = #tpu.pipeline_mode<synchronous>, transform_indices = @transform_18, window_bounds = array<i64: 1, 64>}, {pipeline_mode = #tpu.pipeline_mode<synchronous>, transform_indices = @transform_19, window_bounds = array<i64: 1, 1>}, {transform_indices = @transform_20, window_bounds = array<i64: 2, 1>}]} {
    %c0 = arith.constant 0 : index
    %c0_0 = arith.constant 0 : index
    %c0_1 = arith.constant 0 : index
    %0 = vector.load %arg3[%c0, %c0_0, %c0_1] : memref<2x8x32xf32, #tpu.memory_space<vmem>>, vector<2x8x32xf32>
    %c0_2 = arith.constant 0 : index
    %c0_3 = arith.constant 0 : index
    %c0_4 = arith.constant 0 : index
    %1 = vector.load %arg4[%c0_2, %c0_3, %c0_4] : memref<2x8x32xf32, #tpu.memory_space<vmem>>, vector<2x8x32xf32>
    %c0_5 = arith.constant 0 : index
    %c0_6 = arith.constant 0 : index
    %2 = vector.load %arg1[%c0_5, %c0_6] : memref<2x8xf32, #tpu.memory_space<vmem>>, vector<2x8xf32>
    %c0_7 = arith.constant 0 : index
    %c0_8 = arith.constant 0 : index
    %3 = vector.load %arg2[%c0_7, %c0_8] : memref<2x8xf32, #tpu.memory_space<vmem>>, vector<2x8xf32>
    %4 = vector.shape_cast %0 : vector<2x8x32xf32> to vector<16x32xf32>
    %5 = vector.shape_cast %1 : vector<2x8x32xf32> to vector<16x32xf32>
    %6 = arith.truncf %4 : vector<16x32xf32> to vector<16x32xbf16>
    %7 = arith.truncf %5 : vector<16x32xf32> to vector<16x32xbf16>
    %c0_9 = arith.constant 0 : index
    %c0_10 = arith.constant 0 : index
    %8 = vector.load %arg5[%c0_9, %c0_10] : memref<32x32xbf16, #tpu.memory_space<vmem>>, vector<32x32xbf16>
    %cst = arith.constant dense<0.000000e+00> : vector<16x32xf32>
    %9 = tpu.matmul %6, %8, %cst {dimension_numbers = #tpu.dot_dimension_numbers<[1], [0], [0], [1], [0, 0, 1, 1], [], []>} : vector<16x32xbf16>, vector<32x32xbf16>, vector<16x32xf32> -> vector<16x32xf32>
    %c0_11 = arith.constant 0 : index
    %c0_12 = arith.constant 0 : index
    %10 = vector.load %arg6[%c0_11, %c0_12] : memref<1x32xf32, #tpu.memory_space<vmem>>, vector<1x32xf32>
    %11 = vector.broadcast %10 : vector<1x32xf32> to vector<16x32xf32>
    %12 = arith.addf %9, %11 : vector<16x32xf32>
    %c0_13 = arith.constant 0 : index
    %c0_14 = arith.constant 0 : index
    %13 = vector.load %arg7[%c0_13, %c0_14] : memref<32x32xbf16, #tpu.memory_space<vmem>>, vector<32x32xbf16>
    %cst_15 = arith.constant dense<0.000000e+00> : vector<16x32xf32>
    %14 = tpu.matmul %7, %13, %cst_15 {dimension_numbers = #tpu.dot_dimension_numbers<[1], [0], [0], [1], [0, 0, 1, 1], [], []>} : vector<16x32xbf16>, vector<32x32xbf16>, vector<16x32xf32> -> vector<16x32xf32>
    %c0_16 = arith.constant 0 : index
    %c0_17 = arith.constant 0 : index
    %15 = vector.load %arg8[%c0_16, %c0_17] : memref<1x32xf32, #tpu.memory_space<vmem>>, vector<1x32xf32>
    %16 = vector.broadcast %15 : vector<1x32xf32> to vector<16x32xf32>
    %17 = arith.addf %14, %16 : vector<16x32xf32>
    %c0_18 = arith.constant 0 : index
    %c0_19 = arith.constant 0 : index
    %18 = vector.load %arg9[%c0_18, %c0_19] : memref<32x32xbf16, #tpu.memory_space<vmem>>, vector<32x32xbf16>
    %cst_20 = arith.constant dense<0.000000e+00> : vector<16x32xf32>
    %19 = tpu.matmul %7, %18, %cst_20 {dimension_numbers = #tpu.dot_dimension_numbers<[1], [0], [0], [1], [0, 0, 1, 1], [], []>} : vector<16x32xbf16>, vector<32x32xbf16>, vector<16x32xf32> -> vector<16x32xf32>
    %c0_21 = arith.constant 0 : index
    %c0_22 = arith.constant 0 : index
    %20 = vector.load %arg10[%c0_21, %c0_22] : memref<1x32xf32, #tpu.memory_space<vmem>>, vector<1x32xf32>
    %21 = vector.broadcast %20 : vector<1x32xf32> to vector<16x32xf32>
    %22 = arith.addf %19, %21 : vector<16x32xf32>
    %cst_23 = arith.constant 0.353553385 : f32
    %23 = vector.broadcast %cst_23 : f32 to vector<16x32xf32>
    %24 = arith.mulf %12, %23 : vector<16x32xf32>
    %25 = arith.truncf %24 : vector<16x32xf32> to vector<16x32xbf16>
    %26 = vector.shape_cast %25 : vector<16x32xbf16> to vector<2x8x32xbf16>
    %27 = arith.truncf %17 : vector<16x32xf32> to vector<16x32xbf16>
    %28 = vector.shape_cast %27 : vector<16x32xbf16> to vector<2x8x32xbf16>
    %29 = arith.truncf %22 : vector<16x32xf32> to vector<16x32xbf16>
    %30 = vector.shape_cast %29 : vector<16x32xbf16> to vector<2x8x32xbf16>
    %31 = vector.shape_cast %2 : vector<2x8xf32> to vector<2x1x8xf32>
    %32 = vector.extract_strided_slice %26 {offsets = [0, 0, 0], sizes = [2, 8, 8], strides = [1, 1, 1]} : vector<2x8x32xbf16> to vector<2x8x8xbf16>
    %33 = vector.extract_strided_slice %28 {offsets = [0, 0, 0], sizes = [2, 8, 8], strides = [1, 1, 1]} : vector<2x8x32xbf16> to vector<2x8x8xbf16>
    %34 = vector.extract_strided_slice %30 {offsets = [0, 0, 0], sizes = [2, 8, 8], strides = [1, 1, 1]} : vector<2x8x32xbf16> to vector<2x8x8xbf16>
    "tpu.trace_start"() <{level = 10 : i32, message = "bqd,bkd->bqk"}> : () -> ()
    %cst_24 = arith.constant dense<0.000000e+00> : vector<2x8x8xf32>
    %35 = tpu.matmul %32, %33, %cst_24 {dimension_numbers = #tpu.dot_dimension_numbers<[2], [2], [1], [1], [0, 0, 0, 1, 1, 1], [0], [0]>} : vector<2x8x8xbf16>, vector<2x8x8xbf16>, vector<2x8x8xf32> -> vector<2x8x8xf32>
    %cst_25 = arith.constant 5.000000e-01 : f32
    "tpu.trace_stop"() : () -> ()
    %36 = vector.broadcast %cst_25 : f32 to vector<2x1x8xf32>
    %37 = arith.cmpf ogt, %31, %36 : vector<2x1x8xf32>
    %cst_26 = arith.constant -9.99999984E+17 : f32
    %38 = vector.shape_cast %37 : vector<2x1x8xi1> to vector<2x1x8xi1>
    %39 = vector.broadcast %38 : vector<2x1x8xi1> to vector<2x8x8xi1>
    %40 = vector.broadcast %cst_26 : f32 to vector<2x8x8xf32>
    %41 = arith.select %39, %40, %35 : vector<2x8x8xi1>, vector<2x8x8xf32>
    %cst_27 = arith.constant dense<0xFF800000> : vector<2x8xf32>
    %42 = vector.multi_reduction <maximumf>, %41, %cst_27 [2] : vector<2x8x8xf32> to vector<2x8xf32>
    %43 = vector.shape_cast %42 : vector<2x8xf32> to vector<2x8x1xf32>
    %44 = vector.broadcast %43 : vector<2x8x1xf32> to vector<2x8x8xf32>
    %45 = arith.subf %41, %44 : vector<2x8x8xf32>
    %46 = math.exp %45 : vector<2x8x8xf32>
    %cst_28 = arith.constant dense<0.000000e+00> : vector<2x8xf32>
    %47 = vector.multi_reduction <add>, %46, %cst_28 [2] : vector<2x8x8xf32> to vector<2x8xf32>
    %48 = vector.shape_cast %47 : vector<2x8xf32> to vector<2x8x1xf32>
    %49 = tpu.reciprocal %48 {approx = true} : vector<2x8x1xf32> -> vector<2x8x1xf32>
    %50 = vector.broadcast %49 : vector<2x8x1xf32> to vector<2x8x8xf32>
    %51 = arith.mulf %46, %50 : vector<2x8x8xf32>
    %52 = arith.truncf %51 : vector<2x8x8xf32> to vector<2x8x8xbf16>
    "tpu.trace_start"() <{level = 10 : i32, message = "bqk,bkd->bqd"}> : () -> ()
    %cst_29 = arith.constant dense<0.000000e+00> : vector<2x8x8xf32>
    %53 = tpu.matmul %52, %34, %cst_29 {dimension_numbers = #tpu.dot_dimension_numbers<[2], [1], [1], [2], [0, 0, 0, 1, 1, 2], [0], [0]>} : vector<2x8x8xbf16>, vector<2x8x8xbf16>, vector<2x8x8xf32> -> vector<2x8x8xf32>
    "tpu.trace_stop"() : () -> ()
    %54 = vector.extract_strided_slice %26 {offsets = [0, 0, 8], sizes = [2, 8, 8], strides = [1, 1, 1]} : vector<2x8x32xbf16> to vector<2x8x8xbf16>
    %55 = vector.extract_strided_slice %28 {offsets = [0, 0, 8], sizes = [2, 8, 8], strides = [1, 1, 1]} : vector<2x8x32xbf16> to vector<2x8x8xbf16>
    %56 = vector.extract_strided_slice %30 {offsets = [0, 0, 8], sizes = [2, 8, 8], strides = [1, 1, 1]} : vector<2x8x32xbf16> to vector<2x8x8xbf16>
    "tpu.trace_start"() <{level = 10 : i32, message = "bqd,bkd->bqk"}> : () -> ()
    %cst_30 = arith.constant dense<0.000000e+00> : vector<2x8x8xf32>
    %57 = tpu.matmul %54, %55, %cst_30 {dimension_numbers = #tpu.dot_dimension_numbers<[2], [2], [1], [1], [0, 0, 0, 1, 1, 1], [0], [0]>} : vector<2x8x8xbf16>, vector<2x8x8xbf16>, vector<2x8x8xf32> -> vector<2x8x8xf32>
    %cst_31 = arith.constant 5.000000e-01 : f32
    "tpu.trace_stop"() : () -> ()
    %58 = vector.broadcast %cst_31 : f32 to vector<2x1x8xf32>
    %59 = arith.cmpf ogt, %31, %58 : vector<2x1x8xf32>
    %cst_32 = arith.constant -9.99999984E+17 : f32
    %60 = vector.shape_cast %59 : vector<2x1x8xi1> to vector<2x1x8xi1>
    %61 = vector.broadcast %60 : vector<2x1x8xi1> to vector<2x8x8xi1>
    %62 = vector.broadcast %cst_32 : f32 to vector<2x8x8xf32>
    %63 = arith.select %61, %62, %57 : vector<2x8x8xi1>, vector<2x8x8xf32>
    %cst_33 = arith.constant dense<0xFF800000> : vector<2x8xf32>
    %64 = vector.multi_reduction <maximumf>, %63, %cst_33 [2] : vector<2x8x8xf32> to vector<2x8xf32>
    %65 = vector.shape_cast %64 : vector<2x8xf32> to vector<2x8x1xf32>
    %66 = vector.broadcast %65 : vector<2x8x1xf32> to vector<2x8x8xf32>
    %67 = arith.subf %63, %66 : vector<2x8x8xf32>
    %68 = math.exp %67 : vector<2x8x8xf32>
    %cst_34 = arith.constant dense<0.000000e+00> : vector<2x8xf32>
    %69 = vector.multi_reduction <add>, %68, %cst_34 [2] : vector<2x8x8xf32> to vector<2x8xf32>
    %70 = vector.shape_cast %69 : vector<2x8xf32> to vector<2x8x1xf32>
    %71 = tpu.reciprocal %70 {approx = true} : vector<2x8x1xf32> -> vector<2x8x1xf32>
    %72 = vector.broadcast %71 : vector<2x8x1xf32> to vector<2x8x8xf32>
    %73 = arith.mulf %68, %72 : vector<2x8x8xf32>
    %74 = arith.truncf %73 : vector<2x8x8xf32> to vector<2x8x8xbf16>
    "tpu.trace_start"() <{level = 10 : i32, message = "bqk,bkd->bqd"}> : () -> ()
    %cst_35 = arith.constant dense<0.000000e+00> : vector<2x8x8xf32>
    %75 = tpu.matmul %74, %56, %cst_35 {dimension_numbers = #tpu.dot_dimension_numbers<[2], [1], [1], [2], [0, 0, 0, 1, 1, 2], [0], [0]>} : vector<2x8x8xbf16>, vector<2x8x8xbf16>, vector<2x8x8xf32> -> vector<2x8x8xf32>
    "tpu.trace_stop"() : () -> ()
    %76 = vector.extract_strided_slice %26 {offsets = [0, 0, 16], sizes = [2, 8, 8], strides = [1, 1, 1]} : vector<2x8x32xbf16> to vector<2x8x8xbf16>
    %77 = vector.extract_strided_slice %28 {offsets = [0, 0, 16], sizes = [2, 8, 8], strides = [1, 1, 1]} : vector<2x8x32xbf16> to vector<2x8x8xbf16>
    %78 = vector.extract_strided_slice %30 {offsets = [0, 0, 16], sizes = [2, 8, 8], strides = [1, 1, 1]} : vector<2x8x32xbf16> to vector<2x8x8xbf16>
    "tpu.trace_start"() <{level = 10 : i32, message = "bqd,bkd->bqk"}> : () -> ()
    %cst_36 = arith.constant dense<0.000000e+00> : vector<2x8x8xf32>
    %79 = tpu.matmul %76, %77, %cst_36 {dimension_numbers = #tpu.dot_dimension_numbers<[2], [2], [1], [1], [0, 0, 0, 1, 1, 1], [0], [0]>} : vector<2x8x8xbf16>, vector<2x8x8xbf16>, vector<2x8x8xf32> -> vector<2x8x8xf32>
    %cst_37 = arith.constant 5.000000e-01 : f32
    "tpu.trace_stop"() : () -> ()
    %80 = vector.broadcast %cst_37 : f32 to vector<2x1x8xf32>
    %81 = arith.cmpf ogt, %31, %80 : vector<2x1x8xf32>
    %cst_38 = arith.constant -9.99999984E+17 : f32
    %82 = vector.shape_cast %81 : vector<2x1x8xi1> to vector<2x1x8xi1>
    %83 = vector.broadcast %82 : vector<2x1x8xi1> to vector<2x8x8xi1>
    %84 = vector.broadcast %cst_38 : f32 to vector<2x8x8xf32>
    %85 = arith.select %83, %84, %79 : vector<2x8x8xi1>, vector<2x8x8xf32>
    %cst_39 = arith.constant dense<0xFF800000> : vector<2x8xf32>
    %86 = vector.multi_reduction <maximumf>, %85, %cst_39 [2] : vector<2x8x8xf32> to vector<2x8xf32>
    %87 = vector.shape_cast %86 : vector<2x8xf32> to vector<2x8x1xf32>
    %88 = vector.broadcast %87 : vector<2x8x1xf32> to vector<2x8x8xf32>
    %89 = arith.subf %85, %88 : vector<2x8x8xf32>
    %90 = math.exp %89 : vector<2x8x8xf32>
    %cst_40 = arith.constant dense<0.000000e+00> : vector<2x8xf32>
    %91 = vector.multi_reduction <add>, %90, %cst_40 [2] : vector<2x8x8xf32> to vector<2x8xf32>
    %92 = vector.shape_cast %91 : vector<2x8xf32> to vector<2x8x1xf32>
    %93 = tpu.reciprocal %92 {approx = true} : vector<2x8x1xf32> -> vector<2x8x1xf32>
    %94 = vector.broadcast %93 : vector<2x8x1xf32> to vector<2x8x8xf32>
    %95 = arith.mulf %90, %94 : vector<2x8x8xf32>
    %96 = arith.truncf %95 : vector<2x8x8xf32> to vector<2x8x8xbf16>
    "tpu.trace_start"() <{level = 10 : i32, message = "bqk,bkd->bqd"}> : () -> ()
    %cst_41 = arith.constant dense<0.000000e+00> : vector<2x8x8xf32>
    %97 = tpu.matmul %96, %78, %cst_41 {dimension_numbers = #tpu.dot_dimension_numbers<[2], [1], [1], [2], [0, 0, 0, 1, 1, 2], [0], [0]>} : vector<2x8x8xbf16>, vector<2x8x8xbf16>, vector<2x8x8xf32> -> vector<2x8x8xf32>
    "tpu.trace_stop"() : () -> ()
    %98 = vector.extract_strided_slice %26 {offsets = [0, 0, 24], sizes = [2, 8, 8], strides = [1, 1, 1]} : vector<2x8x32xbf16> to vector<2x8x8xbf16>
    %99 = vector.extract_strided_slice %28 {offsets = [0, 0, 24], sizes = [2, 8, 8], strides = [1, 1, 1]} : vector<2x8x32xbf16> to vector<2x8x8xbf16>
    %100 = vector.extract_strided_slice %30 {offsets = [0, 0, 24], sizes = [2, 8, 8], strides = [1, 1, 1]} : vector<2x8x32xbf16> to vector<2x8x8xbf16>
    "tpu.trace_start"() <{level = 10 : i32, message = "bqd,bkd->bqk"}> : () -> ()
    %cst_42 = arith.constant dense<0.000000e+00> : vector<2x8x8xf32>
    %101 = tpu.matmul %98, %99, %cst_42 {dimension_numbers = #tpu.dot_dimension_numbers<[2], [2], [1], [1], [0, 0, 0, 1, 1, 1], [0], [0]>} : vector<2x8x8xbf16>, vector<2x8x8xbf16>, vector<2x8x8xf32> -> vector<2x8x8xf32>
    %cst_43 = arith.constant 5.000000e-01 : f32
    "tpu.trace_stop"() : () -> ()
    %102 = vector.broadcast %cst_43 : f32 to vector<2x1x8xf32>
    %103 = arith.cmpf ogt, %31, %102 : vector<2x1x8xf32>
    %cst_44 = arith.constant -9.99999984E+17 : f32
    %104 = vector.shape_cast %103 : vector<2x1x8xi1> to vector<2x1x8xi1>
    %105 = vector.broadcast %104 : vector<2x1x8xi1> to vector<2x8x8xi1>
    %106 = vector.broadcast %cst_44 : f32 to vector<2x8x8xf32>
    %107 = arith.select %105, %106, %101 : vector<2x8x8xi1>, vector<2x8x8xf32>
    %cst_45 = arith.constant dense<0xFF800000> : vector<2x8xf32>
    %108 = vector.multi_reduction <maximumf>, %107, %cst_45 [2] : vector<2x8x8xf32> to vector<2x8xf32>
    %109 = vector.shape_cast %108 : vector<2x8xf32> to vector<2x8x1xf32>
    %110 = vector.broadcast %109 : vector<2x8x1xf32> to vector<2x8x8xf32>
    %111 = arith.subf %107, %110 : vector<2x8x8xf32>
    %112 = math.exp %111 : vector<2x8x8xf32>
    %cst_46 = arith.constant dense<0.000000e+00> : vector<2x8xf32>
    %113 = vector.multi_reduction <add>, %112, %cst_46 [2] : vector<2x8x8xf32> to vector<2x8xf32>
    %114 = vector.shape_cast %113 : vector<2x8xf32> to vector<2x8x1xf32>
    %115 = tpu.reciprocal %114 {approx = true} : vector<2x8x1xf32> -> vector<2x8x1xf32>
    %116 = vector.broadcast %115 : vector<2x8x1xf32> to vector<2x8x8xf32>
    %117 = arith.mulf %112, %116 : vector<2x8x8xf32>
    %118 = arith.truncf %117 : vector<2x8x8xf32> to vector<2x8x8xbf16>
    "tpu.trace_start"() <{level = 10 : i32, message = "bqk,bkd->bqd"}> : () -> ()
    %cst_47 = arith.constant dense<0.000000e+00> : vector<2x8x8xf32>
    %119 = tpu.matmul %118, %100, %cst_47 {dimension_numbers = #tpu.dot_dimension_numbers<[2], [1], [1], [2], [0, 0, 0, 1, 1, 2], [0], [0]>} : vector<2x8x8xbf16>, vector<2x8x8xbf16>, vector<2x8x8xf32> -> vector<2x8x8xf32>
    "tpu.trace_stop"() : () -> ()
    %120 = tpu.concatenate %53, %75, %97, %119 in 2 : vector<2x8x8xf32>, vector<2x8x8xf32>, vector<2x8x8xf32>, vector<2x8x8xf32> -> vector<2x8x32xf32>
    %121 = vector.shape_cast %120 : vector<2x8x32xf32> to vector<16x32xf32>
    %122 = arith.truncf %121 : vector<16x32xf32> to vector<16x32xbf16>
    %c0_48 = arith.constant 0 : index
    %c0_49 = arith.constant 0 : index
    %123 = vector.load %arg11[%c0_48, %c0_49] : memref<32x32xbf16, #tpu.memory_space<vmem>>, vector<32x32xbf16>
    %cst_50 = arith.constant dense<0.000000e+00> : vector<16x32xf32>
    %124 = tpu.matmul %122, %123, %cst_50 {dimension_numbers = #tpu.dot_dimension_numbers<[1], [0], [0], [1], [0, 0, 1, 1], [], []>} : vector<16x32xbf16>, vector<32x32xbf16>, vector<16x32xf32> -> vector<16x32xf32>
    %c0_51 = arith.constant 0 : index
    %c0_52 = arith.constant 0 : index
    %125 = vector.load %arg12[%c0_51, %c0_52] : memref<1x32xf32, #tpu.memory_space<vmem>>, vector<1x32xf32>
    %126 = vector.broadcast %125 : vector<1x32xf32> to vector<16x32xf32>
    %127 = arith.addf %124, %126 : vector<16x32xf32>
    %128 = arith.truncf %127 : vector<16x32xf32> to vector<16x32xbf16>
    %c0_53 = arith.constant 0 : index
    %c0_54 = arith.constant 0 : index
    %129 = vector.load %arg13[%c0_53, %c0_54] : memref<64x128xbf16, #tpu.memory_space<vmem>>, vector<64x128xbf16>
    %c0_55 = arith.constant 0 : index
    %c0_56 = arith.constant 0 : index
    %130 = vector.load %arg16[%c0_55, %c0_56] : memref<64x128xbf16, #tpu.memory_space<vmem>>, vector<64x128xbf16>
    %131 = vector.extract_strided_slice %129 {offsets = [0, 0], sizes = [32, 128], strides = [1, 1]} : vector<64x128xbf16> to vector<32x128xbf16>
    %cst_57 = arith.constant dense<0.000000e+00> : vector<16x128xf32>
    %132 = tpu.matmul %128, %131, %cst_57 {dimension_numbers = #tpu.dot_dimension_numbers<[1], [0], [0], [1], [0, 0, 1, 1], [], []>} : vector<16x32xbf16>, vector<32x128xbf16>, vector<16x128xf32> -> vector<16x128xf32>
    %133 = vector.extract_strided_slice %129 {offsets = [32, 0], sizes = [32, 128], strides = [1, 1]} : vector<64x128xbf16> to vector<32x128xbf16>
    %cst_58 = arith.constant dense<0.000000e+00> : vector<16x128xf32>
    %134 = tpu.matmul %6, %133, %cst_58 {dimension_numbers = #tpu.dot_dimension_numbers<[1], [0], [0], [1], [0, 0, 1, 1], [], []>} : vector<16x32xbf16>, vector<32x128xbf16>, vector<16x128xf32> -> vector<16x128xf32>
    %135 = arith.addf %132, %134 : vector<16x128xf32>
    %c0_59 = arith.constant 0 : index
    %c0_60 = arith.constant 0 : index
    %136 = vector.load %arg15[%c0_59, %c0_60] : memref<1x128xf32, #tpu.memory_space<vmem>>, vector<1x128xf32>
    %137 = vector.broadcast %136 : vector<1x128xf32> to vector<16x128xf32>
    %138 = arith.addf %135, %137 : vector<16x128xf32>
    %139 = vector.shape_cast %138 : vector<16x128xf32> to vector<2x8x128xf32>
    %140 = vector.extract_strided_slice %130 {offsets = [0, 0], sizes = [32, 128], strides = [1, 1]} : vector<64x128xbf16> to vector<32x128xbf16>
    %cst_61 = arith.constant dense<0.000000e+00> : vector<16x128xf32>
    %141 = tpu.matmul %128, %140, %cst_61 {dimension_numbers = #tpu.dot_dimension_numbers<[1], [0], [0], [1], [0, 0, 1, 1], [], []>} : vector<16x32xbf16>, vector<32x128xbf16>, vector<16x128xf32> -> vector<16x128xf32>
    %142 = vector.extract_strided_slice %130 {offsets = [32, 0], sizes = [32, 128], strides = [1, 1]} : vector<64x128xbf16> to vector<32x128xbf16>
    %cst_62 = arith.constant dense<0.000000e+00> : vector<16x128xf32>
    %143 = tpu.matmul %6, %142, %cst_62 {dimension_numbers = #tpu.dot_dimension_numbers<[1], [0], [0], [1], [0, 0, 1, 1], [], []>} : vector<16x32xbf16>, vector<32x128xbf16>, vector<16x128xf32> -> vector<16x128xf32>
    %144 = arith.addf %141, %143 : vector<16x128xf32>
    %c0_63 = arith.constant 0 : index
    %c0_64 = arith.constant 0 : index
    %145 = vector.load %arg18[%c0_63, %c0_64] : memref<1x128xf32, #tpu.memory_space<vmem>>, vector<1x128xf32>
    %146 = vector.broadcast %145 : vector<1x128xf32> to vector<16x128xf32>
    %147 = arith.addf %144, %146 : vector<16x128xf32>
    %148 = vector.shape_cast %147 : vector<16x128xf32> to vector<2x8x128xf32>
    %c0_65 = arith.constant 0 : index
    %c0_66 = arith.constant 0 : index
    %149 = vector.load %arg14[%c0_65, %c0_66] : memref<32x128xbf16, #tpu.memory_space<vmem>>, vector<32x128xbf16>
    %c0_67 = arith.constant 0 : index
    %c0_68 = arith.constant 0 : index
    %150 = vector.load %arg17[%c0_67, %c0_68] : memref<32x128xbf16, #tpu.memory_space<vmem>>, vector<32x128xbf16>
    %cst_69 = arith.constant 0.000000e+00 : f32
    %151 = vector.broadcast %cst_69 : f32 to vector<2x32xf32>
    %152 = vector.extract_strided_slice %3 {offsets = [0, 0], sizes = [2, 1], strides = [1, 1]} : vector<2x8xf32> to vector<2x1xf32>
    %cst_70 = arith.constant 5.000000e-01 : f32
    %153 = vector.broadcast %cst_70 : f32 to vector<2x1xf32>
    %154 = arith.cmpf ogt, %152, %153 : vector<2x1xf32>
    %155 = vector.extract_strided_slice %3 {offsets = [0, 7], sizes = [2, 1], strides = [1, 1]} : vector<2x8xf32> to vector<2x1xf32>
    %cst_71 = arith.constant 5.000000e-01 : f32
    %156 = vector.broadcast %cst_71 : f32 to vector<2x1xf32>
    %157 = arith.cmpf ogt, %155, %156 : vector<2x1xf32>
    %158 = vector.extract_strided_slice %139 {offsets = [0, 0, 0], sizes = [2, 1, 128], strides = [1, 1, 1]} : vector<2x8x128xf32> to vector<2x1x128xf32>
    %159 = vector.shape_cast %158 : vector<2x1x128xf32> to vector<2x128xf32>
    %160 = arith.truncf %151 : vector<2x32xf32> to vector<2x32xbf16>
    %cst_72 = arith.constant dense<0.000000e+00> : vector<2x128xf32>
    %161 = tpu.matmul %160, %149, %cst_72 {dimension_numbers = #tpu.dot_dimension_numbers<[1], [0], [0], [1], [0, 0, 1, 1], [], []>} : vector<2x32xbf16>, vector<32x128xbf16>, vector<2x128xf32> -> vector<2x128xf32>
    %162 = arith.addf %159, %161 : vector<2x128xf32>
    %163 = vector.extract_strided_slice %162 {offsets = [0, 0], sizes = [2, 32], strides = [1, 1]} : vector<2x128xf32> to vector<2x32xf32>
    %164 = arith.negf %163 : vector<2x32xf32>
    %165 = math.exp %164 : vector<2x32xf32>
    %cst_73 = arith.constant 1.000000e+00 : f32
    %166 = vector.broadcast %cst_73 : f32 to vector<2x32xf32>
    %167 = arith.addf %166, %165 : vector<2x32xf32>
    %168 = arith.divf %166, %167 : vector<2x32xf32>
    %169 = vector.extract_strided_slice %162 {offsets = [0, 32], sizes = [2, 32], strides = [1, 1]} : vector<2x128xf32> to vector<2x32xf32>
    %170 = arith.negf %169 : vector<2x32xf32>
    %171 = math.exp %170 : vector<2x32xf32>
    %cst_74 = arith.constant 1.000000e+00 : f32
    %172 = vector.broadcast %cst_74 : f32 to vector<2x32xf32>
    %173 = arith.addf %172, %171 : vector<2x32xf32>
    %174 = arith.divf %172, %173 : vector<2x32xf32>
    %175 = vector.extract_strided_slice %162 {offsets = [0, 64], sizes = [2, 32], strides = [1, 1]} : vector<2x128xf32> to vector<2x32xf32>
    %176 = math.tanh %175 : vector<2x32xf32>
    %177 = vector.extract_strided_slice %162 {offsets = [0, 96], sizes = [2, 32], strides = [1, 1]} : vector<2x128xf32> to vector<2x32xf32>
    %178 = arith.negf %177 : vector<2x32xf32>
    %179 = math.exp %178 : vector<2x32xf32>
    %cst_75 = arith.constant 1.000000e+00 : f32
    %180 = vector.broadcast %cst_75 : f32 to vector<2x32xf32>
    %181 = arith.addf %180, %179 : vector<2x32xf32>
    %182 = arith.divf %180, %181 : vector<2x32xf32>
    %183 = arith.mulf %174, %151 : vector<2x32xf32>
    %184 = arith.mulf %168, %176 : vector<2x32xf32>
    %185 = arith.addf %183, %184 : vector<2x32xf32>
    %186 = math.tanh %185 : vector<2x32xf32>
    %187 = arith.mulf %182, %186 : vector<2x32xf32>
    %188 = vector.extract_strided_slice %148 {offsets = [0, 7, 0], sizes = [2, 1, 128], strides = [1, 1, 1]} : vector<2x8x128xf32> to vector<2x1x128xf32>
    %189 = vector.shape_cast %188 : vector<2x1x128xf32> to vector<2x128xf32>
    %190 = arith.truncf %151 : vector<2x32xf32> to vector<2x32xbf16>
    %cst_76 = arith.constant dense<0.000000e+00> : vector<2x128xf32>
    %191 = tpu.matmul %190, %150, %cst_76 {dimension_numbers = #tpu.dot_dimension_numbers<[1], [0], [0], [1], [0, 0, 1, 1], [], []>} : vector<2x32xbf16>, vector<32x128xbf16>, vector<2x128xf32> -> vector<2x128xf32>
    %192 = arith.addf %189, %191 : vector<2x128xf32>
    %193 = vector.extract_strided_slice %192 {offsets = [0, 0], sizes = [2, 32], strides = [1, 1]} : vector<2x128xf32> to vector<2x32xf32>
    %194 = arith.negf %193 : vector<2x32xf32>
    %195 = math.exp %194 : vector<2x32xf32>
    %cst_77 = arith.constant 1.000000e+00 : f32
    %196 = vector.broadcast %cst_77 : f32 to vector<2x32xf32>
    %197 = arith.addf %196, %195 : vector<2x32xf32>
    %198 = arith.divf %196, %197 : vector<2x32xf32>
    %199 = vector.extract_strided_slice %192 {offsets = [0, 32], sizes = [2, 32], strides = [1, 1]} : vector<2x128xf32> to vector<2x32xf32>
    %200 = arith.negf %199 : vector<2x32xf32>
    %201 = math.exp %200 : vector<2x32xf32>
    %cst_78 = arith.constant 1.000000e+00 : f32
    %202 = vector.broadcast %cst_78 : f32 to vector<2x32xf32>
    %203 = arith.addf %202, %201 : vector<2x32xf32>
    %204 = arith.divf %202, %203 : vector<2x32xf32>
    %205 = vector.extract_strided_slice %192 {offsets = [0, 64], sizes = [2, 32], strides = [1, 1]} : vector<2x128xf32> to vector<2x32xf32>
    %206 = math.tanh %205 : vector<2x32xf32>
    %207 = vector.extract_strided_slice %192 {offsets = [0, 96], sizes = [2, 32], strides = [1, 1]} : vector<2x128xf32> to vector<2x32xf32>
    %208 = arith.negf %207 : vector<2x32xf32>
    %209 = math.exp %208 : vector<2x32xf32>
    %cst_79 = arith.constant 1.000000e+00 : f32
    %210 = vector.broadcast %cst_79 : f32 to vector<2x32xf32>
    %211 = arith.addf %210, %209 : vector<2x32xf32>
    %212 = arith.divf %210, %211 : vector<2x32xf32>
    %213 = arith.mulf %204, %151 : vector<2x32xf32>
    %214 = arith.mulf %198, %206 : vector<2x32xf32>
    %215 = arith.addf %213, %214 : vector<2x32xf32>
    %216 = math.tanh %215 : vector<2x32xf32>
    %217 = arith.mulf %212, %216 : vector<2x32xf32>
    %218 = vector.shape_cast %154 : vector<2x1xi1> to vector<2x1xi1>
    %219 = vector.broadcast %218 : vector<2x1xi1> to vector<2x32xi1>
    %220 = arith.select %219, %187, %151 : vector<2x32xi1>, vector<2x32xf32>
    %221 = vector.shape_cast %154 : vector<2x1xi1> to vector<2x1xi1>
    %222 = vector.broadcast %221 : vector<2x1xi1> to vector<2x32xi1>
    %223 = arith.select %222, %185, %151 : vector<2x32xi1>, vector<2x32xf32>
    %224 = vector.shape_cast %157 : vector<2x1xi1> to vector<2x1xi1>
    %225 = vector.broadcast %224 : vector<2x1xi1> to vector<2x32xi1>
    %226 = arith.select %225, %217, %151 : vector<2x32xi1>, vector<2x32xf32>
    %227 = vector.shape_cast %157 : vector<2x1xi1> to vector<2x1xi1>
    %228 = vector.broadcast %227 : vector<2x1xi1> to vector<2x32xi1>
    %229 = arith.select %228, %215, %151 : vector<2x32xi1>, vector<2x32xf32>
    %cst_80 = arith.constant 0.000000e+00 : f32
    %230 = vector.shape_cast %154 : vector<2x1xi1> to vector<2x1xi1>
    %231 = vector.broadcast %230 : vector<2x1xi1> to vector<2x32xi1>
    %232 = vector.broadcast %cst_80 : f32 to vector<2x32xf32>
    %233 = arith.select %231, %187, %232 : vector<2x32xi1>, vector<2x32xf32>
    %234 = arith.addf %151, %233 : vector<2x32xf32>
    %cst_81 = arith.constant 0.000000e+00 : f32
    %235 = vector.shape_cast %157 : vector<2x1xi1> to vector<2x1xi1>
    %236 = vector.broadcast %235 : vector<2x1xi1> to vector<2x32xi1>
    %237 = vector.broadcast %cst_81 : f32 to vector<2x32xf32>
    %238 = arith.select %236, %217, %237 : vector<2x32xi1>, vector<2x32xf32>
    %239 = arith.addf %151, %238 : vector<2x32xf32>
    %240 = vector.extract_strided_slice %3 {offsets = [0, 1], sizes = [2, 1], strides = [1, 1]} : vector<2x8xf32> to vector<2x1xf32>
    %cst_82 = arith.constant 5.000000e-01 : f32
    %241 = vector.broadcast %cst_82 : f32 to vector<2x1xf32>
    %242 = arith.cmpf ogt, %240, %241 : vector<2x1xf32>
    %243 = vector.extract_strided_slice %3 {offsets = [0, 6], sizes = [2, 1], strides = [1, 1]} : vector<2x8xf32> to vector<2x1xf32>
    %cst_83 = arith.constant 5.000000e-01 : f32
    %244 = vector.broadcast %cst_83 : f32 to vector<2x1xf32>
    %245 = arith.cmpf ogt, %243, %244 : vector<2x1xf32>
    %246 = vector.extract_strided_slice %139 {offsets = [0, 1, 0], sizes = [2, 1, 128], strides = [1, 1, 1]} : vector<2x8x128xf32> to vector<2x1x128xf32>
    %247 = vector.shape_cast %246 : vector<2x1x128xf32> to vector<2x128xf32>
    %248 = arith.truncf %220 : vector<2x32xf32> to vector<2x32xbf16>
    %cst_84 = arith.constant dense<0.000000e+00> : vector<2x128xf32>
    %249 = tpu.matmul %248, %149, %cst_84 {dimension_numbers = #tpu.dot_dimension_numbers<[1], [0], [0], [1], [0, 0, 1, 1], [], []>} : vector<2x32xbf16>, vector<32x128xbf16>, vector<2x128xf32> -> vector<2x128xf32>
    %250 = arith.addf %247, %249 : vector<2x128xf32>
    %251 = vector.extract_strided_slice %250 {offsets = [0, 0], sizes = [2, 32], strides = [1, 1]} : vector<2x128xf32> to vector<2x32xf32>
    %252 = arith.negf %251 : vector<2x32xf32>
    %253 = math.exp %252 : vector<2x32xf32>
    %cst_85 = arith.constant 1.000000e+00 : f32
    %254 = vector.broadcast %cst_85 : f32 to vector<2x32xf32>
    %255 = arith.addf %254, %253 : vector<2x32xf32>
    %256 = arith.divf %254, %255 : vector<2x32xf32>
    %257 = vector.extract_strided_slice %250 {offsets = [0, 32], sizes = [2, 32], strides = [1, 1]} : vector<2x128xf32> to vector<2x32xf32>
    %258 = arith.negf %257 : vector<2x32xf32>
    %259 = math.exp %258 : vector<2x32xf32>
    %cst_86 = arith.constant 1.000000e+00 : f32
    %260 = vector.broadcast %cst_86 : f32 to vector<2x32xf32>
    %261 = arith.addf %260, %259 : vector<2x32xf32>
    %262 = arith.divf %260, %261 : vector<2x32xf32>
    %263 = vector.extract_strided_slice %250 {offsets = [0, 64], sizes = [2, 32], strides = [1, 1]} : vector<2x128xf32> to vector<2x32xf32>
    %264 = math.tanh %263 : vector<2x32xf32>
    %265 = vector.extract_strided_slice %250 {offsets = [0, 96], sizes = [2, 32], strides = [1, 1]} : vector<2x128xf32> to vector<2x32xf32>
    %266 = arith.negf %265 : vector<2x32xf32>
    %267 = math.exp %266 : vector<2x32xf32>
    %cst_87 = arith.constant 1.000000e+00 : f32
    %268 = vector.broadcast %cst_87 : f32 to vector<2x32xf32>
    %269 = arith.addf %268, %267 : vector<2x32xf32>
    %270 = arith.divf %268, %269 : vector<2x32xf32>
    %271 = arith.mulf %262, %223 : vector<2x32xf32>
    %272 = arith.mulf %256, %264 : vector<2x32xf32>
    %273 = arith.addf %271, %272 : vector<2x32xf32>
    %274 = math.tanh %273 : vector<2x32xf32>
    %275 = arith.mulf %270, %274 : vector<2x32xf32>
    %276 = vector.extract_strided_slice %148 {offsets = [0, 6, 0], sizes = [2, 1, 128], strides = [1, 1, 1]} : vector<2x8x128xf32> to vector<2x1x128xf32>
    %277 = vector.shape_cast %276 : vector<2x1x128xf32> to vector<2x128xf32>
    %278 = arith.truncf %226 : vector<2x32xf32> to vector<2x32xbf16>
    %cst_88 = arith.constant dense<0.000000e+00> : vector<2x128xf32>
    %279 = tpu.matmul %278, %150, %cst_88 {dimension_numbers = #tpu.dot_dimension_numbers<[1], [0], [0], [1], [0, 0, 1, 1], [], []>} : vector<2x32xbf16>, vector<32x128xbf16>, vector<2x128xf32> -> vector<2x128xf32>
    %280 = arith.addf %277, %279 : vector<2x128xf32>
    %281 = vector.extract_strided_slice %280 {offsets = [0, 0], sizes = [2, 32], strides = [1, 1]} : vector<2x128xf32> to vector<2x32xf32>
    %282 = arith.negf %281 : vector<2x32xf32>
    %283 = math.exp %282 : vector<2x32xf32>
    %cst_89 = arith.constant 1.000000e+00 : f32
    %284 = vector.broadcast %cst_89 : f32 to vector<2x32xf32>
    %285 = arith.addf %284, %283 : vector<2x32xf32>
    %286 = arith.divf %284, %285 : vector<2x32xf32>
    %287 = vector.extract_strided_slice %280 {offsets = [0, 32], sizes = [2, 32], strides = [1, 1]} : vector<2x128xf32> to vector<2x32xf32>
    %288 = arith.negf %287 : vector<2x32xf32>
    %289 = math.exp %288 : vector<2x32xf32>
    %cst_90 = arith.constant 1.000000e+00 : f32
    %290 = vector.broadcast %cst_90 : f32 to vector<2x32xf32>
    %291 = arith.addf %290, %289 : vector<2x32xf32>
    %292 = arith.divf %290, %291 : vector<2x32xf32>
    %293 = vector.extract_strided_slice %280 {offsets = [0, 64], sizes = [2, 32], strides = [1, 1]} : vector<2x128xf32> to vector<2x32xf32>
    %294 = math.tanh %293 : vector<2x32xf32>
    %295 = vector.extract_strided_slice %280 {offsets = [0, 96], sizes = [2, 32], strides = [1, 1]} : vector<2x128xf32> to vector<2x32xf32>
    %296 = arith.negf %295 : vector<2x32xf32>
    %297 = math.exp %296 : vector<2x32xf32>
    %cst_91 = arith.constant 1.000000e+00 : f32
    %298 = vector.broadcast %cst_91 : f32 to vector<2x32xf32>
    %299 = arith.addf %298, %297 : vector<2x32xf32>
    %300 = arith.divf %298, %299 : vector<2x32xf32>
    %301 = arith.mulf %292, %229 : vector<2x32xf32>
    %302 = arith.mulf %286, %294 : vector<2x32xf32>
    %303 = arith.addf %301, %302 : vector<2x32xf32>
    %304 = math.tanh %303 : vector<2x32xf32>
    %305 = arith.mulf %300, %304 : vector<2x32xf32>
    %306 = vector.shape_cast %242 : vector<2x1xi1> to vector<2x1xi1>
    %307 = vector.broadcast %306 : vector<2x1xi1> to vector<2x32xi1>
    %308 = arith.select %307, %275, %220 : vector<2x32xi1>, vector<2x32xf32>
    %309 = vector.shape_cast %242 : vector<2x1xi1> to vector<2x1xi1>
    %310 = vector.broadcast %309 : vector<2x1xi1> to vector<2x32xi1>
    %311 = arith.select %310, %273, %223 : vector<2x32xi1>, vector<2x32xf32>
    %312 = vector.shape_cast %245 : vector<2x1xi1> to vector<2x1xi1>
    %313 = vector.broadcast %312 : vector<2x1xi1> to vector<2x32xi1>
    %314 = arith.select %313, %305, %226 : vector<2x32xi1>, vector<2x32xf32>
    %315 = vector.shape_cast %245 : vector<2x1xi1> to vector<2x1xi1>
    %316 = vector.broadcast %315 : vector<2x1xi1> to vector<2x32xi1>
    %317 = arith.select %316, %303, %229 : vector<2x32xi1>, vector<2x32xf32>
    %cst_92 = arith.constant 0.000000e+00 : f32
    %318 = vector.shape_cast %242 : vector<2x1xi1> to vector<2x1xi1>
    %319 = vector.broadcast %318 : vector<2x1xi1> to vector<2x32xi1>
    %320 = vector.broadcast %cst_92 : f32 to vector<2x32xf32>
    %321 = arith.select %319, %275, %320 : vector<2x32xi1>, vector<2x32xf32>
    %322 = arith.addf %234, %321 : vector<2x32xf32>
    %cst_93 = arith.constant 0.000000e+00 : f32
    %323 = vector.shape_cast %245 : vector<2x1xi1> to vector<2x1xi1>
    %324 = vector.broadcast %323 : vector<2x1xi1> to vector<2x32xi1>
    %325 = vector.broadcast %cst_93 : f32 to vector<2x32xf32>
    %326 = arith.select %324, %305, %325 : vector<2x32xi1>, vector<2x32xf32>
    %327 = arith.addf %239, %326 : vector<2x32xf32>
    %328 = vector.extract_strided_slice %3 {offsets = [0, 2], sizes = [2, 1], strides = [1, 1]} : vector<2x8xf32> to vector<2x1xf32>
    %cst_94 = arith.constant 5.000000e-01 : f32
    %329 = vector.broadcast %cst_94 : f32 to vector<2x1xf32>
    %330 = arith.cmpf ogt, %328, %329 : vector<2x1xf32>
    %331 = vector.extract_strided_slice %3 {offsets = [0, 5], sizes = [2, 1], strides = [1, 1]} : vector<2x8xf32> to vector<2x1xf32>
    %cst_95 = arith.constant 5.000000e-01 : f32
    %332 = vector.broadcast %cst_95 : f32 to vector<2x1xf32>
    %333 = arith.cmpf ogt, %331, %332 : vector<2x1xf32>
    %334 = vector.extract_strided_slice %139 {offsets = [0, 2, 0], sizes = [2, 1, 128], strides = [1, 1, 1]} : vector<2x8x128xf32> to vector<2x1x128xf32>
    %335 = vector.shape_cast %334 : vector<2x1x128xf32> to vector<2x128xf32>
    %336 = arith.truncf %308 : vector<2x32xf32> to vector<2x32xbf16>
    %cst_96 = arith.constant dense<0.000000e+00> : vector<2x128xf32>
    %337 = tpu.matmul %336, %149, %cst_96 {dimension_numbers = #tpu.dot_dimension_numbers<[1], [0], [0], [1], [0, 0, 1, 1], [], []>} : vector<2x32xbf16>, vector<32x128xbf16>, vector<2x128xf32> -> vector<2x128xf32>
    %338 = arith.addf %335, %337 : vector<2x128xf32>
    %339 = vector.extract_strided_slice %338 {offsets = [0, 0], sizes = [2, 32], strides = [1, 1]} : vector<2x128xf32> to vector<2x32xf32>
    %340 = arith.negf %339 : vector<2x32xf32>
    %341 = math.exp %340 : vector<2x32xf32>
    %cst_97 = arith.constant 1.000000e+00 : f32
    %342 = vector.broadcast %cst_97 : f32 to vector<2x32xf32>
    %343 = arith.addf %342, %341 : vector<2x32xf32>
    %344 = arith.divf %342, %343 : vector<2x32xf32>
    %345 = vector.extract_strided_slice %338 {offsets = [0, 32], sizes = [2, 32], strides = [1, 1]} : vector<2x128xf32> to vector<2x32xf32>
    %346 = arith.negf %345 : vector<2x32xf32>
    %347 = math.exp %346 : vector<2x32xf32>
    %cst_98 = arith.constant 1.000000e+00 : f32
    %348 = vector.broadcast %cst_98 : f32 to vector<2x32xf32>
    %349 = arith.addf %348, %347 : vector<2x32xf32>
    %350 = arith.divf %348, %349 : vector<2x32xf32>
    %351 = vector.extract_strided_slice %338 {offsets = [0, 64], sizes = [2, 32], strides = [1, 1]} : vector<2x128xf32> to vector<2x32xf32>
    %352 = math.tanh %351 : vector<2x32xf32>
    %353 = vector.extract_strided_slice %338 {offsets = [0, 96], sizes = [2, 32], strides = [1, 1]} : vector<2x128xf32> to vector<2x32xf32>
    %354 = arith.negf %353 : vector<2x32xf32>
    %355 = math.exp %354 : vector<2x32xf32>
    %cst_99 = arith.constant 1.000000e+00 : f32
    %356 = vector.broadcast %cst_99 : f32 to vector<2x32xf32>
    %357 = arith.addf %356, %355 : vector<2x32xf32>
    %358 = arith.divf %356, %357 : vector<2x32xf32>
    %359 = arith.mulf %350, %311 : vector<2x32xf32>
    %360 = arith.mulf %344, %352 : vector<2x32xf32>
    %361 = arith.addf %359, %360 : vector<2x32xf32>
    %362 = math.tanh %361 : vector<2x32xf32>
    %363 = arith.mulf %358, %362 : vector<2x32xf32>
    %364 = vector.extract_strided_slice %148 {offsets = [0, 5, 0], sizes = [2, 1, 128], strides = [1, 1, 1]} : vector<2x8x128xf32> to vector<2x1x128xf32>
    %365 = vector.shape_cast %364 : vector<2x1x128xf32> to vector<2x128xf32>
    %366 = arith.truncf %314 : vector<2x32xf32> to vector<2x32xbf16>
    %cst_100 = arith.constant dense<0.000000e+00> : vector<2x128xf32>
    %367 = tpu.matmul %366, %150, %cst_100 {dimension_numbers = #tpu.dot_dimension_numbers<[1], [0], [0], [1], [0, 0, 1, 1], [], []>} : vector<2x32xbf16>, vector<32x128xbf16>, vector<2x128xf32> -> vector<2x128xf32>
    %368 = arith.addf %365, %367 : vector<2x128xf32>
    %369 = vector.extract_strided_slice %368 {offsets = [0, 0], sizes = [2, 32], strides = [1, 1]} : vector<2x128xf32> to vector<2x32xf32>
    %370 = arith.negf %369 : vector<2x32xf32>
    %371 = math.exp %370 : vector<2x32xf32>
    %cst_101 = arith.constant 1.000000e+00 : f32
    %372 = vector.broadcast %cst_101 : f32 to vector<2x32xf32>
    %373 = arith.addf %372, %371 : vector<2x32xf32>
    %374 = arith.divf %372, %373 : vector<2x32xf32>
    %375 = vector.extract_strided_slice %368 {offsets = [0, 32], sizes = [2, 32], strides = [1, 1]} : vector<2x128xf32> to vector<2x32xf32>
    %376 = arith.negf %375 : vector<2x32xf32>
    %377 = math.exp %376 : vector<2x32xf32>
    %cst_102 = arith.constant 1.000000e+00 : f32
    %378 = vector.broadcast %cst_102 : f32 to vector<2x32xf32>
    %379 = arith.addf %378, %377 : vector<2x32xf32>
    %380 = arith.divf %378, %379 : vector<2x32xf32>
    %381 = vector.extract_strided_slice %368 {offsets = [0, 64], sizes = [2, 32], strides = [1, 1]} : vector<2x128xf32> to vector<2x32xf32>
    %382 = math.tanh %381 : vector<2x32xf32>
    %383 = vector.extract_strided_slice %368 {offsets = [0, 96], sizes = [2, 32], strides = [1, 1]} : vector<2x128xf32> to vector<2x32xf32>
    %384 = arith.negf %383 : vector<2x32xf32>
    %385 = math.exp %384 : vector<2x32xf32>
    %cst_103 = arith.constant 1.000000e+00 : f32
    %386 = vector.broadcast %cst_103 : f32 to vector<2x32xf32>
    %387 = arith.addf %386, %385 : vector<2x32xf32>
    %388 = arith.divf %386, %387 : vector<2x32xf32>
    %389 = arith.mulf %380, %317 : vector<2x32xf32>
    %390 = arith.mulf %374, %382 : vector<2x32xf32>
    %391 = arith.addf %389, %390 : vector<2x32xf32>
    %392 = math.tanh %391 : vector<2x32xf32>
    %393 = arith.mulf %388, %392 : vector<2x32xf32>
    %394 = vector.shape_cast %330 : vector<2x1xi1> to vector<2x1xi1>
    %395 = vector.broadcast %394 : vector<2x1xi1> to vector<2x32xi1>
    %396 = arith.select %395, %363, %308 : vector<2x32xi1>, vector<2x32xf32>
    %397 = vector.shape_cast %330 : vector<2x1xi1> to vector<2x1xi1>
    %398 = vector.broadcast %397 : vector<2x1xi1> to vector<2x32xi1>
    %399 = arith.select %398, %361, %311 : vector<2x32xi1>, vector<2x32xf32>
    %400 = vector.shape_cast %333 : vector<2x1xi1> to vector<2x1xi1>
    %401 = vector.broadcast %400 : vector<2x1xi1> to vector<2x32xi1>
    %402 = arith.select %401, %393, %314 : vector<2x32xi1>, vector<2x32xf32>
    %403 = vector.shape_cast %333 : vector<2x1xi1> to vector<2x1xi1>
    %404 = vector.broadcast %403 : vector<2x1xi1> to vector<2x32xi1>
    %405 = arith.select %404, %391, %317 : vector<2x32xi1>, vector<2x32xf32>
    %cst_104 = arith.constant 0.000000e+00 : f32
    %406 = vector.shape_cast %330 : vector<2x1xi1> to vector<2x1xi1>
    %407 = vector.broadcast %406 : vector<2x1xi1> to vector<2x32xi1>
    %408 = vector.broadcast %cst_104 : f32 to vector<2x32xf32>
    %409 = arith.select %407, %363, %408 : vector<2x32xi1>, vector<2x32xf32>
    %410 = arith.addf %322, %409 : vector<2x32xf32>
    %cst_105 = arith.constant 0.000000e+00 : f32
    %411 = vector.shape_cast %333 : vector<2x1xi1> to vector<2x1xi1>
    %412 = vector.broadcast %411 : vector<2x1xi1> to vector<2x32xi1>
    %413 = vector.broadcast %cst_105 : f32 to vector<2x32xf32>
    %414 = arith.select %412, %393, %413 : vector<2x32xi1>, vector<2x32xf32>
    %415 = arith.addf %327, %414 : vector<2x32xf32>
    %416 = vector.extract_strided_slice %3 {offsets = [0, 3], sizes = [2, 1], strides = [1, 1]} : vector<2x8xf32> to vector<2x1xf32>
    %cst_106 = arith.constant 5.000000e-01 : f32
    %417 = vector.broadcast %cst_106 : f32 to vector<2x1xf32>
    %418 = arith.cmpf ogt, %416, %417 : vector<2x1xf32>
    %419 = vector.extract_strided_slice %3 {offsets = [0, 4], sizes = [2, 1], strides = [1, 1]} : vector<2x8xf32> to vector<2x1xf32>
    %cst_107 = arith.constant 5.000000e-01 : f32
    %420 = vector.broadcast %cst_107 : f32 to vector<2x1xf32>
    %421 = arith.cmpf ogt, %419, %420 : vector<2x1xf32>
    %422 = vector.extract_strided_slice %139 {offsets = [0, 3, 0], sizes = [2, 1, 128], strides = [1, 1, 1]} : vector<2x8x128xf32> to vector<2x1x128xf32>
    %423 = vector.shape_cast %422 : vector<2x1x128xf32> to vector<2x128xf32>
    %424 = arith.truncf %396 : vector<2x32xf32> to vector<2x32xbf16>
    %cst_108 = arith.constant dense<0.000000e+00> : vector<2x128xf32>
    %425 = tpu.matmul %424, %149, %cst_108 {dimension_numbers = #tpu.dot_dimension_numbers<[1], [0], [0], [1], [0, 0, 1, 1], [], []>} : vector<2x32xbf16>, vector<32x128xbf16>, vector<2x128xf32> -> vector<2x128xf32>
    %426 = arith.addf %423, %425 : vector<2x128xf32>
    %427 = vector.extract_strided_slice %426 {offsets = [0, 0], sizes = [2, 32], strides = [1, 1]} : vector<2x128xf32> to vector<2x32xf32>
    %428 = arith.negf %427 : vector<2x32xf32>
    %429 = math.exp %428 : vector<2x32xf32>
    %cst_109 = arith.constant 1.000000e+00 : f32
    %430 = vector.broadcast %cst_109 : f32 to vector<2x32xf32>
    %431 = arith.addf %430, %429 : vector<2x32xf32>
    %432 = arith.divf %430, %431 : vector<2x32xf32>
    %433 = vector.extract_strided_slice %426 {offsets = [0, 32], sizes = [2, 32], strides = [1, 1]} : vector<2x128xf32> to vector<2x32xf32>
    %434 = arith.negf %433 : vector<2x32xf32>
    %435 = math.exp %434 : vector<2x32xf32>
    %cst_110 = arith.constant 1.000000e+00 : f32
    %436 = vector.broadcast %cst_110 : f32 to vector<2x32xf32>
    %437 = arith.addf %436, %435 : vector<2x32xf32>
    %438 = arith.divf %436, %437 : vector<2x32xf32>
    %439 = vector.extract_strided_slice %426 {offsets = [0, 64], sizes = [2, 32], strides = [1, 1]} : vector<2x128xf32> to vector<2x32xf32>
    %440 = math.tanh %439 : vector<2x32xf32>
    %441 = vector.extract_strided_slice %426 {offsets = [0, 96], sizes = [2, 32], strides = [1, 1]} : vector<2x128xf32> to vector<2x32xf32>
    %442 = arith.negf %441 : vector<2x32xf32>
    %443 = math.exp %442 : vector<2x32xf32>
    %cst_111 = arith.constant 1.000000e+00 : f32
    %444 = vector.broadcast %cst_111 : f32 to vector<2x32xf32>
    %445 = arith.addf %444, %443 : vector<2x32xf32>
    %446 = arith.divf %444, %445 : vector<2x32xf32>
    %447 = arith.mulf %438, %399 : vector<2x32xf32>
    %448 = arith.mulf %432, %440 : vector<2x32xf32>
    %449 = arith.addf %447, %448 : vector<2x32xf32>
    %450 = math.tanh %449 : vector<2x32xf32>
    %451 = arith.mulf %446, %450 : vector<2x32xf32>
    %452 = vector.extract_strided_slice %148 {offsets = [0, 4, 0], sizes = [2, 1, 128], strides = [1, 1, 1]} : vector<2x8x128xf32> to vector<2x1x128xf32>
    %453 = vector.shape_cast %452 : vector<2x1x128xf32> to vector<2x128xf32>
    %454 = arith.truncf %402 : vector<2x32xf32> to vector<2x32xbf16>
    %cst_112 = arith.constant dense<0.000000e+00> : vector<2x128xf32>
    %455 = tpu.matmul %454, %150, %cst_112 {dimension_numbers = #tpu.dot_dimension_numbers<[1], [0], [0], [1], [0, 0, 1, 1], [], []>} : vector<2x32xbf16>, vector<32x128xbf16>, vector<2x128xf32> -> vector<2x128xf32>
    %456 = arith.addf %453, %455 : vector<2x128xf32>
    %457 = vector.extract_strided_slice %456 {offsets = [0, 0], sizes = [2, 32], strides = [1, 1]} : vector<2x128xf32> to vector<2x32xf32>
    %458 = arith.negf %457 : vector<2x32xf32>
    %459 = math.exp %458 : vector<2x32xf32>
    %cst_113 = arith.constant 1.000000e+00 : f32
    %460 = vector.broadcast %cst_113 : f32 to vector<2x32xf32>
    %461 = arith.addf %460, %459 : vector<2x32xf32>
    %462 = arith.divf %460, %461 : vector<2x32xf32>
    %463 = vector.extract_strided_slice %456 {offsets = [0, 32], sizes = [2, 32], strides = [1, 1]} : vector<2x128xf32> to vector<2x32xf32>
    %464 = arith.negf %463 : vector<2x32xf32>
    %465 = math.exp %464 : vector<2x32xf32>
    %cst_114 = arith.constant 1.000000e+00 : f32
    %466 = vector.broadcast %cst_114 : f32 to vector<2x32xf32>
    %467 = arith.addf %466, %465 : vector<2x32xf32>
    %468 = arith.divf %466, %467 : vector<2x32xf32>
    %469 = vector.extract_strided_slice %456 {offsets = [0, 64], sizes = [2, 32], strides = [1, 1]} : vector<2x128xf32> to vector<2x32xf32>
    %470 = math.tanh %469 : vector<2x32xf32>
    %471 = vector.extract_strided_slice %456 {offsets = [0, 96], sizes = [2, 32], strides = [1, 1]} : vector<2x128xf32> to vector<2x32xf32>
    %472 = arith.negf %471 : vector<2x32xf32>
    %473 = math.exp %472 : vector<2x32xf32>
    %cst_115 = arith.constant 1.000000e+00 : f32
    %474 = vector.broadcast %cst_115 : f32 to vector<2x32xf32>
    %475 = arith.addf %474, %473 : vector<2x32xf32>
    %476 = arith.divf %474, %475 : vector<2x32xf32>
    %477 = arith.mulf %468, %405 : vector<2x32xf32>
    %478 = arith.mulf %462, %470 : vector<2x32xf32>
    %479 = arith.addf %477, %478 : vector<2x32xf32>
    %480 = math.tanh %479 : vector<2x32xf32>
    %481 = arith.mulf %476, %480 : vector<2x32xf32>
    %482 = vector.shape_cast %418 : vector<2x1xi1> to vector<2x1xi1>
    %483 = vector.broadcast %482 : vector<2x1xi1> to vector<2x32xi1>
    %484 = arith.select %483, %451, %396 : vector<2x32xi1>, vector<2x32xf32>
    %485 = vector.shape_cast %418 : vector<2x1xi1> to vector<2x1xi1>
    %486 = vector.broadcast %485 : vector<2x1xi1> to vector<2x32xi1>
    %487 = arith.select %486, %449, %399 : vector<2x32xi1>, vector<2x32xf32>
    %488 = vector.shape_cast %421 : vector<2x1xi1> to vector<2x1xi1>
    %489 = vector.broadcast %488 : vector<2x1xi1> to vector<2x32xi1>
    %490 = arith.select %489, %481, %402 : vector<2x32xi1>, vector<2x32xf32>
    %491 = vector.shape_cast %421 : vector<2x1xi1> to vector<2x1xi1>
    %492 = vector.broadcast %491 : vector<2x1xi1> to vector<2x32xi1>
    %493 = arith.select %492, %479, %405 : vector<2x32xi1>, vector<2x32xf32>
    %cst_116 = arith.constant 0.000000e+00 : f32
    %494 = vector.shape_cast %418 : vector<2x1xi1> to vector<2x1xi1>
    %495 = vector.broadcast %494 : vector<2x1xi1> to vector<2x32xi1>
    %496 = vector.broadcast %cst_116 : f32 to vector<2x32xf32>
    %497 = arith.select %495, %451, %496 : vector<2x32xi1>, vector<2x32xf32>
    %498 = arith.addf %410, %497 : vector<2x32xf32>
    %cst_117 = arith.constant 0.000000e+00 : f32
    %499 = vector.shape_cast %421 : vector<2x1xi1> to vector<2x1xi1>
    %500 = vector.broadcast %499 : vector<2x1xi1> to vector<2x32xi1>
    %501 = vector.broadcast %cst_117 : f32 to vector<2x32xf32>
    %502 = arith.select %500, %481, %501 : vector<2x32xi1>, vector<2x32xf32>
    %503 = arith.addf %415, %502 : vector<2x32xf32>
    %504 = vector.extract_strided_slice %3 {offsets = [0, 4], sizes = [2, 1], strides = [1, 1]} : vector<2x8xf32> to vector<2x1xf32>
    %cst_118 = arith.constant 5.000000e-01 : f32
    %505 = vector.broadcast %cst_118 : f32 to vector<2x1xf32>
    %506 = arith.cmpf ogt, %504, %505 : vector<2x1xf32>
    %507 = vector.extract_strided_slice %3 {offsets = [0, 3], sizes = [2, 1], strides = [1, 1]} : vector<2x8xf32> to vector<2x1xf32>
    %cst_119 = arith.constant 5.000000e-01 : f32
    %508 = vector.broadcast %cst_119 : f32 to vector<2x1xf32>
    %509 = arith.cmpf ogt, %507, %508 : vector<2x1xf32>
    %510 = vector.extract_strided_slice %139 {offsets = [0, 4, 0], sizes = [2, 1, 128], strides = [1, 1, 1]} : vector<2x8x128xf32> to vector<2x1x128xf32>
    %511 = vector.shape_cast %510 : vector<2x1x128xf32> to vector<2x128xf32>
    %512 = arith.truncf %484 : vector<2x32xf32> to vector<2x32xbf16>
    %cst_120 = arith.constant dense<0.000000e+00> : vector<2x128xf32>
    %513 = tpu.matmul %512, %149, %cst_120 {dimension_numbers = #tpu.dot_dimension_numbers<[1], [0], [0], [1], [0, 0, 1, 1], [], []>} : vector<2x32xbf16>, vector<32x128xbf16>, vector<2x128xf32> -> vector<2x128xf32>
    %514 = arith.addf %511, %513 : vector<2x128xf32>
    %515 = vector.extract_strided_slice %514 {offsets = [0, 0], sizes = [2, 32], strides = [1, 1]} : vector<2x128xf32> to vector<2x32xf32>
    %516 = arith.negf %515 : vector<2x32xf32>
    %517 = math.exp %516 : vector<2x32xf32>
    %cst_121 = arith.constant 1.000000e+00 : f32
    %518 = vector.broadcast %cst_121 : f32 to vector<2x32xf32>
    %519 = arith.addf %518, %517 : vector<2x32xf32>
    %520 = arith.divf %518, %519 : vector<2x32xf32>
    %521 = vector.extract_strided_slice %514 {offsets = [0, 32], sizes = [2, 32], strides = [1, 1]} : vector<2x128xf32> to vector<2x32xf32>
    %522 = arith.negf %521 : vector<2x32xf32>
    %523 = math.exp %522 : vector<2x32xf32>
    %cst_122 = arith.constant 1.000000e+00 : f32
    %524 = vector.broadcast %cst_122 : f32 to vector<2x32xf32>
    %525 = arith.addf %524, %523 : vector<2x32xf32>
    %526 = arith.divf %524, %525 : vector<2x32xf32>
    %527 = vector.extract_strided_slice %514 {offsets = [0, 64], sizes = [2, 32], strides = [1, 1]} : vector<2x128xf32> to vector<2x32xf32>
    %528 = math.tanh %527 : vector<2x32xf32>
    %529 = vector.extract_strided_slice %514 {offsets = [0, 96], sizes = [2, 32], strides = [1, 1]} : vector<2x128xf32> to vector<2x32xf32>
    %530 = arith.negf %529 : vector<2x32xf32>
    %531 = math.exp %530 : vector<2x32xf32>
    %cst_123 = arith.constant 1.000000e+00 : f32
    %532 = vector.broadcast %cst_123 : f32 to vector<2x32xf32>
    %533 = arith.addf %532, %531 : vector<2x32xf32>
    %534 = arith.divf %532, %533 : vector<2x32xf32>
    %535 = arith.mulf %526, %487 : vector<2x32xf32>
    %536 = arith.mulf %520, %528 : vector<2x32xf32>
    %537 = arith.addf %535, %536 : vector<2x32xf32>
    %538 = math.tanh %537 : vector<2x32xf32>
    %539 = arith.mulf %534, %538 : vector<2x32xf32>
    %540 = vector.extract_strided_slice %148 {offsets = [0, 3, 0], sizes = [2, 1, 128], strides = [1, 1, 1]} : vector<2x8x128xf32> to vector<2x1x128xf32>
    %541 = vector.shape_cast %540 : vector<2x1x128xf32> to vector<2x128xf32>
    %542 = arith.truncf %490 : vector<2x32xf32> to vector<2x32xbf16>
    %cst_124 = arith.constant dense<0.000000e+00> : vector<2x128xf32>
    %543 = tpu.matmul %542, %150, %cst_124 {dimension_numbers = #tpu.dot_dimension_numbers<[1], [0], [0], [1], [0, 0, 1, 1], [], []>} : vector<2x32xbf16>, vector<32x128xbf16>, vector<2x128xf32> -> vector<2x128xf32>
    %544 = arith.addf %541, %543 : vector<2x128xf32>
    %545 = vector.extract_strided_slice %544 {offsets = [0, 0], sizes = [2, 32], strides = [1, 1]} : vector<2x128xf32> to vector<2x32xf32>
    %546 = arith.negf %545 : vector<2x32xf32>
    %547 = math.exp %546 : vector<2x32xf32>
    %cst_125 = arith.constant 1.000000e+00 : f32
    %548 = vector.broadcast %cst_125 : f32 to vector<2x32xf32>
    %549 = arith.addf %548, %547 : vector<2x32xf32>
    %550 = arith.divf %548, %549 : vector<2x32xf32>
    %551 = vector.extract_strided_slice %544 {offsets = [0, 32], sizes = [2, 32], strides = [1, 1]} : vector<2x128xf32> to vector<2x32xf32>
    %552 = arith.negf %551 : vector<2x32xf32>
    %553 = math.exp %552 : vector<2x32xf32>
    %cst_126 = arith.constant 1.000000e+00 : f32
    %554 = vector.broadcast %cst_126 : f32 to vector<2x32xf32>
    %555 = arith.addf %554, %553 : vector<2x32xf32>
    %556 = arith.divf %554, %555 : vector<2x32xf32>
    %557 = vector.extract_strided_slice %544 {offsets = [0, 64], sizes = [2, 32], strides = [1, 1]} : vector<2x128xf32> to vector<2x32xf32>
    %558 = math.tanh %557 : vector<2x32xf32>
    %559 = vector.extract_strided_slice %544 {offsets = [0, 96], sizes = [2, 32], strides = [1, 1]} : vector<2x128xf32> to vector<2x32xf32>
    %560 = arith.negf %559 : vector<2x32xf32>
    %561 = math.exp %560 : vector<2x32xf32>
    %cst_127 = arith.constant 1.000000e+00 : f32
    %562 = vector.broadcast %cst_127 : f32 to vector<2x32xf32>
    %563 = arith.addf %562, %561 : vector<2x32xf32>
    %564 = arith.divf %562, %563 : vector<2x32xf32>
    %565 = arith.mulf %556, %493 : vector<2x32xf32>
    %566 = arith.mulf %550, %558 : vector<2x32xf32>
    %567 = arith.addf %565, %566 : vector<2x32xf32>
    %568 = math.tanh %567 : vector<2x32xf32>
    %569 = arith.mulf %564, %568 : vector<2x32xf32>
    %570 = vector.shape_cast %506 : vector<2x1xi1> to vector<2x1xi1>
    %571 = vector.broadcast %570 : vector<2x1xi1> to vector<2x32xi1>
    %572 = arith.select %571, %539, %484 : vector<2x32xi1>, vector<2x32xf32>
    %573 = vector.shape_cast %506 : vector<2x1xi1> to vector<2x1xi1>
    %574 = vector.broadcast %573 : vector<2x1xi1> to vector<2x32xi1>
    %575 = arith.select %574, %537, %487 : vector<2x32xi1>, vector<2x32xf32>
    %576 = vector.shape_cast %509 : vector<2x1xi1> to vector<2x1xi1>
    %577 = vector.broadcast %576 : vector<2x1xi1> to vector<2x32xi1>
    %578 = arith.select %577, %569, %490 : vector<2x32xi1>, vector<2x32xf32>
    %579 = vector.shape_cast %509 : vector<2x1xi1> to vector<2x1xi1>
    %580 = vector.broadcast %579 : vector<2x1xi1> to vector<2x32xi1>
    %581 = arith.select %580, %567, %493 : vector<2x32xi1>, vector<2x32xf32>
    %cst_128 = arith.constant 0.000000e+00 : f32
    %582 = vector.shape_cast %506 : vector<2x1xi1> to vector<2x1xi1>
    %583 = vector.broadcast %582 : vector<2x1xi1> to vector<2x32xi1>
    %584 = vector.broadcast %cst_128 : f32 to vector<2x32xf32>
    %585 = arith.select %583, %539, %584 : vector<2x32xi1>, vector<2x32xf32>
    %586 = arith.addf %498, %585 : vector<2x32xf32>
    %cst_129 = arith.constant 0.000000e+00 : f32
    %587 = vector.shape_cast %509 : vector<2x1xi1> to vector<2x1xi1>
    %588 = vector.broadcast %587 : vector<2x1xi1> to vector<2x32xi1>
    %589 = vector.broadcast %cst_129 : f32 to vector<2x32xf32>
    %590 = arith.select %588, %569, %589 : vector<2x32xi1>, vector<2x32xf32>
    %591 = arith.addf %503, %590 : vector<2x32xf32>
    %592 = vector.extract_strided_slice %3 {offsets = [0, 5], sizes = [2, 1], strides = [1, 1]} : vector<2x8xf32> to vector<2x1xf32>
    %cst_130 = arith.constant 5.000000e-01 : f32
    %593 = vector.broadcast %cst_130 : f32 to vector<2x1xf32>
    %594 = arith.cmpf ogt, %592, %593 : vector<2x1xf32>
    %595 = vector.extract_strided_slice %3 {offsets = [0, 2], sizes = [2, 1], strides = [1, 1]} : vector<2x8xf32> to vector<2x1xf32>
    %cst_131 = arith.constant 5.000000e-01 : f32
    %596 = vector.broadcast %cst_131 : f32 to vector<2x1xf32>
    %597 = arith.cmpf ogt, %595, %596 : vector<2x1xf32>
    %598 = vector.extract_strided_slice %139 {offsets = [0, 5, 0], sizes = [2, 1, 128], strides = [1, 1, 1]} : vector<2x8x128xf32> to vector<2x1x128xf32>
    %599 = vector.shape_cast %598 : vector<2x1x128xf32> to vector<2x128xf32>
    %600 = arith.truncf %572 : vector<2x32xf32> to vector<2x32xbf16>
    %cst_132 = arith.constant dense<0.000000e+00> : vector<2x128xf32>
    %601 = tpu.matmul %600, %149, %cst_132 {dimension_numbers = #tpu.dot_dimension_numbers<[1], [0], [0], [1], [0, 0, 1, 1], [], []>} : vector<2x32xbf16>, vector<32x128xbf16>, vector<2x128xf32> -> vector<2x128xf32>
    %602 = arith.addf %599, %601 : vector<2x128xf32>
    %603 = vector.extract_strided_slice %602 {offsets = [0, 0], sizes = [2, 32], strides = [1, 1]} : vector<2x128xf32> to vector<2x32xf32>
    %604 = arith.negf %603 : vector<2x32xf32>
    %605 = math.exp %604 : vector<2x32xf32>
    %cst_133 = arith.constant 1.000000e+00 : f32
    %606 = vector.broadcast %cst_133 : f32 to vector<2x32xf32>
    %607 = arith.addf %606, %605 : vector<2x32xf32>
    %608 = arith.divf %606, %607 : vector<2x32xf32>
    %609 = vector.extract_strided_slice %602 {offsets = [0, 32], sizes = [2, 32], strides = [1, 1]} : vector<2x128xf32> to vector<2x32xf32>
    %610 = arith.negf %609 : vector<2x32xf32>
    %611 = math.exp %610 : vector<2x32xf32>
    %cst_134 = arith.constant 1.000000e+00 : f32
    %612 = vector.broadcast %cst_134 : f32 to vector<2x32xf32>
    %613 = arith.addf %612, %611 : vector<2x32xf32>
    %614 = arith.divf %612, %613 : vector<2x32xf32>
    %615 = vector.extract_strided_slice %602 {offsets = [0, 64], sizes = [2, 32], strides = [1, 1]} : vector<2x128xf32> to vector<2x32xf32>
    %616 = math.tanh %615 : vector<2x32xf32>
    %617 = vector.extract_strided_slice %602 {offsets = [0, 96], sizes = [2, 32], strides = [1, 1]} : vector<2x128xf32> to vector<2x32xf32>
    %618 = arith.negf %617 : vector<2x32xf32>
    %619 = math.exp %618 : vector<2x32xf32>
    %cst_135 = arith.constant 1.000000e+00 : f32
    %620 = vector.broadcast %cst_135 : f32 to vector<2x32xf32>
    %621 = arith.addf %620, %619 : vector<2x32xf32>
    %622 = arith.divf %620, %621 : vector<2x32xf32>
    %623 = arith.mulf %614, %575 : vector<2x32xf32>
    %624 = arith.mulf %608, %616 : vector<2x32xf32>
    %625 = arith.addf %623, %624 : vector<2x32xf32>
    %626 = math.tanh %625 : vector<2x32xf32>
    %627 = arith.mulf %622, %626 : vector<2x32xf32>
    %628 = vector.extract_strided_slice %148 {offsets = [0, 2, 0], sizes = [2, 1, 128], strides = [1, 1, 1]} : vector<2x8x128xf32> to vector<2x1x128xf32>
    %629 = vector.shape_cast %628 : vector<2x1x128xf32> to vector<2x128xf32>
    %630 = arith.truncf %578 : vector<2x32xf32> to vector<2x32xbf16>
    %cst_136 = arith.constant dense<0.000000e+00> : vector<2x128xf32>
    %631 = tpu.matmul %630, %150, %cst_136 {dimension_numbers = #tpu.dot_dimension_numbers<[1], [0], [0], [1], [0, 0, 1, 1], [], []>} : vector<2x32xbf16>, vector<32x128xbf16>, vector<2x128xf32> -> vector<2x128xf32>
    %632 = arith.addf %629, %631 : vector<2x128xf32>
    %633 = vector.extract_strided_slice %632 {offsets = [0, 0], sizes = [2, 32], strides = [1, 1]} : vector<2x128xf32> to vector<2x32xf32>
    %634 = arith.negf %633 : vector<2x32xf32>
    %635 = math.exp %634 : vector<2x32xf32>
    %cst_137 = arith.constant 1.000000e+00 : f32
    %636 = vector.broadcast %cst_137 : f32 to vector<2x32xf32>
    %637 = arith.addf %636, %635 : vector<2x32xf32>
    %638 = arith.divf %636, %637 : vector<2x32xf32>
    %639 = vector.extract_strided_slice %632 {offsets = [0, 32], sizes = [2, 32], strides = [1, 1]} : vector<2x128xf32> to vector<2x32xf32>
    %640 = arith.negf %639 : vector<2x32xf32>
    %641 = math.exp %640 : vector<2x32xf32>
    %cst_138 = arith.constant 1.000000e+00 : f32
    %642 = vector.broadcast %cst_138 : f32 to vector<2x32xf32>
    %643 = arith.addf %642, %641 : vector<2x32xf32>
    %644 = arith.divf %642, %643 : vector<2x32xf32>
    %645 = vector.extract_strided_slice %632 {offsets = [0, 64], sizes = [2, 32], strides = [1, 1]} : vector<2x128xf32> to vector<2x32xf32>
    %646 = math.tanh %645 : vector<2x32xf32>
    %647 = vector.extract_strided_slice %632 {offsets = [0, 96], sizes = [2, 32], strides = [1, 1]} : vector<2x128xf32> to vector<2x32xf32>
    %648 = arith.negf %647 : vector<2x32xf32>
    %649 = math.exp %648 : vector<2x32xf32>
    %cst_139 = arith.constant 1.000000e+00 : f32
    %650 = vector.broadcast %cst_139 : f32 to vector<2x32xf32>
    %651 = arith.addf %650, %649 : vector<2x32xf32>
    %652 = arith.divf %650, %651 : vector<2x32xf32>
    %653 = arith.mulf %644, %581 : vector<2x32xf32>
    %654 = arith.mulf %638, %646 : vector<2x32xf32>
    %655 = arith.addf %653, %654 : vector<2x32xf32>
    %656 = math.tanh %655 : vector<2x32xf32>
    %657 = arith.mulf %652, %656 : vector<2x32xf32>
    %658 = vector.shape_cast %594 : vector<2x1xi1> to vector<2x1xi1>
    %659 = vector.broadcast %658 : vector<2x1xi1> to vector<2x32xi1>
    %660 = arith.select %659, %627, %572 : vector<2x32xi1>, vector<2x32xf32>
    %661 = vector.shape_cast %594 : vector<2x1xi1> to vector<2x1xi1>
    %662 = vector.broadcast %661 : vector<2x1xi1> to vector<2x32xi1>
    %663 = arith.select %662, %625, %575 : vector<2x32xi1>, vector<2x32xf32>
    %664 = vector.shape_cast %597 : vector<2x1xi1> to vector<2x1xi1>
    %665 = vector.broadcast %664 : vector<2x1xi1> to vector<2x32xi1>
    %666 = arith.select %665, %657, %578 : vector<2x32xi1>, vector<2x32xf32>
    %667 = vector.shape_cast %597 : vector<2x1xi1> to vector<2x1xi1>
    %668 = vector.broadcast %667 : vector<2x1xi1> to vector<2x32xi1>
    %669 = arith.select %668, %655, %581 : vector<2x32xi1>, vector<2x32xf32>
    %cst_140 = arith.constant 0.000000e+00 : f32
    %670 = vector.shape_cast %594 : vector<2x1xi1> to vector<2x1xi1>
    %671 = vector.broadcast %670 : vector<2x1xi1> to vector<2x32xi1>
    %672 = vector.broadcast %cst_140 : f32 to vector<2x32xf32>
    %673 = arith.select %671, %627, %672 : vector<2x32xi1>, vector<2x32xf32>
    %674 = arith.addf %586, %673 : vector<2x32xf32>
    %cst_141 = arith.constant 0.000000e+00 : f32
    %675 = vector.shape_cast %597 : vector<2x1xi1> to vector<2x1xi1>
    %676 = vector.broadcast %675 : vector<2x1xi1> to vector<2x32xi1>
    %677 = vector.broadcast %cst_141 : f32 to vector<2x32xf32>
    %678 = arith.select %676, %657, %677 : vector<2x32xi1>, vector<2x32xf32>
    %679 = arith.addf %591, %678 : vector<2x32xf32>
    %680 = vector.extract_strided_slice %3 {offsets = [0, 6], sizes = [2, 1], strides = [1, 1]} : vector<2x8xf32> to vector<2x1xf32>
    %cst_142 = arith.constant 5.000000e-01 : f32
    %681 = vector.broadcast %cst_142 : f32 to vector<2x1xf32>
    %682 = arith.cmpf ogt, %680, %681 : vector<2x1xf32>
    %683 = vector.extract_strided_slice %3 {offsets = [0, 1], sizes = [2, 1], strides = [1, 1]} : vector<2x8xf32> to vector<2x1xf32>
    %cst_143 = arith.constant 5.000000e-01 : f32
    %684 = vector.broadcast %cst_143 : f32 to vector<2x1xf32>
    %685 = arith.cmpf ogt, %683, %684 : vector<2x1xf32>
    %686 = vector.extract_strided_slice %139 {offsets = [0, 6, 0], sizes = [2, 1, 128], strides = [1, 1, 1]} : vector<2x8x128xf32> to vector<2x1x128xf32>
    %687 = vector.shape_cast %686 : vector<2x1x128xf32> to vector<2x128xf32>
    %688 = arith.truncf %660 : vector<2x32xf32> to vector<2x32xbf16>
    %cst_144 = arith.constant dense<0.000000e+00> : vector<2x128xf32>
    %689 = tpu.matmul %688, %149, %cst_144 {dimension_numbers = #tpu.dot_dimension_numbers<[1], [0], [0], [1], [0, 0, 1, 1], [], []>} : vector<2x32xbf16>, vector<32x128xbf16>, vector<2x128xf32> -> vector<2x128xf32>
    %690 = arith.addf %687, %689 : vector<2x128xf32>
    %691 = vector.extract_strided_slice %690 {offsets = [0, 0], sizes = [2, 32], strides = [1, 1]} : vector<2x128xf32> to vector<2x32xf32>
    %692 = arith.negf %691 : vector<2x32xf32>
    %693 = math.exp %692 : vector<2x32xf32>
    %cst_145 = arith.constant 1.000000e+00 : f32
    %694 = vector.broadcast %cst_145 : f32 to vector<2x32xf32>
    %695 = arith.addf %694, %693 : vector<2x32xf32>
    %696 = arith.divf %694, %695 : vector<2x32xf32>
    %697 = vector.extract_strided_slice %690 {offsets = [0, 32], sizes = [2, 32], strides = [1, 1]} : vector<2x128xf32> to vector<2x32xf32>
    %698 = arith.negf %697 : vector<2x32xf32>
    %699 = math.exp %698 : vector<2x32xf32>
    %cst_146 = arith.constant 1.000000e+00 : f32
    %700 = vector.broadcast %cst_146 : f32 to vector<2x32xf32>
    %701 = arith.addf %700, %699 : vector<2x32xf32>
    %702 = arith.divf %700, %701 : vector<2x32xf32>
    %703 = vector.extract_strided_slice %690 {offsets = [0, 64], sizes = [2, 32], strides = [1, 1]} : vector<2x128xf32> to vector<2x32xf32>
    %704 = math.tanh %703 : vector<2x32xf32>
    %705 = vector.extract_strided_slice %690 {offsets = [0, 96], sizes = [2, 32], strides = [1, 1]} : vector<2x128xf32> to vector<2x32xf32>
    %706 = arith.negf %705 : vector<2x32xf32>
    %707 = math.exp %706 : vector<2x32xf32>
    %cst_147 = arith.constant 1.000000e+00 : f32
    %708 = vector.broadcast %cst_147 : f32 to vector<2x32xf32>
    %709 = arith.addf %708, %707 : vector<2x32xf32>
    %710 = arith.divf %708, %709 : vector<2x32xf32>
    %711 = arith.mulf %702, %663 : vector<2x32xf32>
    %712 = arith.mulf %696, %704 : vector<2x32xf32>
    %713 = arith.addf %711, %712 : vector<2x32xf32>
    %714 = math.tanh %713 : vector<2x32xf32>
    %715 = arith.mulf %710, %714 : vector<2x32xf32>
    %716 = vector.extract_strided_slice %148 {offsets = [0, 1, 0], sizes = [2, 1, 128], strides = [1, 1, 1]} : vector<2x8x128xf32> to vector<2x1x128xf32>
    %717 = vector.shape_cast %716 : vector<2x1x128xf32> to vector<2x128xf32>
    %718 = arith.truncf %666 : vector<2x32xf32> to vector<2x32xbf16>
    %cst_148 = arith.constant dense<0.000000e+00> : vector<2x128xf32>
    %719 = tpu.matmul %718, %150, %cst_148 {dimension_numbers = #tpu.dot_dimension_numbers<[1], [0], [0], [1], [0, 0, 1, 1], [], []>} : vector<2x32xbf16>, vector<32x128xbf16>, vector<2x128xf32> -> vector<2x128xf32>
    %720 = arith.addf %717, %719 : vector<2x128xf32>
    %721 = vector.extract_strided_slice %720 {offsets = [0, 0], sizes = [2, 32], strides = [1, 1]} : vector<2x128xf32> to vector<2x32xf32>
    %722 = arith.negf %721 : vector<2x32xf32>
    %723 = math.exp %722 : vector<2x32xf32>
    %cst_149 = arith.constant 1.000000e+00 : f32
    %724 = vector.broadcast %cst_149 : f32 to vector<2x32xf32>
    %725 = arith.addf %724, %723 : vector<2x32xf32>
    %726 = arith.divf %724, %725 : vector<2x32xf32>
    %727 = vector.extract_strided_slice %720 {offsets = [0, 32], sizes = [2, 32], strides = [1, 1]} : vector<2x128xf32> to vector<2x32xf32>
    %728 = arith.negf %727 : vector<2x32xf32>
    %729 = math.exp %728 : vector<2x32xf32>
    %cst_150 = arith.constant 1.000000e+00 : f32
    %730 = vector.broadcast %cst_150 : f32 to vector<2x32xf32>
    %731 = arith.addf %730, %729 : vector<2x32xf32>
    %732 = arith.divf %730, %731 : vector<2x32xf32>
    %733 = vector.extract_strided_slice %720 {offsets = [0, 64], sizes = [2, 32], strides = [1, 1]} : vector<2x128xf32> to vector<2x32xf32>
    %734 = math.tanh %733 : vector<2x32xf32>
    %735 = vector.extract_strided_slice %720 {offsets = [0, 96], sizes = [2, 32], strides = [1, 1]} : vector<2x128xf32> to vector<2x32xf32>
    %736 = arith.negf %735 : vector<2x32xf32>
    %737 = math.exp %736 : vector<2x32xf32>
    %cst_151 = arith.constant 1.000000e+00 : f32
    %738 = vector.broadcast %cst_151 : f32 to vector<2x32xf32>
    %739 = arith.addf %738, %737 : vector<2x32xf32>
    %740 = arith.divf %738, %739 : vector<2x32xf32>
    %741 = arith.mulf %732, %669 : vector<2x32xf32>
    %742 = arith.mulf %726, %734 : vector<2x32xf32>
    %743 = arith.addf %741, %742 : vector<2x32xf32>
    %744 = math.tanh %743 : vector<2x32xf32>
    %745 = arith.mulf %740, %744 : vector<2x32xf32>
    %746 = vector.shape_cast %682 : vector<2x1xi1> to vector<2x1xi1>
    %747 = vector.broadcast %746 : vector<2x1xi1> to vector<2x32xi1>
    %748 = arith.select %747, %715, %660 : vector<2x32xi1>, vector<2x32xf32>
    %749 = vector.shape_cast %682 : vector<2x1xi1> to vector<2x1xi1>
    %750 = vector.broadcast %749 : vector<2x1xi1> to vector<2x32xi1>
    %751 = arith.select %750, %713, %663 : vector<2x32xi1>, vector<2x32xf32>
    %752 = vector.shape_cast %685 : vector<2x1xi1> to vector<2x1xi1>
    %753 = vector.broadcast %752 : vector<2x1xi1> to vector<2x32xi1>
    %754 = arith.select %753, %745, %666 : vector<2x32xi1>, vector<2x32xf32>
    %755 = vector.shape_cast %685 : vector<2x1xi1> to vector<2x1xi1>
    %756 = vector.broadcast %755 : vector<2x1xi1> to vector<2x32xi1>
    %757 = arith.select %756, %743, %669 : vector<2x32xi1>, vector<2x32xf32>
    %cst_152 = arith.constant 0.000000e+00 : f32
    %758 = vector.shape_cast %682 : vector<2x1xi1> to vector<2x1xi1>
    %759 = vector.broadcast %758 : vector<2x1xi1> to vector<2x32xi1>
    %760 = vector.broadcast %cst_152 : f32 to vector<2x32xf32>
    %761 = arith.select %759, %715, %760 : vector<2x32xi1>, vector<2x32xf32>
    %762 = arith.addf %674, %761 : vector<2x32xf32>
    %cst_153 = arith.constant 0.000000e+00 : f32
    %763 = vector.shape_cast %685 : vector<2x1xi1> to vector<2x1xi1>
    %764 = vector.broadcast %763 : vector<2x1xi1> to vector<2x32xi1>
    %765 = vector.broadcast %cst_153 : f32 to vector<2x32xf32>
    %766 = arith.select %764, %745, %765 : vector<2x32xi1>, vector<2x32xf32>
    %767 = arith.addf %679, %766 : vector<2x32xf32>
    %768 = vector.extract_strided_slice %3 {offsets = [0, 7], sizes = [2, 1], strides = [1, 1]} : vector<2x8xf32> to vector<2x1xf32>
    %cst_154 = arith.constant 5.000000e-01 : f32
    %769 = vector.broadcast %cst_154 : f32 to vector<2x1xf32>
    %770 = arith.cmpf ogt, %768, %769 : vector<2x1xf32>
    %771 = vector.extract_strided_slice %3 {offsets = [0, 0], sizes = [2, 1], strides = [1, 1]} : vector<2x8xf32> to vector<2x1xf32>
    %cst_155 = arith.constant 5.000000e-01 : f32
    %772 = vector.broadcast %cst_155 : f32 to vector<2x1xf32>
    %773 = arith.cmpf ogt, %771, %772 : vector<2x1xf32>
    %774 = vector.extract_strided_slice %139 {offsets = [0, 7, 0], sizes = [2, 1, 128], strides = [1, 1, 1]} : vector<2x8x128xf32> to vector<2x1x128xf32>
    %775 = vector.shape_cast %774 : vector<2x1x128xf32> to vector<2x128xf32>
    %776 = arith.truncf %748 : vector<2x32xf32> to vector<2x32xbf16>
    %cst_156 = arith.constant dense<0.000000e+00> : vector<2x128xf32>
    %777 = tpu.matmul %776, %149, %cst_156 {dimension_numbers = #tpu.dot_dimension_numbers<[1], [0], [0], [1], [0, 0, 1, 1], [], []>} : vector<2x32xbf16>, vector<32x128xbf16>, vector<2x128xf32> -> vector<2x128xf32>
    %778 = arith.addf %775, %777 : vector<2x128xf32>
    %779 = vector.extract_strided_slice %778 {offsets = [0, 0], sizes = [2, 32], strides = [1, 1]} : vector<2x128xf32> to vector<2x32xf32>
    %780 = arith.negf %779 : vector<2x32xf32>
    %781 = math.exp %780 : vector<2x32xf32>
    %cst_157 = arith.constant 1.000000e+00 : f32
    %782 = vector.broadcast %cst_157 : f32 to vector<2x32xf32>
    %783 = arith.addf %782, %781 : vector<2x32xf32>
    %784 = arith.divf %782, %783 : vector<2x32xf32>
    %785 = vector.extract_strided_slice %778 {offsets = [0, 32], sizes = [2, 32], strides = [1, 1]} : vector<2x128xf32> to vector<2x32xf32>
    %786 = arith.negf %785 : vector<2x32xf32>
    %787 = math.exp %786 : vector<2x32xf32>
    %cst_158 = arith.constant 1.000000e+00 : f32
    %788 = vector.broadcast %cst_158 : f32 to vector<2x32xf32>
    %789 = arith.addf %788, %787 : vector<2x32xf32>
    %790 = arith.divf %788, %789 : vector<2x32xf32>
    %791 = vector.extract_strided_slice %778 {offsets = [0, 64], sizes = [2, 32], strides = [1, 1]} : vector<2x128xf32> to vector<2x32xf32>
    %792 = math.tanh %791 : vector<2x32xf32>
    %793 = vector.extract_strided_slice %778 {offsets = [0, 96], sizes = [2, 32], strides = [1, 1]} : vector<2x128xf32> to vector<2x32xf32>
    %794 = arith.negf %793 : vector<2x32xf32>
    %795 = math.exp %794 : vector<2x32xf32>
    %cst_159 = arith.constant 1.000000e+00 : f32
    %796 = vector.broadcast %cst_159 : f32 to vector<2x32xf32>
    %797 = arith.addf %796, %795 : vector<2x32xf32>
    %798 = arith.divf %796, %797 : vector<2x32xf32>
    %799 = arith.mulf %790, %751 : vector<2x32xf32>
    %800 = arith.mulf %784, %792 : vector<2x32xf32>
    %801 = arith.addf %799, %800 : vector<2x32xf32>
    %802 = math.tanh %801 : vector<2x32xf32>
    %803 = arith.mulf %798, %802 : vector<2x32xf32>
    %804 = vector.extract_strided_slice %148 {offsets = [0, 0, 0], sizes = [2, 1, 128], strides = [1, 1, 1]} : vector<2x8x128xf32> to vector<2x1x128xf32>
    %805 = vector.shape_cast %804 : vector<2x1x128xf32> to vector<2x128xf32>
    %806 = arith.truncf %754 : vector<2x32xf32> to vector<2x32xbf16>
    %cst_160 = arith.constant dense<0.000000e+00> : vector<2x128xf32>
    %807 = tpu.matmul %806, %150, %cst_160 {dimension_numbers = #tpu.dot_dimension_numbers<[1], [0], [0], [1], [0, 0, 1, 1], [], []>} : vector<2x32xbf16>, vector<32x128xbf16>, vector<2x128xf32> -> vector<2x128xf32>
    %808 = arith.addf %805, %807 : vector<2x128xf32>
    %809 = vector.extract_strided_slice %808 {offsets = [0, 0], sizes = [2, 32], strides = [1, 1]} : vector<2x128xf32> to vector<2x32xf32>
    %810 = arith.negf %809 : vector<2x32xf32>
    %811 = math.exp %810 : vector<2x32xf32>
    %cst_161 = arith.constant 1.000000e+00 : f32
    %812 = vector.broadcast %cst_161 : f32 to vector<2x32xf32>
    %813 = arith.addf %812, %811 : vector<2x32xf32>
    %814 = arith.divf %812, %813 : vector<2x32xf32>
    %815 = vector.extract_strided_slice %808 {offsets = [0, 32], sizes = [2, 32], strides = [1, 1]} : vector<2x128xf32> to vector<2x32xf32>
    %816 = arith.negf %815 : vector<2x32xf32>
    %817 = math.exp %816 : vector<2x32xf32>
    %cst_162 = arith.constant 1.000000e+00 : f32
    %818 = vector.broadcast %cst_162 : f32 to vector<2x32xf32>
    %819 = arith.addf %818, %817 : vector<2x32xf32>
    %820 = arith.divf %818, %819 : vector<2x32xf32>
    %821 = vector.extract_strided_slice %808 {offsets = [0, 64], sizes = [2, 32], strides = [1, 1]} : vector<2x128xf32> to vector<2x32xf32>
    %822 = math.tanh %821 : vector<2x32xf32>
    %823 = vector.extract_strided_slice %808 {offsets = [0, 96], sizes = [2, 32], strides = [1, 1]} : vector<2x128xf32> to vector<2x32xf32>
    %824 = arith.negf %823 : vector<2x32xf32>
    %825 = math.exp %824 : vector<2x32xf32>
    %cst_163 = arith.constant 1.000000e+00 : f32
    %826 = vector.broadcast %cst_163 : f32 to vector<2x32xf32>
    %827 = arith.addf %826, %825 : vector<2x32xf32>
    %828 = arith.divf %826, %827 : vector<2x32xf32>
    %829 = arith.mulf %820, %757 : vector<2x32xf32>
    %830 = arith.mulf %814, %822 : vector<2x32xf32>
    %831 = arith.addf %829, %830 : vector<2x32xf32>
    %832 = math.tanh %831 : vector<2x32xf32>
    %833 = arith.mulf %828, %832 : vector<2x32xf32>
    %cst_164 = arith.constant 0.000000e+00 : f32
    %834 = vector.shape_cast %770 : vector<2x1xi1> to vector<2x1xi1>
    %835 = vector.broadcast %834 : vector<2x1xi1> to vector<2x32xi1>
    %836 = vector.broadcast %cst_164 : f32 to vector<2x32xf32>
    %837 = arith.select %835, %803, %836 : vector<2x32xi1>, vector<2x32xf32>
    %838 = arith.addf %762, %837 : vector<2x32xf32>
    %cst_165 = arith.constant 0.000000e+00 : f32
    %839 = vector.shape_cast %773 : vector<2x1xi1> to vector<2x1xi1>
    %840 = vector.broadcast %839 : vector<2x1xi1> to vector<2x32xi1>
    %841 = vector.broadcast %cst_165 : f32 to vector<2x32xf32>
    %842 = arith.select %840, %833, %841 : vector<2x32xi1>, vector<2x32xf32>
    %843 = arith.addf %767, %842 : vector<2x32xf32>
    %cst_166 = arith.constant dense<0.000000e+00> : vector<2xf32>
    %844 = vector.multi_reduction <add>, %3, %cst_166 [1] : vector<2x8xf32> to vector<2xf32>
    %845 = vector.shape_cast %844 : vector<2xf32> to vector<2x1xf32>
    %cst_167 = arith.constant 1.000000e+00 : f32
    %846 = vector.broadcast %cst_167 : f32 to vector<2x1xf32>
    %847 = arith.maximumf %845, %846 : vector<2x1xf32>
    %848 = tpu.reciprocal %847 {approx = true} : vector<2x1xf32> -> vector<2x1xf32>
    %849 = vector.broadcast %848 : vector<2x1xf32> to vector<2x32xf32>
    %850 = arith.mulf %838, %849 : vector<2x32xf32>
    %851 = vector.broadcast %848 : vector<2x1xf32> to vector<2x32xf32>
    %852 = arith.mulf %843, %851 : vector<2x32xf32>
    %c0_168 = arith.constant 0 : index
    %c0_169 = arith.constant 0 : index
    %853 = vector.load %arg19[%c0_168, %c0_169] : memref<1x64xf32, #tpu.memory_space<vmem>>, vector<1x64xf32>
    %854 = vector.extract_strided_slice %853 {offsets = [0, 0], sizes = [1, 32], strides = [1, 1]} : vector<1x64xf32> to vector<1x32xf32>
    %855 = vector.broadcast %854 : vector<1x32xf32> to vector<2x32xf32>
    %856 = arith.mulf %850, %855 : vector<2x32xf32>
    %cst_170 = arith.constant dense<0.000000e+00> : vector<2xf32>
    %857 = vector.multi_reduction <add>, %856, %cst_170 [1] : vector<2x32xf32> to vector<2xf32>
    %858 = vector.shape_cast %857 : vector<2xf32> to vector<2x1xf32>
    %859 = vector.extract_strided_slice %853 {offsets = [0, 32], sizes = [1, 32], strides = [1, 1]} : vector<1x64xf32> to vector<1x32xf32>
    %860 = vector.broadcast %859 : vector<1x32xf32> to vector<2x32xf32>
    %861 = arith.mulf %852, %860 : vector<2x32xf32>
    %cst_171 = arith.constant dense<0.000000e+00> : vector<2xf32>
    %862 = vector.multi_reduction <add>, %861, %cst_171 [1] : vector<2x32xf32> to vector<2xf32>
    %863 = vector.shape_cast %862 : vector<2xf32> to vector<2x1xf32>
    %864 = arith.addf %858, %863 : vector<2x1xf32>
    %c0_172 = arith.constant 0 : index
    %c0_173 = arith.constant 0 : index
    %865 = vector.load %arg20[%c0_172, %c0_173] : memref<1x1xf32, #tpu.memory_space<vmem>>, vector<1x1xf32>
    %866 = vector.broadcast %865 : vector<1x1xf32> to vector<2x1xf32>
    %867 = arith.addf %864, %866 : vector<2x1xf32>
    %868 = arith.negf %867 : vector<2x1xf32>
    %869 = math.exp %868 : vector<2x1xf32>
    %cst_174 = arith.constant 1.000000e+00 : f32
    %870 = vector.broadcast %cst_174 : f32 to vector<2x1xf32>
    %871 = arith.addf %870, %869 : vector<2x1xf32>
    %872 = arith.divf %870, %871 : vector<2x1xf32>
    %c0_175 = arith.constant 0 : index
    %c0_176 = arith.constant 0 : index
    %873 = vector.load %arg21[%c0_175, %c0_176] : memref<2x1xf32, #tpu.memory_space<vmem>>, vector<2x1xf32>
    tpu.vector_store %arg21[%c0_175, %c0_176], %872 {strides = array<i32>} : memref<2x1xf32, #tpu.memory_space<vmem>>, vector<2x1xf32>,
    return
  }
  func.func @transform_0(%arg0: i32) -> (i32, i32) {
    %c0_i32 = arith.constant 0 : i32
    %c0_i32_0 = arith.constant 0 : i32
    return %arg0, %c0_i32 : i32, i32
  }
  func.func @transform_1(%arg0: i32) -> (i32, i32) {
    %c0_i32 = arith.constant 0 : i32
    %c0_i32_0 = arith.constant 0 : i32
    return %arg0, %c0_i32 : i32, i32
  }
  func.func @transform_2(%arg0: i32) -> (i32, i32, i32) {
    %c0_i32 = arith.constant 0 : i32
    %c0_i32_0 = arith.constant 0 : i32
    %c0_i32_1 = arith.constant 0 : i32
    return %arg0, %c0_i32, %c0_i32_0 : i32, i32, i32
  }
  func.func @transform_3(%arg0: i32) -> (i32, i32, i32) {
    %c0_i32 = arith.constant 0 : i32
    %c0_i32_0 = arith.constant 0 : i32
    %c0_i32_1 = arith.constant 0 : i32
    return %arg0, %c0_i32, %c0_i32_0 : i32, i32, i32
  }
  func.func @transform_4(%arg0: i32) -> (i32, i32) {
    %c0_i32 = arith.constant 0 : i32
    %c0_i32_0 = arith.constant 0 : i32
    %c0_i32_1 = arith.constant 0 : i32
    return %c0_i32, %c0_i32_0 : i32, i32
  }
  func.func @transform_5(%arg0: i32) -> (i32, i32) {
    %c0_i32 = arith.constant 0 : i32
    %c0_i32_0 = arith.constant 0 : i32
    %c0_i32_1 = arith.constant 0 : i32
    return %c0_i32, %c0_i32_0 : i32, i32
  }
  func.func @transform_6(%arg0: i32) -> (i32, i32) {
    %c0_i32 = arith.constant 0 : i32
    %c0_i32_0 = arith.constant 0 : i32
    %c0_i32_1 = arith.constant 0 : i32
    return %c0_i32, %c0_i32_0 : i32, i32
  }
  func.func @transform_7(%arg0: i32) -> (i32, i32) {
    %c0_i32 = arith.constant 0 : i32
    %c0_i32_0 = arith.constant 0 : i32
    %c0_i32_1 = arith.constant 0 : i32
    return %c0_i32, %c0_i32_0 : i32, i32
  }
  func.func @transform_8(%arg0: i32) -> (i32, i32) {
    %c0_i32 = arith.constant 0 : i32
    %c0_i32_0 = arith.constant 0 : i32
    %c0_i32_1 = arith.constant 0 : i32
    return %c0_i32, %c0_i32_0 : i32, i32
  }
  func.func @transform_9(%arg0: i32) -> (i32, i32) {
    %c0_i32 = arith.constant 0 : i32
    %c0_i32_0 = arith.constant 0 : i32
    %c0_i32_1 = arith.constant 0 : i32
    return %c0_i32, %c0_i32_0 : i32, i32
  }
  func.func @transform_10(%arg0: i32) -> (i32, i32) {
    %c0_i32 = arith.constant 0 : i32
    %c0_i32_0 = arith.constant 0 : i32
    %c0_i32_1 = arith.constant 0 : i32
    return %c0_i32, %c0_i32_0 : i32, i32
  }
  func.func @transform_11(%arg0: i32) -> (i32, i32) {
    %c0_i32 = arith.constant 0 : i32
    %c0_i32_0 = arith.constant 0 : i32
    %c0_i32_1 = arith.constant 0 : i32
    return %c0_i32, %c0_i32_0 : i32, i32
  }
  func.func @transform_12(%arg0: i32) -> (i32, i32) {
    %c0_i32 = arith.constant 0 : i32
    %c0_i32_0 = arith.constant 0 : i32
    %c0_i32_1 = arith.constant 0 : i32
    return %c0_i32, %c0_i32_0 : i32, i32
  }
  func.func @transform_13(%arg0: i32) -> (i32, i32) {
    %c0_i32 = arith.constant 0 : i32
    %c0_i32_0 = arith.constant 0 : i32
    %c0_i32_1 = arith.constant 0 : i32
    return %c0_i32, %c0_i32_0 : i32, i32
  }
  func.func @transform_14(%arg0: i32) -> (i32, i32) {
    %c0_i32 = arith.constant 0 : i32
    %c0_i32_0 = arith.constant 0 : i32
    %c0_i32_1 = arith.constant 0 : i32
    return %c0_i32, %c0_i32_0 : i32, i32
  }
  func.func @transform_15(%arg0: i32) -> (i32, i32) {
    %c0_i32 = arith.constant 0 : i32
    %c0_i32_0 = arith.constant 0 : i32
    %c0_i32_1 = arith.constant 0 : i32
    return %c0_i32, %c0_i32_0 : i32, i32
  }
  func.func @transform_16(%arg0: i32) -> (i32, i32) {
    %c0_i32 = arith.constant 0 : i32
    %c0_i32_0 = arith.constant 0 : i32
    %c0_i32_1 = arith.constant 0 : i32
    return %c0_i32, %c0_i32_0 : i32, i32
  }
  func.func @transform_17(%arg0: i32) -> (i32, i32) {
    %c0_i32 = arith.constant 0 : i32
    %c0_i32_0 = arith.constant 0 : i32
    %c0_i32_1 = arith.constant 0 : i32
    return %c0_i32, %c0_i32_0 : i32, i32
  }
  func.func @transform_18(%arg0: i32) -> (i32, i32) {
    %c0_i32 = arith.constant 0 : i32
    %c0_i32_0 = arith.constant 0 : i32
    %c0_i32_1 = arith.constant 0 : i32
    return %c0_i32, %c0_i32_0 : i32, i32
  }
  func.func @transform_19(%arg0: i32) -> (i32, i32) {
    %c0_i32 = arith.constant 0 : i32
    %c0_i32_0 = arith.constant 0 : i32
    %c0_i32_1 = arith.constant 0 : i32
    return %c0_i32, %c0_i32_0 : i32, i32
  }
  func.func @transform_20(%arg0: i32) -> (i32, i32) {
    %c0_i32 = arith.constant 0 : i32
    %c0_i32_0 = arith.constant 0 : i32
    return %arg0, %c0_i32 : i32, i32
  }
}

</mosaic_0001>

<bundles_post_ra>
// kernel: tpu_custom_call.1
= control target key start
LH: loop header
LB: loop body
LE: loop exit
PB: predicated region body
PF: predicated region fallthrough
CT: control target
= control target key end

     0   :  { %s6308_s0 = inlined_call_operand.hbm [shape: f32[2,8], index: 0, kind: input, shape index: {}]   ;;  %s6309_s1 = inlined_call_operand.hbm [shape: f32[2,8], index: 1, kind: input, shape index: {}]   ;;  %s6310_s2 = inlined_call_operand.hbm [shape: f32[2,8,32], index: 2, kind: input, shape index: {}]   ;;  %s6311_s3 = inlined_call_operand.hbm [shape: f32[2,8,32], index: 3, kind: input, shape index: {}]   ;;  %s6312_s4 = inlined_call_operand.vmem [shape: bf16[32,32], index: 4, kind: input, shape index: {}]   ;;  %s6313_s5 = inlined_call_operand.hbm [shape: f32[1,32], index: 5, kind: input, shape index: {}]   ;;  %s6314_s6 = inlined_call_operand.hbm [shape: bf16[32,32], index: 6, kind: input, shape index: {}]   ;;  %s6315_s7 = inlined_call_operand.hbm [shape: f32[1,32], index: 7, kind: input, shape index: {}]   ;;  %s6316_s8 = inlined_call_operand.hbm [shape: bf16[32,32], index: 8, kind: input, shape index: {}]   ;;  %s6317_s9 = inlined_call_operand.hbm [shape: f32[1,32], index: 9, kind: input, shape index: {}]   ;;  %s6318_s10 = inlined_call_operand.hbm [shape: bf16[32,32], index: 10, kind: input, shape index: {}]   ;;  %s6319_s11 = inlined_call_operand.hbm [shape: f32[1,32], index: 11, kind: input, shape index: {}]   ;;  %s6320_s12 = inlined_call_operand.vmem [shape: bf16[64,128], index: 12, kind: input, shape index: {}]   ;;  %s6321_s13 = inlined_call_operand.hbm [shape: bf16[32,128], index: 13, kind: input, shape index: {}]   ;;  %s6322_s14 = inlined_call_operand.hbm [shape: f32[1,128], index: 14, kind: input, shape index: {}]   ;;  %s6323_s15 = inlined_call_operand.hbm [shape: bf16[64,128], index: 15, kind: input, shape index: {}]   ;;  %s6324_s16 = inlined_call_operand.vmem [shape: bf16[32,128], index: 16, kind: input, shape index: {}]   ;;  %s6325_s17 = inlined_call_operand.vmem [shape: f32[1,128], index: 17, kind: input, shape index: {}]   ;;  %s6326_s18 = inlined_call_operand.vmem [shape: f32[1,64], index: 18, kind: input, shape index: {}]   ;;  %s6327_s19 = inlined_call_operand.<no memory space> [shape: f32[1,1], index: 19, kind: input, shape index: {}]   ;;  %s6328_s20 = inlined_call_operand.vmem [shape: f32[2,1], index: 20, kind: output, shape index: {}]  }
   0x1   :  { %6337 = sst [smem:[#allocation33_spill]] %s6308_s0  ;;  %v25_v0 = vstv %s6327_s19 }
   0x2   :  { %6338 = sst [smem:[#allocation34_spill]] %s6309_s1  ;;  %26 = vst [vmem:[#allocation2] sm:$0x1] %v25_v0 }
   0x3   :  { %6339 = sst [smem:[#allocation35_spill]] %s6310_s2 }
   0x4   :  { %6340 = sst [smem:[#allocation36_spill]] %s6311_s3 }
   0x5   :  { %6341 = sst [smem:[#allocation37_spill]] %s6312_s4 }
   0x6   :  { %27 = vsyncpa [#allocation4], 0 }
   0x7   :  { %28 = vsyncpa [#allocation6], 0 }
   0x8   :  { %29 = vsyncpa [#allocation9], 0 }
   0x9   :  { %30 = vsyncpa [#allocation12], 0 }
   0xa   :  { %31 = vsyncpa [#allocation15], 0 }
   0xb   :  { %32 = vsyncpa [#allocation18], 0 }
   0xc   :  { %33 = vsyncpa [#allocation21], 0 }
   0xd   :  { %34 = vsyncpa [#allocation24], 0  ;;  %s5057_s23 = smov [#allocation5]   ;;  %s6342_s3 = sld [smem:[#allocation34_spill]] }
   0xe   :  { %s51_s24 = sshll.u32 %s5057_s23, 4  ;;  %s52_s24 = int_to_ptr.vmem [resolvable:$true] %s51_s24 }
  0x13   :  { %s4733_s26 = scalar_lea.hbm %s6342_s3, 32 }
  0x14   :  { %p4734_p0 = scmp.ne.s32.totalorder %s6342_s3, %s4733_s26  ;;  %p4737_p1 = scmp.lt.u32.totalorder %s4733_s26, %s6342_s3 }
  0x16   :  { %p4739_p2 = pnand %p4737_p1, %p4734_p0 }
  0x18   :  { %4742 = shalt.err (!%p4739_p2)
}
  0x19   :  { %s4743_s29 = scalar_lea.vmem %s52_s24, 32  ;;  %p4748_p4 = scmp.lt.s32.totalorder %s52_s24, %s52_s24 }
  0x1a   :  { %p4744_p3 = scmp.ne.s32.totalorder %s52_s24, %s4743_s29  ;;  %p4749_p5 = scmp.lt.s32.totalorder %s4743_s29, %s4743_s29 }
  0x1c   :  { %p4750_p6 = por %p4749_p5, %p4748_p4 }
  0x1e   :  { %p4751_p7 = pnand %p4750_p6, %p4744_p3 }
  0x20   :  { %4754 = shalt.err (!%p4751_p7)
}
  0x21   :  { %54 = dma.hbm_to_vmem [thread:$0]  %s6342_s3, 32, %s52_s24, [#allocation6]  }
  0x22   :  { %s5058_s21 = smov [#allocation8]   ;;  %s5059_s22 = smov [#allocation11]  }
  0x23   :  { %s72_s1 = sshll.u32 %s5058_s21, 4  ;;  %s96_s23 = sshll.u32 %s5059_s22, 4  ;;  %s73_s1 = int_to_ptr.vmem [resolvable:$true] %s72_s1  ;;  %s97_s23 = int_to_ptr.vmem [resolvable:$true] %s96_s23 }
  0x24   :  { %s6343_s26 = sld [smem:[#allocation36_spill]] }
  0x2a   :  { %s4755_s27 = scalar_lea.hbm %s6343_s26, 256 }
  0x2b   :  { %p4756_p8 = scmp.ne.s32.totalorder %s6343_s26, %s4755_s27  ;;  %p4759_p9 = scmp.lt.u32.totalorder %s4755_s27, %s6343_s26 }
  0x2d   :  { %p4761_p10 = pnand %p4759_p9, %p4756_p8 }
  0x2f   :  { %4764 = shalt.err (!%p4761_p10)
}
  0x30   :  { %s4765_s24 = scalar_lea.vmem %s73_s1, 256  ;;  %p4770_p12 = scmp.lt.s32.totalorder %s73_s1, %s73_s1 }
  0x31   :  { %p4766_p11 = scmp.ne.s32.totalorder %s73_s1, %s4765_s24  ;;  %p4771_p13 = scmp.lt.s32.totalorder %s4765_s24, %s4765_s24 }
  0x33   :  { %p4772_p0 = por %p4771_p13, %p4770_p12 }
  0x35   :  { %p4773_p1 = pnand %p4772_p0, %p4766_p11 }
  0x37   :  { %4776 = shalt.err (!%p4773_p1)
}
  0x38   :  { %s6334_s3 = smov 128   ;;  %s6335_s30 = smov 8  }
  0x39   :  { %78 = dma.hbm_to_vmem [thread:$0]  %s6343_s26, 256, %s73_s1, [#allocation9], %s6334_s3, %s6334_s3, %s6335_s30  }
  0x3a   :  { %s4777_s25 = scalar_lea.hbm %s6314_s6, 256 }
  0x3b   :  { %p4778_p2 = scmp.ne.s32.totalorder %s6314_s6, %s4777_s25  ;;  %p4781_p3 = scmp.lt.u32.totalorder %s4777_s25, %s6314_s6 }
  0x3d   :  { %p4783_p4 = pnand %p4781_p3, %p4778_p2 }
  0x3f   :  { %4786 = shalt.err (!%p4783_p4)
}
  0x40   :  { %s4787_s29 = scalar_lea.vmem %s97_s23, 256  ;;  %p4792_p6 = scmp.lt.s32.totalorder %s97_s23, %s97_s23 }
  0x41   :  { %p4788_p5 = scmp.ne.s32.totalorder %s97_s23, %s4787_s29  ;;  %p4793_p7 = scmp.lt.s32.totalorder %s4787_s29, %s4787_s29 }
  0x43   :  { %p4794_p8 = por %p4793_p7, %p4792_p6 }
  0x45   :  { %p4795_p9 = pnand %p4794_p8, %p4788_p5 }
  0x47   :  { %4798 = shalt.err (!%p4795_p9)
}
  0x48   :  { %s5062_s1 = smov 64   ;;  %s5063_s26 = smov 4  }
  0x49   :  { %102 = dma.hbm_to_vmem [thread:$0]  %s6314_s6, 256, %s97_s23, [#allocation12], %s5062_s1, %s5062_s1, %s5063_s26  }
  0x4a   :  { %s5064_s21 = smov [#allocation14]   ;;  %s5065_s2 = smov [#allocation17]  }
  0x4b   :  { %s118_s22 = sshll.u32 %s5064_s21, 4  ;;  %s140_s25 = sshll.u32 %s5065_s2, 4  ;;  %s119_s22 = int_to_ptr.vmem [resolvable:$true] %s118_s22  ;;  %s141_s25 = int_to_ptr.vmem [resolvable:$true] %s140_s25 }
  0x4c   :  { %s4799_s19 = scalar_lea.hbm %s6316_s8, 256 }
  0x4d   :  { %p4800_p10 = scmp.ne.s32.totalorder %s6316_s8, %s4799_s19  ;;  %p4803_p11 = scmp.lt.u32.totalorder %s4799_s19, %s6316_s8 }
  0x4f   :  { %p4805_p12 = pnand %p4803_p11, %p4800_p10 }
  0x51   :  { %4808 = shalt.err (!%p4805_p12)
}
  0x52   :  { %s4809_s6 = scalar_lea.vmem %s119_s22, 256  ;;  %p4814_p0 = scmp.lt.s32.totalorder %s119_s22, %s119_s22 }
  0x53   :  { %p4810_p13 = scmp.ne.s32.totalorder %s119_s22, %s4809_s6  ;;  %p4815_p1 = scmp.lt.s32.totalorder %s4809_s6, %s4809_s6 }
  0x55   :  { %p4816_p2 = por %p4815_p1, %p4814_p0 }
  0x57   :  { %p4817_p3 = pnand %p4816_p2, %p4810_p13 }
  0x59   :  { %4820 = shalt.err (!%p4817_p3)
}
  0x5a   :  { %124 = dma.hbm_to_vmem [thread:$0]  %s6316_s8, 256, %s119_s22, [#allocation15], %s5062_s1, %s5062_s1, %s5063_s26  }
  0x5b   :  { %s4821_s30 = scalar_lea.hbm %s6318_s10, 256 }
  0x5c   :  { %p4822_p4 = scmp.ne.s32.totalorder %s6318_s10, %s4821_s30  ;;  %p4825_p5 = scmp.lt.u32.totalorder %s4821_s30, %s6318_s10 }
  0x5e   :  { %p4827_p6 = pnand %p4825_p5, %p4822_p4 }
  0x60   :  { %4830 = shalt.err (!%p4827_p6)
}
  0x61   :  { %s4831_s19 = scalar_lea.vmem %s141_s25, 256  ;;  %p4836_p8 = scmp.lt.s32.totalorder %s141_s25, %s141_s25 }
  0x62   :  { %p4832_p7 = scmp.ne.s32.totalorder %s141_s25, %s4831_s19  ;;  %p4837_p9 = scmp.lt.s32.totalorder %s4831_s19, %s4831_s19 }
  0x64   :  { %p4838_p10 = por %p4837_p9, %p4836_p8 }
  0x66   :  { %p4839_p11 = pnand %p4838_p10, %p4832_p7 }
  0x68   :  { %4842 = shalt.err (!%p4839_p11)
}
  0x69   :  { %146 = dma.hbm_to_vmem [thread:$0]  %s6318_s10, 256, %s141_s25, [#allocation18], %s5062_s1, %s5062_s1, %s5063_s26  }
  0x6a   :  { %s5066_s4 = smov [#allocation20]   ;;  %s5067_s6 = smov [#allocation3]  }
  0x6b   :  { %s164_s29 = sshll.u32 %s5066_s4, 4  ;;  %s41_s23 = sshll.u32 %s5067_s6, 4  ;;  %s165_s29 = int_to_ptr.vmem [resolvable:$true] %s164_s29  ;;  %s42_s23 = int_to_ptr.vmem [resolvable:$true] %s41_s23 }
  0x6c   :  { %s4843_s3 = scalar_lea.hbm %s6321_s13, 256 }
  0x6d   :  { %p4844_p12 = scmp.ne.s32.totalorder %s6321_s13, %s4843_s3  ;;  %p4847_p13 = scmp.lt.u32.totalorder %s4843_s3, %s6321_s13 }
  0x6f   :  { %p4849_p0 = pnand %p4847_p13, %p4844_p12 }
  0x71   :  { %4852 = shalt.err (!%p4849_p0)
}
  0x72   :  { %s4853_s10 = scalar_lea.vmem %s165_s29, 256  ;;  %p4858_p2 = scmp.lt.s32.totalorder %s165_s29, %s165_s29 }
  0x73   :  { %p4854_p1 = scmp.ne.s32.totalorder %s165_s29, %s4853_s10  ;;  %p4859_p3 = scmp.lt.s32.totalorder %s4853_s10, %s4853_s10 }
  0x75   :  { %p4860_p4 = por %p4859_p3, %p4858_p2 }
  0x77   :  { %p4861_p5 = pnand %p4860_p4, %p4854_p1 }
  0x79   :  { %4864 = shalt.err (!%p4861_p5)
}
  0x7a   :  { %170 = dma.hbm_to_vmem [thread:$0]  %s6321_s13, 256, %s165_s29, [#allocation21], %s5062_s1, %s5062_s1, %s5063_s26  }
  0x7b   :  { %s6344_s22 = sld [smem:[#allocation33_spill]] }
  0x81   :  { %s4865_s4 = scalar_lea.hbm %s6344_s22, 32 }
  0x82   :  { %p4866_p6 = scmp.ne.s32.totalorder %s6344_s22, %s4865_s4  ;;  %p4869_p7 = scmp.lt.u32.totalorder %s4865_s4, %s6344_s22 }
  0x84   :  { %p4871_p8 = pnand %p4869_p7, %p4866_p6 }
  0x86   :  { %4874 = shalt.err (!%p4871_p8)
}
  0x87   :  { %s4875_s30 = scalar_lea.vmem %s42_s23, 32  ;;  %p4880_p10 = scmp.lt.s32.totalorder %s42_s23, %s42_s23 }
  0x88   :  { %p4876_p9 = scmp.ne.s32.totalorder %s42_s23, %s4875_s30  ;;  %p4881_p11 = scmp.lt.s32.totalorder %s4875_s30, %s4875_s30 }
  0x8a   :  { %p4882_p12 = por %p4881_p11, %p4880_p10 }
  0x8c   :  { %p4883_p13 = pnand %p4882_p12, %p4876_p9 }
  0x8e   :  { %4886 = shalt.err (!%p4883_p13)
}
  0x8f   :  { %44 = dma.hbm_to_vmem [thread:$0]  %s6344_s22, 32, %s42_s23, [#allocation4]  }
  0x90   :  { %s5068_s21 = smov [#allocation7]   ;;  %s5069_s27 = smov [#allocation10]  }
  0x91   :  { %s60_s2 = sshll.u32 %s5068_s21, 4  ;;  %s87_s10 = sshll.u32 %s5069_s27, 4  ;;  %s61_s2 = int_to_ptr.vmem [resolvable:$true] %s60_s2  ;;  %s88_s10 = int_to_ptr.vmem [resolvable:$true] %s87_s10 }
  0x92   :  { %s6345_s19 = sld [smem:[#allocation35_spill]] }
  0x98   :  { %s4887_s8 = scalar_lea.hbm %s6345_s19, 256 }
  0x99   :  { %p4888_p0 = scmp.ne.s32.totalorder %s6345_s19, %s4887_s8  ;;  %p4891_p1 = scmp.lt.u32.totalorder %s4887_s8, %s6345_s19 }
  0x9b   :  { %p4893_p2 = pnand %p4891_p1, %p4888_p0 }
  0x9d   :  { %4896 = shalt.err (!%p4893_p2)
}
  0x9e   :  { %s4897_s23 = scalar_lea.vmem %s61_s2, 256  ;;  %p4902_p4 = scmp.lt.s32.totalorder %s61_s2, %s61_s2 }
  0x9f   :  { %p4898_p3 = scmp.ne.s32.totalorder %s61_s2, %s4897_s23  ;;  %p4903_p5 = scmp.lt.s32.totalorder %s4897_s23, %s4897_s23 }
  0xa1   :  { %p4904_p6 = por %p4903_p5, %p4902_p4 }
  0xa3   :  { %p4905_p7 = pnand %p4904_p6, %p4898_p3 }
  0xa5   :  { %4908 = shalt.err (!%p4905_p7)
}
  0xa6   :  { %s6346_s22 = smov 8   ;;  %s6347_s3 = smov 128  }
  0xa7   :  { %66 = dma.hbm_to_vmem [thread:$0]  %s6345_s19, 256, %s61_s2, [#allocation6], %s6347_s3, %s6347_s3, %s6346_s22  }
  0xa8   :  { %s4909_s27 = scalar_lea.hbm %s6313_s5, 16 }
  0xa9   :  { %p4910_p8 = scmp.ne.s32.totalorder %s6313_s5, %s4909_s27  ;;  %p4913_p9 = scmp.lt.u32.totalorder %s4909_s27, %s6313_s5 }
  0xab   :  { %p4915_p10 = pnand %p4913_p9, %p4910_p8 }
  0xad   :  { %4918 = shalt.err (!%p4915_p10)
}
  0xae   :  { %s4919_s6 = scalar_lea.vmem %s88_s10, 16  ;;  %s4923_s24 = scalar_lea.vmem %s88_s10, 32 }
  0xaf   :  { %p4920_p11 = scmp.ne.s32.totalorder %s88_s10, %s4919_s6  ;;  %p4924_p12 = scmp.lt.s32.totalorder %s88_s10, %s88_s10 }
  0xb0   :  { %p4925_p13 = scmp.lt.s32.totalorder %s4923_s24, %s4919_s6 }
  0xb2   :  { %p4926_p0 = por %p4925_p13, %p4924_p12 }
  0xb4   :  { %p4927_p1 = pnand %p4926_p0, %p4920_p11 }
  0xb6   :  { %4930 = shalt.err (!%p4927_p1)
}
  0xb7   :  { %90 = dma.hbm_to_vmem [thread:$0]  %s6313_s5, 16, %s88_s10, [#allocation9]  }
  0xb8   :  { %s5070_s0 = smov [#allocation13]   ;;  %s5071_s3 = smov [#allocation16]  }
  0xb9   :  { %s109_s23 = sshll.u32 %s5070_s0, 4  ;;  %s131_s30 = sshll.u32 %s5071_s3, 4  ;;  %s110_s23 = int_to_ptr.vmem [resolvable:$true] %s109_s23  ;;  %s132_s30 = int_to_ptr.vmem [resolvable:$true] %s131_s30 }
  0xba   :  { %s4931_s21 = scalar_lea.hbm %s6315_s7, 16 }
  0xbb   :  { %p4932_p2 = scmp.ne.s32.totalorder %s6315_s7, %s4931_s21  ;;  %p4935_p3 = scmp.lt.u32.totalorder %s4931_s21, %s6315_s7 }
  0xbd   :  { %p4937_p4 = pnand %p4935_p3, %p4932_p2 }
  0xbf   :  { %4940 = shalt.err (!%p4937_p4)
}
  0xc0   :  { %s4941_s5 = scalar_lea.vmem %s110_s23, 16  ;;  %s4945_s10 = scalar_lea.vmem %s110_s23, 32 }
  0xc1   :  { %p4942_p5 = scmp.ne.s32.totalorder %s110_s23, %s4941_s5  ;;  %p4946_p6 = scmp.lt.s32.totalorder %s110_s23, %s110_s23 }
  0xc2   :  { %p4947_p7 = scmp.lt.s32.totalorder %s4945_s10, %s4941_s5 }
  0xc4   :  { %p4948_p8 = por %p4947_p7, %p4946_p6 }
  0xc6   :  { %p4949_p9 = pnand %p4948_p8, %p4942_p5 }
  0xc8   :  { %4952 = shalt.err (!%p4949_p9)
}
  0xc9   :  { %112 = dma.hbm_to_vmem [thread:$0]  %s6315_s7, 16, %s110_s23, [#allocation12]  }
  0xca   :  { %s4953_s19 = scalar_lea.hbm %s6317_s9, 16 }
  0xcb   :  { %p4954_p10 = scmp.ne.s32.totalorder %s6317_s9, %s4953_s19  ;;  %p4957_p11 = scmp.lt.u32.totalorder %s4953_s19, %s6317_s9 }
  0xcd   :  { %p4959_p12 = pnand %p4957_p11, %p4954_p10 }
  0xcf   :  { %4962 = shalt.err (!%p4959_p12)
}
  0xd0   :  { %s4963_s21 = scalar_lea.vmem %s132_s30, 16  ;;  %s4967_s27 = scalar_lea.vmem %s132_s30, 32 }
  0xd1   :  { %p4964_p13 = scmp.ne.s32.totalorder %s132_s30, %s4963_s21  ;;  %p4968_p0 = scmp.lt.s32.totalorder %s132_s30, %s132_s30 }
  0xd2   :  { %p4969_p1 = scmp.lt.s32.totalorder %s4967_s27, %s4963_s21 }
  0xd4   :  { %p4970_p2 = por %p4969_p1, %p4968_p0 }
  0xd6   :  { %p4971_p3 = pnand %p4970_p2, %p4964_p13 }
  0xd8   :  { %4974 = shalt.err (!%p4971_p3)
}
  0xd9   :  { %134 = dma.hbm_to_vmem [thread:$0]  %s6317_s9, 16, %s132_s30, [#allocation15]  }
  0xda   :  { %s5072_s25 = smov [#allocation19]   ;;  %s5073_s8 = smov [#allocation22]  }
  0xdb   :  { %s153_s28 = sshll.u32 %s5072_s25, 4  ;;  %s177_s5 = sshll.u32 %s5073_s8, 4  ;;  %s154_s28 = int_to_ptr.vmem [resolvable:$true] %s153_s28  ;;  %s178_s5 = int_to_ptr.vmem [resolvable:$true] %s177_s5 }
  0xdc   :  { %s4975_s6 = scalar_lea.hbm %s6319_s11, 16 }
  0xdd   :  { %p4976_p4 = scmp.ne.s32.totalorder %s6319_s11, %s4975_s6  ;;  %p4979_p5 = scmp.lt.u32.totalorder %s4975_s6, %s6319_s11 }
  0xdf   :  { %p4981_p6 = pnand %p4979_p5, %p4976_p4 }
  0xe1   :  { %4984 = shalt.err (!%p4981_p6)
}
  0xe2   :  { %s4985_s9 = scalar_lea.vmem %s154_s28, 16  ;;  %s4989_s30 = scalar_lea.vmem %s154_s28, 32 }
  0xe3   :  { %p4986_p7 = scmp.ne.s32.totalorder %s154_s28, %s4985_s9  ;;  %p4990_p8 = scmp.lt.s32.totalorder %s154_s28, %s154_s28 }
  0xe4   :  { %p4991_p9 = scmp.lt.s32.totalorder %s4989_s30, %s4985_s9 }
  0xe6   :  { %p4992_p10 = por %p4991_p9, %p4990_p8 }
  0xe8   :  { %p4993_p11 = pnand %p4992_p10, %p4986_p7 }
  0xea   :  { %4996 = shalt.err (!%p4993_p11)
}
  0xeb   :  { %156 = dma.hbm_to_vmem [thread:$0]  %s6319_s11, 16, %s154_s28, [#allocation18]  }
  0xec   :  { %s4997_s27 = scalar_lea.hbm %s6322_s14, 16 }
  0xed   :  { %p4998_p12 = scmp.ne.s32.totalorder %s6322_s14, %s4997_s27  ;;  %p5001_p13 = scmp.lt.u32.totalorder %s4997_s27, %s6322_s14 }
  0xef   :  { %p5003_p0 = pnand %p5001_p13, %p4998_p12 }
  0xf1   :  { %5006 = shalt.err (!%p5003_p0)
}
  0xf2   :  { %s5007_s10 = scalar_lea.vmem %s178_s5, 16  ;;  %s5011_s4 = scalar_lea.vmem %s178_s5, 32 }
  0xf3   :  { %p5008_p1 = scmp.ne.s32.totalorder %s178_s5, %s5007_s10  ;;  %p5012_p2 = scmp.lt.s32.totalorder %s178_s5, %s178_s5 }
  0xf4   :  { %p5013_p3 = scmp.lt.s32.totalorder %s5011_s4, %s5007_s10 }
  0xf6   :  { %p5014_p4 = por %p5013_p3, %p5012_p2 }
  0xf8   :  { %p5015_p5 = pnand %p5014_p4, %p5008_p1 }
  0xfa   :  { %5018 = shalt.err (!%p5015_p5)
}
  0xfb   :  { %180 = dma.hbm_to_vmem [thread:$0]  %s6322_s14, 16, %s178_s5, [#allocation21]  }
  0xfc   :  { %s5074_s6 = smov [#allocation23]   ;;  %s5019_s0 = scalar_lea.hbm %s6323_s15, 512 }
  0xfd   :  { %s186_s24 = sshll.u32 %s5074_s6, 4  ;;  %p5020_p6 = scmp.ne.s32.totalorder %s6323_s15, %s5019_s0  ;;  %s187_s24 = int_to_ptr.vmem [resolvable:$true] %s186_s24 }
  0xfe   :  { %p5023_p7 = scmp.lt.u32.totalorder %s5019_s0, %s6323_s15 }
 0x100   :  { %p5025_p8 = pnand %p5023_p7, %p5020_p6 }
 0x102   :  { %5028 = shalt.err (!%p5025_p8)
}
 0x103   :  { %s5029_s29 = scalar_lea.vmem %s187_s24, 512  ;;  %p5034_p10 = scmp.lt.s32.totalorder %s187_s24, %s187_s24 }
 0x104   :  { %p5030_p9 = scmp.ne.s32.totalorder %s187_s24, %s5029_s29  ;;  %p5035_p11 = scmp.lt.s32.totalorder %s5029_s29, %s5029_s29 }
 0x106   :  { %p5036_p12 = por %p5035_p11, %p5034_p10 }
 0x108   :  { %p5037_p13 = pnand %p5036_p12, %p5030_p9 }
 0x10a   :  { %5040 = shalt.err (!%p5037_p13)
}
 0x10b   :  { %192 = dma.hbm_to_vmem [thread:$0]  %s6323_s15, 512, %s187_s24, [#allocation24], %s5062_s1, %s5062_s1, %s5063_s26  }
 0x10c   :  { %5041 = dma.done.wait [#allocation4], 32  }
 0x10d   :  { %5042 = vsyncadd [#allocation4], 4294967264 }
 0x10e   :  { %5043 = dma.done.wait [#allocation6], 288  }
 0x10f   :  { %5044 = vsyncadd [#allocation6], 4294967008 }
 0x110   :  { %5045 = dma.done.wait [#allocation9], 272  }
 0x111   :  { %5046 = vsyncadd [#allocation9], 4294967024 }
 0x112   :  { %5047 = dma.done.wait [#allocation12], 272  }
 0x113   :  { %5048 = vsyncadd [#allocation12], 4294967024 }
 0x114   :  { %5049 = dma.done.wait [#allocation15], 272  }
 0x115   :  { %5050 = vsyncadd [#allocation15], 4294967024 }
 0x116   :  { %5051 = dma.done.wait [#allocation18], 272  }
 0x117   :  { %5052 = vsyncadd [#allocation18], 4294967024 }
 0x118   :  { %5053 = dma.done.wait [#allocation21], 272  }
 0x119   :  { %5054 = vsyncadd [#allocation21], 4294967024 }
 0x11a   :  { %5055 = dma.done.wait [#allocation24], 512  }
 0x11b   :  { %5056 = vsyncadd [#allocation24], 4294966784  ;;  %v5075_v1 = vmov 0.0   ;;  %vm5076_vm0 = vmmov 0   ;;  %v4414_v2 = vld [vmem:[#allocation11] sm:$0xff]   ;;  %s6348_s21 = sld [smem:[#allocation37_spill]]  ;;  %v483_v50 = vlaneseq }
 0x11c   :  { %4074 = vmatprep.subr.bf16.mxu1 %v5075_v1  ;;  %4066 = vmatprep.subr.bf16.mxu0 %v5075_v1  ;;  %v4416_v4 = vld [vmem:[#allocation11 + $0x8] sm:$0xff]   ;;  %v247_v7 = vld [vmem:[#allocation8 + $0x8] sm:$0xff]  ;;  %v244_v8 = vld [vmem:[#allocation7] sm:$0xff]  ;;  %vm275_vm1 = vcmask 261120   ;;  %vm496_vm2 = vcmask 64512   ;;  %s5077_s23 = smov 120  }
 0x11d   :  { %4078 = vmatprep.mubr.msk.bf16.mxu1 %vm5076_vm0, %v5075_v1  ;;  %4070 = vmatprep.mubr.msk.bf16.mxu0 %vm5076_vm0, %v5075_v1  ;;  %v246_v6 = vld [vmem:[#allocation8] sm:$0xff]  ;;  %v245_v10 = vld [vmem:[#allocation7 + $0x8] sm:$0xff]  ;;  %v4419_v13 = vld [vmem:[#allocation14 + $0x8] sm:$0xff]   ;;  %v5078_v45 = vmov 0   ;;  %vm632_vm3 = vcmask 1043456   ;;  %v484_v52 = vshrl.u32 %v483_v50, 7 }
 0x11e   :  { %4075 = vmatpush3.bf16.msra.mxu1 %v4414_v2  ;;  %v251_v9 = vpack.c.bf16 %v247_v7, %v246_v6  ;;  %v5404_v11 = vpack.c.bf16 %v245_v10, %v244_v8  ;;  %v4418_v12 = vld [vmem:[#allocation14] sm:$0xff]   ;;  %v3854_v14 = vld [vmem:[#allocation13] ss:$0 sm:$0xff]  ;;  %v3850_v15 = vld [vmem:[#allocation10] ss:$0 sm:$0xff]  ;;  %4405 = vset.pattern.permute.xlu1 %v5078_v45  ;;  %s5080_s25 = smov 112  }
 0x11f   :  { %4076 = vmatprep.subr.bf16.mxu1 %v5075_v1  ;;  %v3858_v40 = vld [vmem:[#allocation16] ss:$0 sm:$0xff]  ;;  %v5079_v48 = vmov 1966171168   ;;  %v595_v58 = vsub.s32 0, %v484_v52  ;;  %s5081_s8 = smov 104  }
 0x120   :  { %v481_v49 = vunpack.c.l.s4 %v5079_v48  ;;  %v3868_v53 = vld.sshfl [vmem:[#allocation3] sm:$0x11 pattern:$0x75316420]  ;;  %s5082_s10 = smov 16   ;;  %s5083_s6 = smov 24  }
 0x121   :  { %v4415_v3 = vld [vmem:[%s6348_s21] sm:$0xff]   ;;  %v4417_v5 = vld [vmem:[%s6348_s21 + $0x8] sm:$0xff]   ;;  %v479_v55 = vcombine.high %v3868_v53, %v3868_v53  ;;  %vm1414_vm8 = vcmask 130048   ;;  %vm1417_vm9 = vcmask 195584   ;;  %vm1971_vm10 = vcmask 1041409   ;;  %s5086_s14 = smov 96  }
 0x122   :  { %4067 = vmatpush3.bf16.msra.mxu0 %v4415_v3  ;;  %4077 = vmatpush3.bf16.msra.mxu1 %v4416_v4  ;;  %v482_v51 = vunpack.c.0.s8 %v481_v49 }
 0x123   :  { %4068 = vmatprep.subr.bf16.mxu0 %v5075_v1  ;;  %4090 = vmatprep.subr.bf16.mxu1 %v5075_v1 }
 0x124   :  { %v485_v54 = vsub.s32 %v482_v51, %v484_v52 }
 0x125   :  { %4079 = vmatmul.mubr.msk.bf16.vlgmr.msra.gmra.mrb[0].mxu1 %vm275_vm1, %v251_v9 }
 0x126   :  { %4069 = vmatpush3.bf16.msra.mxu0 %v4417_v5  ;;  %4092 = vmatprep.mubr.msk.bf16.mxu1 %vm5076_vm0, %v5075_v1  ;;  %v486_v56 = vrot.slane %v3868_v53, %v485_v54  ;;  %v493_v57 = vrot.slane %v479_v55, %v485_v54 }
 0x127   :  { %4082 = vmatprep.subr.bf16.mxu0 %v5075_v1 }
 0x128   :  { %vm589_vm4 = vcmp.gt.f32.partialorder %v486_v56, 0.5  ;;  %vm590_vm5 = vcmp.gt.f32.partialorder %v493_v57, 0.5 }
 0x129   :  { %4071 = vmatmul.mubr.msk.bf16.vlgmr.msra.gmra.mrb[0].mxu0 %vm275_vm1, %v5404_v11  ;;  %v591_v59 = vsel %vm589_vm4, 1, %v5078_v45  ;;  %v592_v60 = vsel %vm590_vm5, 1, %v5078_v45 }
 0x12a   :  { %4083 = vmatpush3.bf16.msra.mxu0 %v4418_v12  ;;  %4086 = vmatprep.mubr.msk.bf16.mxu0 %vm5076_vm0, %v5075_v1  ;;  %v5457_v61 = vrot.slane %v591_v59, %v595_v58  ;;  %v5459_v62 = vrot.slane %v592_v60, %v595_v58 }
 0x12b   :  { %4084 = vmatprep.subr.bf16.mxu0 %v5075_v1 }
 0x12c   :  { %vm601_vm6 = vcmp.eq.s32.totalorder %v5457_v61, 1  ;;  %vm602_vm7 = vcmp.eq.s32.totalorder %v5459_v62, 1 }
 0x12e   :  { %4085 = vmatpush3.bf16.msra.mxu0 %v4419_v13 }
 0x12f   :  { %4096 = vmatprep.subr.bf16.mxu0 %v5075_v1 }
 0x131   :  { %4087 = vmatmul.mubr.msk.bf16.vlgmr.msra.gmra.mrb[4].mxu0 %vm275_vm1, %v251_v9 }
 0x132   :  { %4098 = vmatprep.mubr.msk.bf16.mxu0 %vm5076_vm0, %v5075_v1 }
 0x1f8   :  { %v380_v16 = vpop.f32.mrb[0].mxu1 }
 0x1f9   :  { %v381_v17 = vadd.f32 %v3854_v14, %v380_v16  ;;  %v4080_v18 = vpop.f32.mrb[1].mxu1 }
 0x1fa   :  { %v383_v20 = vpop.f32.mrb[2].mxu1 }
 0x1fb   :  { %v5420_v23 = vpack.c.bf16 %v381_v17, %v381_v17  ;;  %v384_v24 = vadd.f32 %v3854_v14, %v383_v20  ;;  %v4081_v25 = vpop.f32.mrb[3].mxu1 }
 0x1fc   :  { %v313_v19 = vpop.f32.mrb[0].mxu0 }
 0x1fd   :  { %v314_v21 = vadd.f32 %v3850_v15, %v313_v19  ;;  %v4072_v22 = vpop.f32.mrb[1].mxu0  ;;  %v5422_v28 = vpack.c.bf16 %v384_v24, %v384_v24  ;;  %v501_v31 = vsel %vm496_vm2, %v5420_v23, 0 }
 0x1fe   :  { %v316_v26 = vpop.f32.mrb[2].mxu0  ;;  %4091 = vmatpush3.bf16.xpose.msra.mxu1 %v501_v31 }
 0x1ff   :  { %v4073_v27 = vpop.f32.mrb[3].mxu0  ;;  %v451_v29 = vmul.f32 0.35355338, %v314_v21  ;;  %v317_v30 = vadd.f32 %v3850_v15, %v316_v26  ;;  %774 = vrot.lane.b32.xlu1 %v5422_v28, %s5077_s23  ;;  %v547_v32 = vsel %vm496_vm2, %v5422_v28, 0  ;;  %4102 = vmatprep.subr.bf16.mxu1 %v5075_v1 }
 0x200   :  { %4097 = vmatpush3.bf16.xpose.msra.mxu0 %v547_v32 }
 0x201   :  { %v5431_v33 = vpack.c.bf16 %v451_v29, %v451_v29  ;;  %v452_v34 = vmul.f32 0.35355338, %v317_v30  ;;  %4108 = vmatprep.subr.bf16.mxu0 %v5075_v1 }
 0x203   :  { %v5434_v39 = vpack.c.bf16 %v452_v34, %v452_v34 }
 0x204   :  { %v444_v35 = vpop.f32.mrb[4].mxu0 }
 0x205   :  { %v4088_v36 = vpop.f32.mrb[5].mxu0  ;;  %4093 = vmatmul.mubr.msk.bf16.vlgmr.msra.gmra.mrb[4].mxu1 %vm496_vm2, %v5431_v33  ;;  %v445_v41 = vadd.f32 %v3858_v40, %v444_v35 }
 0x206   :  { %v447_v37 = vpop.f32.mrb[6].mxu0  ;;  %4104 = vmatprep.mubr.msk.bf16.mxu1 %vm5076_vm0, %v5075_v1 }
 0x207   :  { %v4089_v38 = vpop.f32.mrb[7].mxu0  ;;  %4099 = vmatmul.mubr.msk.bf16.vlgmr.msra.gmra.mrb[8].mxu0 %vm496_vm2, %v5434_v39  ;;  %v448_v42 = vadd.f32 %v3858_v40, %v447_v37  ;;  %v5444_v43 = vpack.c.bf16 %v445_v41, %v445_v41 }
 0x208   :  { %4110 = vmatprep.mubr.msk.bf16.mxu0 %vm5076_vm0, %v5075_v1 }
 0x209   :  { %v5446_v44 = vpack.c.bf16 %v448_v42, %v448_v42  ;;  %v634_v46 = vsel %vm632_vm3, %v5444_v43, 0 }
 0x20a   :  { %4103 = vmatpush3.bf16.msra.mxu1 %v634_v46 }
 0x20b   :  { %v680_v47 = vsel %vm632_vm3, %v5446_v44, 0  ;;  %4114 = vmatprep.subr.bf16.mxu1 %v5075_v1 }
 0x20c   :  { %4109 = vmatpush3.bf16.msra.mxu0 %v680_v47 }
 0x20d   :  { %4120 = vmatprep.subr.bf16.mxu0 %v5075_v1 }
 0x271   :  { %v775_v24 = vpop.permute.xlu1 %774 }
 0x272   :  { %v780_v37 = vsel %vm496_vm2, %v775_v24, 0 }
 0x2d8   :  { %v537_v63 = vpop.f32.mrb[4].mxu1 }
 0x2d9   :  { %v603_v0 = vsel %vm601_vm6, -1e+18, %v537_v63  ;;  %v4094_v2 = vpop.f32.mrb[5].mxu1 }
 0x2da   :  { %v540_v3 = vpop.f32.mrb[6].mxu1  ;;  %v583_v4 = vpop.f32.mrb[8].mxu0  ;;  %v605_v5 = vsel %vm496_vm2, %v603_v0, -inf }
 0x2db   :  { %v604_v6 = vsel %vm602_vm7, -1e+18, %v583_v4  ;;  %606 = vmax.xlane.f32.xlu0 %v605_v5  ;;  %v4095_v7 = vpop.f32.mrb[7].mxu1  ;;  %v4100_v8 = vpop.f32.mrb[9].mxu0 }
 0x2dc   :  { %v586_v9 = vpop.f32.mrb[10].mxu0  ;;  %v608_v12 = vsel %vm496_vm2, %v604_v6, -inf }
 0x2dd   :  { %v4101_v10 = vpop.f32.mrb[11].mxu0 }
 0x2df   :  { %609 = vmax.xlane.f32.xlu0 %v608_v12 }
 0x2f5   :  { %724 = vrot.lane.b32.xlu0 %v5420_v23, %s5077_s23 }
 0x368   :  { %v607_v13 = vpop.xlane.xlu0 %606 }
 0x369   :  { %v611_v14 = vsub.f32 %v603_v0, %v607_v13 }
 0x36b   :  { %v613_v15 = vmul.f32 1.442695, %v611_v14 }
 0x36c   :  { %v610_v16 = vpop.xlane.xlu0 %609 }
 0x36d   :  { %4434 = vpow2.f32 %v613_v15  ;;  %v612_v17 = vsub.f32 %v604_v6, %v610_v16 }
 0x36f   :  { %v615_v18 = vmul.f32 1.442695, %v612_v17 }
 0x370   :  { %v725_v30 = vpop.permute.xlu0 %724 }
 0x371   :  { %4436 = vpow2.f32 %v615_v18  ;;  %v730_v34 = vsel %vm496_vm2, %v725_v30, 0 }
 0x377   :  { %v4435_v19 = vpop.eup %4434 }
 0x378   :  { %v617_v20 = vsel %vm496_vm2, %v4435_v19, 0.0 }
 0x379   :  { %618 = vadd.xlane.f32.xlu1 %v617_v20 }
 0x37b   :  { %v4437_v21 = vpop.eup %4436 }
 0x37c   :  { %v620_v22 = vsel %vm496_vm2, %v4437_v21, 0.0 }
 0x37d   :  { %621 = vadd.xlane.f32.xlu1 %v620_v22 }
 0x38e   :  { %722 = vrot.lane.b32.xlu1 %v5431_v33, %s5077_s23 }
 0x392   :  { %772 = vrot.lane.b32.xlu1 %v5434_v39, %s5077_s23 }
 0x406   :  { %v619_v25 = vpop.xlane.xlu1 %618 }
 0x407   :  { %4438 = vrcp.f32 %v619_v25 }
 0x40a   :  { %v622_v26 = vpop.xlane.xlu1 %621 }
 0x40b   :  { %4440 = vrcp.f32 %v622_v26 }
 0x40e   :  { %v723_v38 = vpop.permute.xlu1 %722 }
 0x411   :  { %v4439_v27 = vpop.eup %4438 }
 0x412   :  { %v625_v29 = vmul.f32 %v4439_v27, %v4435_v19  ;;  %v773_v40 = vpop.permute.xlu1 %772 }
 0x414   :  { %v627_v31 = vpack.c.bf16 %v625_v29, %v625_v29 }
 0x415   :  { %v4441_v32 = vpop.eup %4440 }
 0x416   :  { %4105 = vmatmul.mubr.msk.bf16.vlgmr.msra.gmra.mrb[8].mxu1 %vm496_vm2, %v627_v31  ;;  %v626_v35 = vmul.f32 %v4441_v32, %v4437_v21 }
 0x417   :  { %4115 = vmatpush3.bf16.xpose.msra.mxu1 %v730_v34  ;;  %4116 = vmatprep.mubr.msk.bf16.mxu1 %vm5076_vm0, %v5075_v1 }
 0x418   :  { %v628_v36 = vpack.c.bf16 %v626_v35, %v626_v35  ;;  %4126 = vmatprep.subr.bf16.mxu1 %v5075_v1 }
 0x41a   :  { %4111 = vmatmul.mubr.msk.bf16.vlgmr.msra.gmra.mrb[12].mxu0 %vm496_vm2, %v628_v36 }
 0x41b   :  { %4121 = vmatpush3.bf16.xpose.msra.mxu0 %v780_v37  ;;  %4122 = vmatprep.mubr.msk.bf16.mxu0 %vm5076_vm0, %v5075_v1 }
 0x41c   :  { %4132 = vmatprep.subr.bf16.mxu0 %v5075_v1 }
 0x41e   :  { %4117 = vmatmul.mubr.msk.bf16.vlgmr.msra.gmra.mrb[12].mxu1 %vm496_vm2, %v723_v38 }
 0x41f   :  { %4128 = vmatprep.mubr.msk.bf16.mxu1 %vm5076_vm0, %v5075_v1 }
 0x422   :  { %4123 = vmatmul.mubr.msk.bf16.vlgmr.msra.gmra.mrb[16].mxu0 %vm496_vm2, %v773_v40 }
 0x423   :  { %4134 = vmatprep.mubr.msk.bf16.mxu0 %vm5076_vm0, %v5075_v1 }
 0x4e9   :  { %v5493_v41 = vpop.f32.mrb[8].mxu1 }
 0x4ea   :  { %v4106_v42 = vpop.f32.mrb[9].mxu1 }
 0x4eb   :  { %v673_v46 = vpop.f32.mrb[10].mxu1 }
 0x4ec   :  { %v4107_v47 = vpop.f32.mrb[11].mxu1 }
 0x4ed   :  { %v5495_v48 = vpop.f32.mrb[12].mxu0 }
 0x4ee   :  { %v4112_v49 = vpop.f32.mrb[13].mxu0 }
 0x4ef   :  { %v719_v50 = vpop.f32.mrb[14].mxu0 }
 0x4f0   :  { %v4113_v51 = vpop.f32.mrb[15].mxu0 }
 0x4f1   :  { %v766_v52 = vpop.f32.mrb[12].mxu1 }
 0x4f2   :  { %v822_v53 = vsel %vm601_vm6, -1e+18, %v766_v52  ;;  %v4118_v54 = vpop.f32.mrb[13].mxu1 }
 0x4f3   :  { %v769_v55 = vpop.f32.mrb[14].mxu1  ;;  %v824_v56 = vsel %vm496_vm2, %v822_v53, -inf }
 0x4f4   :  { %825 = vmax.xlane.f32.xlu0 %v824_v56  ;;  %v4119_v57 = vpop.f32.mrb[15].mxu1 }
 0x4f5   :  { %v816_v58 = vpop.f32.mrb[16].mxu0 }
 0x4f6   :  { %v823_v59 = vsel %vm602_vm7, -1e+18, %v816_v58  ;;  %v4124_v60 = vpop.f32.mrb[17].mxu0 }
 0x4f7   :  { %v819_v63 = vpop.f32.mrb[18].mxu0  ;;  %v827_v0 = vsel %vm496_vm2, %v823_v59, -inf }
 0x4f8   :  { %828 = vmax.xlane.f32.xlu1 %v827_v0  ;;  %v4125_v2 = vpop.f32.mrb[19].mxu0 }
 0x509   :  { %896 = vrot.lane.b32.xlu1 %v5446_v44, %s5077_s23 }
 0x50d   :  { %946 = vrot.lane.b32.xlu1 %v5420_v23, %s5080_s25 }
 0x511   :  { %996 = vrot.lane.b32.xlu1 %v5422_v28, %s5080_s25 }
 0x515   :  { %994 = vrot.lane.b32.xlu1 %v5434_v39, %s5080_s25 }
 0x581   :  { %v826_v3 = vpop.xlane.xlu0 %825 }
 0x582   :  { %v830_v4 = vsub.f32 %v822_v53, %v826_v3 }
 0x584   :  { %v832_v5 = vmul.f32 1.442695, %v830_v4 }
 0x585   :  { %v829_v6 = vpop.xlane.xlu1 %828 }
 0x586   :  { %4442 = vpow2.f32 %v832_v5  ;;  %v831_v7 = vsub.f32 %v823_v59, %v829_v6 }
 0x588   :  { %v834_v8 = vmul.f32 1.442695, %v831_v7 }
 0x589   :  { %v897_v9 = vpop.permute.xlu1 %896 }
 0x58a   :  { %4444 = vpow2.f32 %v834_v8  ;;  %v902_v10 = vsel %vm632_vm3, %v897_v9, 0 }
 0x58b   :  { %4133 = vmatpush3.bf16.msra.mxu0 %v902_v10 }
 0x58c   :  { %4144 = vmatprep.subr.bf16.mxu0 %v5075_v1 }
 0x58d   :  { %v947_v21 = vpop.permute.xlu1 %946 }
 0x58e   :  { %v952_v29 = vsel %vm496_vm2, %v947_v21, 0 }
 0x590   :  { %v4443_v12 = vpop.eup %4442 }
 0x591   :  { %v836_v13 = vsel %vm496_vm2, %v4443_v12, 0.0  ;;  %v997_v27 = vpop.permute.xlu1 %996 }
 0x592   :  { %837 = vadd.xlane.f32.xlu0 %v836_v13  ;;  %v1002_v31 = vsel %vm496_vm2, %v997_v27, 0 }
 0x594   :  { %v4445_v14 = vpop.eup %4444 }
 0x595   :  { %v839_v15 = vsel %vm496_vm2, %v4445_v14, 0.0  ;;  %v995_v34 = vpop.permute.xlu1 %994 }
 0x596   :  { %840 = vadd.xlane.f32.xlu0 %v839_v15 }
 0x5ac   :  { %848 = vrot.lane.b32.xlu0 %v5444_v43, %s5077_s23 }
 0x5b0   :  { %944 = vrot.lane.b32.xlu0 %v5431_v33, %s5080_s25 }
 0x61f   :  { %v838_v16 = vpop.xlane.xlu0 %837 }
 0x620   :  { %4446 = vrcp.f32 %v838_v16 }
 0x623   :  { %v841_v17 = vpop.xlane.xlu0 %840 }
 0x624   :  { %4448 = vrcp.f32 %v841_v17 }
 0x627   :  { %v849_v18 = vpop.permute.xlu0 %848 }
 0x628   :  { %v854_v19 = vsel %vm632_vm3, %v849_v18, 0 }
 0x629   :  { %4127 = vmatpush3.bf16.msra.mxu1 %v854_v19 }
 0x62a   :  { %v4447_v20 = vpop.eup %4446  ;;  %4138 = vmatprep.subr.bf16.mxu1 %v5075_v1 }
 0x62b   :  { %v844_v22 = vmul.f32 %v4447_v20, %v4443_v12  ;;  %v945_v32 = vpop.permute.xlu0 %944 }
 0x62d   :  { %v846_v24 = vpack.c.bf16 %v844_v22, %v844_v22 }
 0x62e   :  { %v4449_v25 = vpop.eup %4448 }
 0x62f   :  { %4129 = vmatmul.mubr.msk.bf16.vlgmr.msra.gmra.mrb[16].mxu1 %vm496_vm2, %v846_v24  ;;  %v845_v26 = vmul.f32 %v4449_v25, %v4445_v14 }
 0x630   :  { %4140 = vmatprep.mubr.msk.bf16.mxu1 %vm5076_vm0, %v5075_v1 }
 0x631   :  { %v847_v30 = vpack.c.bf16 %v845_v26, %v845_v26 }
 0x632   :  { %4139 = vmatpush3.bf16.xpose.msra.mxu1 %v952_v29 }
 0x633   :  { %4135 = vmatmul.mubr.msk.bf16.vlgmr.msra.gmra.mrb[20].mxu0 %vm496_vm2, %v847_v30  ;;  %4150 = vmatprep.subr.bf16.mxu1 %v5075_v1 }
 0x634   :  { %4145 = vmatpush3.bf16.xpose.msra.mxu0 %v1002_v31  ;;  %4146 = vmatprep.mubr.msk.bf16.mxu0 %vm5076_vm0, %v5075_v1 }
 0x635   :  { %4156 = vmatprep.subr.bf16.mxu0 %v5075_v1 }
 0x639   :  { %4141 = vmatmul.mubr.msk.bf16.vlgmr.msra.gmra.mrb[20].mxu1 %vm496_vm2, %v945_v32 }
 0x63a   :  { %4152 = vmatprep.mubr.msk.bf16.mxu1 %vm5076_vm0, %v5075_v1 }
 0x63b   :  { %4147 = vmatmul.mubr.msk.bf16.vlgmr.msra.gmra.mrb[24].mxu0 %vm496_vm2, %v995_v34 }
 0x63c   :  { %4158 = vmatprep.mubr.msk.bf16.mxu0 %vm5076_vm0, %v5075_v1 }
 0x702   :  { %v5537_v35 = vpop.f32.mrb[16].mxu1 }
 0x703   :  { %v4130_v36 = vpop.f32.mrb[17].mxu1 }
 0x704   :  { %v893_v37 = vpop.f32.mrb[18].mxu1 }
 0x705   :  { %v4131_v38 = vpop.f32.mrb[19].mxu1 }
 0x706   :  { %v5539_v40 = vpop.f32.mrb[20].mxu0 }
 0x707   :  { %v4390_v42 = vpack.i.bf16 %v5539_v40, %v5537_v35  ;;  %v4136_v46 = vpop.f32.mrb[21].mxu0 }
 0x708   :  { %v941_v47 = vpop.f32.mrb[22].mxu0 }
 0x709   :  { %v4137_v49 = vpop.f32.mrb[23].mxu0 }
 0x70c   :  { %v988_v50 = vpop.f32.mrb[20].mxu1 }
 0x70d   :  { %v1044_v51 = vsel %vm601_vm6, -1e+18, %v988_v50  ;;  %v4142_v52 = vpop.f32.mrb[21].mxu1 }
 0x70e   :  { %v991_v53 = vpop.f32.mrb[22].mxu1  ;;  %v1038_v54 = vpop.f32.mrb[24].mxu0  ;;  %v1046_v55 = vsel %vm496_vm2, %v1044_v51, -inf }
 0x70f   :  { %v1045_v56 = vsel %vm602_vm7, -1e+18, %v1038_v54  ;;  %1047 = vmax.xlane.f32.xlu0 %v1046_v55  ;;  %v4143_v57 = vpop.f32.mrb[23].mxu1  ;;  %v4148_v58 = vpop.f32.mrb[25].mxu0 }
 0x710   :  { %v1041_v59 = vpop.f32.mrb[26].mxu0  ;;  %v1049_v60 = vsel %vm496_vm2, %v1045_v56, -inf }
 0x711   :  { %1050 = vmax.xlane.f32.xlu1 %v1049_v60  ;;  %v4149_v63 = vpop.f32.mrb[27].mxu0 }
 0x722   :  { %1118 = vrot.lane.b32.xlu1 %v5446_v44, %s5080_s25 }
 0x726   :  { %1168 = vrot.lane.b32.xlu1 %v5420_v23, %s5081_s8 }
 0x72a   :  { %1218 = vrot.lane.b32.xlu1 %v5422_v28, %s5081_s8 }
 0x72e   :  { %1216 = vrot.lane.b32.xlu1 %v5434_v39, %s5081_s8 }
 0x79c   :  { %v1048_v0 = vpop.xlane.xlu0 %1047 }
 0x79d   :  { %v1052_v2 = vsub.f32 %v1044_v51, %v1048_v0 }
 0x79e   :  { %v1051_v3 = vpop.xlane.xlu1 %1050 }
 0x79f   :  { %v1054_v4 = vmul.f32 1.442695, %v1052_v2  ;;  %v1053_v5 = vsub.f32 %v1045_v56, %v1051_v3 }
 0x7a1   :  { %4450 = vpow2.f32 %v1054_v4  ;;  %v1056_v6 = vmul.f32 1.442695, %v1053_v5 }
 0x7a2   :  { %v1119_v7 = vpop.permute.xlu1 %1118 }
 0x7a3   :  { %4452 = vpow2.f32 %v1056_v6  ;;  %v1124_v8 = vsel %vm632_vm3, %v1119_v7, 0 }
 0x7a4   :  { %4157 = vmatpush3.bf16.msra.mxu0 %v1124_v8 }
 0x7a5   :  { %4168 = vmatprep.subr.bf16.mxu0 %v5075_v1 }
 0x7a6   :  { %v1169_v16 = vpop.permute.xlu1 %1168 }
 0x7aa   :  { %v1219_v21 = vpop.permute.xlu1 %1218 }
 0x7ab   :  { %v4451_v23 = vpop.eup %4450  ;;  %v1224_v24 = vsel %vm496_vm2, %v1219_v21, 0 }
 0x7ac   :  { %v1058_v28 = vsel %vm496_vm2, %v4451_v23, 0.0 }
 0x7ad   :  { %v4453_v9 = vpop.eup %4452  ;;  %1059 = vadd.xlane.f32.xlu0 %v1058_v28 }
 0x7ae   :  { %v1061_v39 = vsel %vm496_vm2, %v4453_v9, 0.0  ;;  %v1217_v26 = vpop.permute.xlu1 %1216 }
 0x7b1   :  { %1062 = vadd.xlane.f32.xlu0 %v1061_v39 }
 0x7c7   :  { %1070 = vrot.lane.b32.xlu0 %v5444_v43, %s5080_s25 }
 0x7cb   :  { %1166 = vrot.lane.b32.xlu0 %v5431_v33, %s5081_s8  ;;  %v1174_v33 = vsel %vm496_vm2, %v1169_v16, 0  ;;  %v4423_v16 = vld [vmem:[%s6320_s12 + $0x18] sm:$0xff]  }
 0x83a   :  { %v1060_v10 = vpop.xlane.xlu0 %1059 }
 0x83b   :  { %4454 = vrcp.f32 %v1060_v10  ;;  %v4420_v10 = vld [vmem:[#allocation17] sm:$0xff]  }
 0x83e   :  { %v1063_v12 = vpop.xlane.xlu0 %1062 }
 0x83f   :  { %4456 = vrcp.f32 %v1063_v12  ;;  %v4421_v12 = vld [vmem:[#allocation17 + $0x8] sm:$0xff]  }
 0x842   :  { %v1071_v13 = vpop.permute.xlu0 %1070 }
 0x843   :  { %v1076_v14 = vsel %vm632_vm3, %v1071_v13, 0  ;;  %v4422_v13 = vld [vmem:[%s6320_s12 + $0x10] sm:$0xff]  }
 0x844   :  { %4151 = vmatpush3.bf16.msra.mxu1 %v1076_v14 }
 0x845   :  { %v4455_v15 = vpop.eup %4454  ;;  %4162 = vmatprep.subr.bf16.mxu1 %v5075_v1 }
 0x846   :  { %v1066_v17 = vmul.f32 %v4455_v15, %v4451_v23  ;;  %v1167_v25 = vpop.permute.xlu0 %1166 }
 0x848   :  { %v1068_v18 = vpack.c.bf16 %v1066_v17, %v1066_v17 }
 0x849   :  { %v4457_v19 = vpop.eup %4456 }
 0x84a   :  { %4153 = vmatmul.mubr.msk.bf16.vlgmr.msra.gmra.mrb[24].mxu1 %vm496_vm2, %v1068_v18  ;;  %v1067_v20 = vmul.f32 %v4457_v19, %v4453_v9 }
 0x84b   :  { %4164 = vmatprep.mubr.msk.bf16.mxu1 %vm5076_vm0, %v5075_v1 }
 0x84c   :  { %v1069_v22 = vpack.c.bf16 %v1067_v20, %v1067_v20 }
 0x84d   :  { %4163 = vmatpush3.bf16.xpose.msra.mxu1 %v1174_v33  ;;  %v4424_v33 = vld [vmem:[#allocation23 + $0x10] sm:$0xff]  }
 0x84e   :  { %4159 = vmatmul.mubr.msk.bf16.vlgmr.msra.gmra.mrb[28].mxu0 %vm496_vm2, %v1069_v22  ;;  %4174 = vmatprep.subr.bf16.mxu1 %v5075_v1 }
 0x84f   :  { %4169 = vmatpush3.bf16.xpose.msra.mxu0 %v1224_v24  ;;  %4170 = vmatprep.mubr.msk.bf16.mxu0 %vm5076_vm0, %v5075_v1 }
 0x850   :  { %4180 = vmatprep.subr.bf16.mxu0 %v5075_v1 }
 0x854   :  { %4165 = vmatmul.mubr.msk.bf16.vlgmr.msra.gmra.mrb[28].mxu1 %vm496_vm2, %v1167_v25 }
 0x855   :  { %4176 = vmatprep.mubr.msk.bf16.mxu1 %vm5076_vm0, %v5075_v1 }
 0x856   :  { %4171 = vmatmul.mubr.msk.bf16.vlgmr.msra.gmra.mrb[32].mxu0 %vm496_vm2, %v1217_v26 }
 0x857   :  { %4182 = vmatprep.mubr.msk.bf16.mxu0 %vm5076_vm0, %v5075_v1 }
 0x91d   :  { %v1112_v27 = vpop.f32.mrb[24].mxu1 }
 0x91e   :  { %v4154_v29 = vpop.f32.mrb[25].mxu1 }
 0x91f   :  { %v1115_v30 = vpop.f32.mrb[26].mxu1 }
 0x920   :  { %v4155_v31 = vpop.f32.mrb[27].mxu1 }
 0x921   :  { %v1160_v32 = vpop.f32.mrb[28].mxu0 }
 0x922   :  { %v4395_v34 = vpack.i.bf16 %v1160_v32, %v1112_v27  ;;  %v4160_v36 = vpop.f32.mrb[29].mxu0 }
 0x923   :  { %v1163_v37 = vpop.f32.mrb[30].mxu0 }
 0x924   :  { %v4161_v38 = vpop.f32.mrb[31].mxu0 }
 0x927   :  { %v1210_v46 = vpop.f32.mrb[28].mxu1 }
 0x928   :  { %v1266_v47 = vsel %vm601_vm6, -1e+18, %v1210_v46  ;;  %v4166_v49 = vpop.f32.mrb[29].mxu1  ;;  %vm3836_vm6 = vcmask 1024  }
 0x929   :  { %v1213_v50 = vpop.f32.mrb[30].mxu1  ;;  %v1260_v51 = vpop.f32.mrb[32].mxu0  ;;  %v1268_v52 = vsel %vm496_vm2, %v1266_v47, -inf }
 0x92a   :  { %v1267_v53 = vsel %vm602_vm7, -1e+18, %v1260_v51  ;;  %1269 = vmax.xlane.f32.xlu0 %v1268_v52  ;;  %v4167_v54 = vpop.f32.mrb[31].mxu1  ;;  %v4172_v55 = vpop.f32.mrb[33].mxu0  ;;  %v4425_v52 = vld [vmem:[%s6320_s12] sm:$0xff]  }
 0x92b   :  { %v1263_v56 = vpop.f32.mrb[34].mxu0  ;;  %v1271_v57 = vsel %vm496_vm2, %v1267_v53, -inf  ;;  %v5646_v54 = vld [vmem:[#allocation20 + $0x8] sm:$0xff]  }
 0x92c   :  { %1272 = vmax.xlane.f32.xlu1 %v1271_v57  ;;  %v4173_v58 = vpop.f32.mrb[35].mxu0 }
 0x92d   :  { %v3885_v58 = vld [vmem:[#allocation19] ss:$0 sm:$0xff] }
 0x93d   :  { %1340 = vrot.lane.b32.xlu1 %v5446_v44, %s5081_s8 }
 0x941   :  { %4391 = vrot.lane.b32.xlu1 %v4390_v42, %s6346_s22 }
 0x945   :  { %4396 = vrot.lane.b32.xlu1 %v4395_v34, %s5082_s10 }
 0x9b7   :  { %v1270_v61 = vpop.xlane.xlu0 %1269 }
 0x9b8   :  { %v1274_v62 = vsub.f32 %v1266_v47, %v1270_v61 }
 0x9b9   :  { %v1273_v59 = vpop.xlane.xlu1 %1272 }
 0x9ba   :  { %v1276_v60 = vmul.f32 1.442695, %v1274_v62  ;;  %v1275_v63 = vsub.f32 %v1267_v53, %v1273_v59  ;;  %v5639_v53 = vld [vmem:[#allocation20] sm:$0xff]  }
 0x9bc   :  { %4458 = vpow2.f32 %v1276_v60  ;;  %v1278_v0 = vmul.f32 1.442695, %v1275_v63 }
 0x9bd   :  { %v1341_v2 = vpop.permute.xlu1 %1340 }
 0x9be   :  { %4460 = vpow2.f32 %v1278_v0  ;;  %v1346_v3 = vsel %vm632_vm3, %v1341_v2, 0  ;;  %v4429_v2 = vld [vmem:[#allocation23] sm:$0xff]  }
 0x9bf   :  { %4181 = vmatpush3.bf16.msra.mxu0 %v1346_v3 }
 0x9c0   :  { %4194 = vmatprep.subr.bf16.mxu0 %v5075_v1 }
 0x9c1   :  { %v4392_v25 = vpop.permute.xlu1 %4391 }
 0x9c2   :  { %v4394_v27 = vunpack.i.h.bf16 %v4392_v25  ;;  %v4393_v29 = vunpack.i.l.bf16 %v4392_v25 }
 0x9c4   :  { %v1413_v34 = vsel %vm496_vm2, %v5495_v48, %v4394_v27  ;;  %v1412_v36 = vsel %vm496_vm2, %v5493_v41, %v4393_v29  ;;  %v4426_v48 = vld [vmem:[#allocation23 + $0x18] sm:$0xff]  }
 0x9c5   :  { %v4397_v26 = vpop.permute.xlu1 %4396  ;;  %v4427_v41 = vld [vmem:[%s6320_s12 + $0x8] sm:$0xff]  }
 0x9c6   :  { %v4459_v44 = vpop.eup %4458  ;;  %v4399_v30 = vunpack.i.h.bf16 %v4397_v26  ;;  %v4398_v31 = vunpack.i.l.bf16 %v4397_v26 }
 0x9c7   :  { %v1280_v35 = vsel %vm496_vm2, %v4459_v44, 0.0 }
 0x9c8   :  { %v4461_v40 = vpop.eup %4460  ;;  %1281 = vadd.xlane.f32.xlu0 %v1280_v35  ;;  %v1415_v46 = vsel %vm1414_vm8, %v1412_v36, %v4398_v31  ;;  %v1416_v47 = vsel %vm1414_vm8, %v1413_v34, %v4399_v30  ;;  %v5666_v35 = vld [vmem:[%s6324_s16] sm:$0xff]  }
 0x9c9   :  { %v1283_v42 = vsel %vm496_vm2, %v4461_v40, 0.0 }
 0x9cc   :  { %1284 = vadd.xlane.f32.xlu0 %v1283_v42 }
 0x9e2   :  { %1292 = vrot.lane.b32.xlu0 %v5444_v43, %s5081_s8 }
 0xa55   :  { %v1282_v4 = vpop.xlane.xlu0 %1281 }
 0xa56   :  { %4462 = vrcp.f32 %v1282_v4 }
 0xa59   :  { %v1285_v5 = vpop.xlane.xlu0 %1284 }
 0xa5a   :  { %4464 = vrcp.f32 %v1285_v5 }
 0xa5d   :  { %v1293_v6 = vpop.permute.xlu0 %1292 }
 0xa5e   :  { %v1298_v7 = vsel %vm632_vm3, %v1293_v6, 0 }
 0xa5f   :  { %4175 = vmatpush3.bf16.msra.mxu1 %v1298_v7 }
 0xa60   :  { %v4463_v8 = vpop.eup %4462  ;;  %4186 = vmatprep.subr.bf16.mxu1 %v5075_v1 }
 0xa61   :  { %v1288_v23 = vmul.f32 %v4463_v8, %v4459_v44  ;;  %v4431_v44 = vld [vmem:[#allocation23 + $0x8] sm:$0xff]  }
 0xa63   :  { %v1290_v28 = vpack.c.bf16 %v1288_v23, %v1288_v23 }
 0xa64   :  { %v4465_v9 = vpop.eup %4464 }
 0xa65   :  { %4177 = vmatmul.mubr.msk.bf16.vlgmr.msra.gmra.mrb[32].mxu1 %vm496_vm2, %v1290_v28  ;;  %v1289_v39 = vmul.f32 %v4465_v9, %v4461_v40  ;;  %v5674_v40 = vld [vmem:[%s6324_s16 + $0x8] sm:$0xff]  }
 0xa66   :  { %4190 = vmatprep.mubr.msk.bf16.mxu1 %vm5076_vm0, %v5075_v1  ;;  %4187 = vmatpush3.bf16.msra.mxu1 %v4420_v10 }
 0xa67   :  { %v1291_v43 = vpack.c.bf16 %v1289_v39, %v1289_v39  ;;  %4188 = vmatprep.subr.bf16.mxu1 %v5075_v1 }
 0xa69   :  { %4183 = vmatmul.mubr.msk.bf16.vlgmr.msra.gmra.mrb[36].mxu0 %vm496_vm2, %v1291_v43 }
 0xa6a   :  { %4198 = vmatprep.mubr.msk.bf16.mxu0 %vm5076_vm0, %v5075_v1  ;;  %4189 = vmatpush3.bf16.msra.mxu1 %v4421_v12 }
 0xa6b   :  { %4202 = vmatprep.subr.bf16.mxu1 %v5075_v1  ;;  %4195 = vmatpush3.bf16.msra.mxu0 %v4422_v13 }
 0xa6c   :  { %4196 = vmatprep.subr.bf16.mxu0 %v5075_v1 }
 0xa6f   :  { %4197 = vmatpush3.bf16.msra.mxu0 %v4423_v16 }
 0xa70   :  { %4210 = vmatprep.subr.bf16.mxu0 %v5075_v1 }
 0xa72   :  { %4199 = vmatmul.mubr.msk.bf16.vlgmr.msra.gmra.mrb[40].mxu0 %vm275_vm1, %v5404_v11 }
 0xa73   :  { %4211 = vmatpush3.bf16.msra.mxu0 %v4424_v33  ;;  %4214 = vmatprep.mubr.msk.bf16.mxu0 %vm5076_vm0, %v5075_v1 }
 0xa74   :  { %4212 = vmatprep.subr.bf16.mxu0 %v5075_v1 }
 0xa77   :  { %4213 = vmatpush3.bf16.msra.mxu0 %v4426_v48 }
 0xa78   :  { %4226 = vmatprep.subr.bf16.mxu0 %v5075_v1 }
 0xa7a   :  { %4215 = vmatmul.mubr.msk.bf16.vlgmr.msra.gmra.mrb[44].mxu0 %vm275_vm1, %v5404_v11 }
 0xa7b   :  { %4227 = vmatpush3.bf16.msra.mxu0 %v5639_v53  ;;  %4230 = vmatprep.mubr.msk.bf16.mxu0 %vm5076_vm0, %v5075_v1 }
 0xa7c   :  { %4228 = vmatprep.subr.bf16.mxu0 %v5075_v1 }
 0xa7f   :  { %4229 = vmatpush3.bf16.msra.mxu0 %v5646_v54 }
 0xa80   :  { %4242 = vmatprep.subr.bf16.mxu0 %v5075_v1 }
 0xa82   :  { %4231 = vmatmul.mubr.bf16.vlgmr.msra.gmra.mrb[48].mxu0 %v5078_v45 }
 0xa83   :  { %4243 = vmatpush3.bf16.msra.mxu0 %v5639_v53  ;;  %4246 = vmatprep.mubr.msk.bf16.mxu0 %vm5076_vm0, %v5075_v1 }
 0xa84   :  { %4244 = vmatprep.subr.bf16.mxu0 %v5075_v1 }
 0xa87   :  { %4245 = vmatpush3.bf16.msra.mxu0 %v5646_v54 }
 0xa88   :  { %4258 = vmatprep.subr.bf16.mxu0 %v5075_v1 }
 0xb38   :  { %v1334_v14 = vpop.f32.mrb[32].mxu1 }
 0xb39   :  { %v4178_v15 = vpop.f32.mrb[33].mxu1 }
 0xb3a   :  { %v1337_v17 = vpop.f32.mrb[34].mxu1  ;;  %v3895_v15 = vld [vmem:[#allocation22] ss:$0 sm:$0xff] }
 0xb3b   :  { %v4179_v18 = vpop.f32.mrb[35].mxu1 }
 0xb3c   :  { %v1382_v19 = vpop.f32.mrb[36].mxu0 }
 0xb3d   :  { %v4400_v20 = vpack.i.bf16 %v1382_v19, %v1334_v14  ;;  %v4184_v21 = vpop.f32.mrb[37].mxu0 }
 0xb3e   :  { %v1385_v22 = vpop.f32.mrb[38].mxu0 }
 0xb3f   :  { %4401 = vrot.lane.b32.xlu0 %v4400_v20, %s5083_s6  ;;  %v4185_v24 = vpop.f32.mrb[39].mxu0 }
 0xb40   :  { %v3902_v24 = vld [vmem:[%s6325_s17] ss:$0 sm:$0xff]  ;;  %s5084_s17 = smov 32  }
 0xb45   :  { %v1551_v11 = vpop.f32.mrb[40].mxu0 }
 0xb46   :  { %v4200_v55 = vpop.f32.mrb[41].mxu0 }
 0xb47   :  { %v1554_v56 = vpop.f32.mrb[42].mxu0 }
 0xb48   :  { %v4201_v57 = vpop.f32.mrb[43].mxu0 }
 0xb4d   :  { %v1669_v42 = vpop.f32.mrb[44].mxu0 }
 0xb4e   :  { %v4216_v4 = vpop.f32.mrb[45].mxu0 }
 0xb4f   :  { %v1672_v5 = vpop.f32.mrb[46].mxu0 }
 0xb50   :  { %v4217_v6 = vpop.f32.mrb[47].mxu0 }
 0xb55   :  { %v1796_v7 = vpop.f32.mrb[48].mxu0 }
 0xb56   :  { %v4232_v8 = vpop.f32.mrb[49].mxu0  ;;  %v1803_v14 = vrot.slane %v1796_v7, 1 }
 0xb57   :  { %v1799_v23 = vpop.f32.mrb[50].mxu0 }
 0xb58   :  { %v4233_v28 = vpop.f32.mrb[51].mxu0 }
 0xb59   :  { %v5085_v28 = vmov 7  }
 0xb5a   :  { %4406 = vset.pattern.permute.xlu0 %v5085_v28 }
 0xbb1   :  { %v4402_v32 = vpop.permute.xlu0 %4401 }
 0xbb2   :  { %v4404_v37 = vunpack.i.h.bf16 %v4402_v32  ;;  %v4403_v38 = vunpack.i.l.bf16 %v4402_v32 }
 0xbb4   :  { %v1419_v49 = vsel %vm1417_vm9, %v1416_v47, %v4404_v37  ;;  %v1418_v50 = vsel %vm1417_vm9, %v1415_v46, %v4403_v38 }
 0xbb5   :  { %v1420_v51 = vpack.c.bf16 %v1419_v49, %v1418_v50 }
 0xbb7   :  { %4191 = vmatmul.mubr.msk.bf16.vlgmr.msra.gmra.mrb[36].mxu1 %vm275_vm1, %v1420_v51 }
 0xbb8   :  { %4206 = vmatprep.mubr.msk.bf16.mxu1 %vm5076_vm0, %v5075_v1  ;;  %4203 = vmatpush3.bf16.msra.mxu1 %v4425_v52 }
 0xbb9   :  { %4204 = vmatprep.subr.bf16.mxu1 %v5075_v1 }
 0xbbc   :  { %4205 = vmatpush3.bf16.msra.mxu1 %v4427_v41 }
 0xbbd   :  { %4218 = vmatprep.subr.bf16.mxu1 %v5075_v1 }
 0xc8a   :  { %v1481_v61 = vpop.f32.mrb[36].mxu1 }
 0xc8b   :  { %v4192_v62 = vpop.f32.mrb[37].mxu1  ;;  %v1482_v60 = vadd.f32 %v3885_v58, %v1481_v61 }
 0xc8c   :  { %v1484_v59 = vpop.f32.mrb[38].mxu1 }
 0xc8d   :  { %v1485_v63 = vadd.f32 %v3885_v58, %v1484_v59  ;;  %v4193_v0 = vpop.f32.mrb[39].mxu1 }
 0xc8f   :  { %v1488_v3 = vpack.c.bf16 %v1485_v63, %v1482_v60 }
 0xc91   :  { %4207 = vmatmul.mubr.msk.bf16.vlgmr.msra.gmra.mrb[40].mxu1 %vm275_vm1, %v1488_v3 }
 0xc92   :  { %4219 = vmatpush3.bf16.msra.mxu1 %v4429_v2  ;;  %4222 = vmatprep.mubr.msk.bf16.mxu1 %vm5076_vm0, %v5075_v1 }
 0xc93   :  { %4220 = vmatprep.subr.bf16.mxu1 %v5075_v1 }
 0xc96   :  { %4221 = vmatpush3.bf16.msra.mxu1 %v4431_v44 }
 0xc97   :  { %4234 = vmatprep.subr.bf16.mxu1 %v5075_v1 }
 0xc99   :  { %4223 = vmatmul.mubr.msk.bf16.vlgmr.msra.gmra.mrb[44].mxu1 %vm275_vm1, %v1488_v3 }
 0xc9a   :  { %4235 = vmatpush3.bf16.msra.mxu1 %v5666_v35  ;;  %4238 = vmatprep.mubr.msk.bf16.mxu1 %vm5076_vm0, %v5075_v1 }
 0xc9b   :  { %4236 = vmatprep.subr.bf16.mxu1 %v5075_v1 }
 0xc9e   :  { %4237 = vmatpush3.bf16.msra.mxu1 %v5674_v40 }
 0xc9f   :  { %4250 = vmatprep.subr.bf16.mxu1 %v5075_v1 }
 0xca1   :  { %4239 = vmatmul.mubr.bf16.vlgmr.msra.gmra.mrb[48].mxu1 %v5078_v45 }
 0xca2   :  { %4251 = vmatpush3.bf16.msra.mxu1 %v5666_v35  ;;  %4254 = vmatprep.mubr.msk.bf16.mxu1 %vm5076_vm0, %v5075_v1 }
 0xca3   :  { %4252 = vmatprep.subr.bf16.mxu1 %v5075_v1 }
 0xca6   :  { %4253 = vmatpush3.bf16.msra.mxu1 %v5674_v40 }
 0xca7   :  { %4266 = vmatprep.subr.bf16.mxu1 %v5075_v1 }
 0xd64   :  { %v1607_v9 = vpop.f32.mrb[40].mxu1 }
 0xd65   :  { %v1608_v39 = vadd.f32 %v1607_v9, %v1551_v11  ;;  %v4208_v43 = vpop.f32.mrb[41].mxu1 }
 0xd66   :  { %v1610_v10 = vpop.f32.mrb[42].mxu1 }
 0xd67   :  { %v1611_v12 = vadd.f32 %v1610_v10, %v1554_v56  ;;  %v4209_v13 = vpop.f32.mrb[43].mxu1  ;;  %v5694_v26 = vadd.f32 %v3895_v15, %v1608_v39 }
 0xd69   :  { %v5688_v16 = vadd.f32 %v3895_v15, %v1611_v12  ;;  %v1806_v46 = vadd.f32 %v1796_v7, %v5694_v26 }
 0xd6b   :  { %v1807_v17 = vadd.f32 %v1803_v14, %v5688_v16  ;;  %v3905_v11 = vmul.f32 -1.442695, %v1806_v46 }
 0xd6c   :  { %v1722_v18 = vpop.f32.mrb[44].mxu1 }
 0xd6d   :  { %v1723_v19 = vadd.f32 %v1722_v18, %v1669_v42  ;;  %v4224_v20 = vpop.f32.mrb[45].mxu1  ;;  %4466 = vtanh.f32 %v1807_v17  ;;  %v3906_v52 = vmul.f32 -1.442695, %v1807_v17 }
 0xd6e   :  { %v1725_v21 = vpop.f32.mrb[46].mxu1 }
 0xd6f   :  { %v1726_v33 = vadd.f32 %v1725_v21, %v1672_v5  ;;  %v4225_v22 = vpop.f32.mrb[47].mxu1  ;;  %v5696_v27 = vadd.f32 %v3902_v24, %v1723_v19 }
 0xd71   :  { %v5699_v38 = vadd.f32 %v3902_v24, %v1726_v33 }
 0xd74   :  { %v1902_v25 = vpop.f32.mrb[48].mxu1 }
 0xd75   :  { %v1909_v29 = vrot.slane %v1902_v25, 1  ;;  %v4240_v30 = vpop.f32.mrb[49].mxu1  ;;  %v1910_v31 = vrot.slane %v1902_v25, 2 }
 0xd76   :  { %v1905_v32 = vpop.f32.mrb[50].mxu1 }
 0xd77   :  { %v1913_v34 = vadd.f32 %v1909_v29, %v5696_v27  ;;  %v4241_v36 = vpop.f32.mrb[51].mxu1  ;;  %v4467_v37 = vpop.eup %4466  ;;  %v1914_v47 = vadd.f32 %v1910_v31, %v5699_v38  ;;  %v249_v29 = vld [vmem:[#allocation5] sm:$0x3] }
 0xd78   :  { %1828 = vrot.lane.b32.xlu1 %v4467_v37, %s5062_s1  ;;  %vm1746_vm11 = vcmp.gt.f32.partialorder %v249_v29, 0.5 }
 0xd79   :  { %4468 = vtanh.f32 %v1913_v34  ;;  %v3909_v48 = vmul.f32 -1.442695, %v1913_v34  ;;  %v3910_v55 = vmul.f32 -1.442695, %v1914_v47  ;;  %v5721_v32 = vsel %vm1746_vm11, 1, %v5078_v45 }
 0xd7a   :  { %4470 = vtanh.f32 %v1806_v46 }
 0xd7b   :  { %4472 = vtanh.f32 %v1914_v47 }
 0xd7c   :  { %4474 = vpow2.f32 %v3906_v52 }
 0xd7d   :  { %4476 = vpow2.f32 %v3909_v48 }
 0xd7e   :  { %4478 = vpow2.f32 %v3905_v11 }
 0xd7f   :  { %4480 = vpow2.f32 %v3910_v55 }
 0xd83   :  { %v4469_v49 = vpop.eup %4468 }
 0xd84   :  { %1933 = vrot.lane.b32.xlu0 %v4469_v49, %s5062_s1  ;;  %v4471_v50 = vpop.eup %4470 }
 0xd85   :  { %v4473_v51 = vpop.eup %4472 }
 0xd86   :  { %1935 = vrot.lane.b32.xlu1 %v4473_v51, %s5062_s1  ;;  %v4475_v41 = vpop.eup %4474 }
 0xd87   :  { %v1815_v56 = vadd.f32 1.0, %v4475_v41  ;;  %v4477_v57 = vpop.eup %4476 }
 0xd88   :  { %1826 = vrot.lane.b32.xlu0 %v4471_v50, %s5062_s1  ;;  %v1921_v58 = vadd.f32 1.0, %v4477_v57  ;;  %v4479_v61 = vpop.eup %4478 }
 0xd89   :  { %4482 = vrcp.f32 %v1815_v56  ;;  %v4481_v62 = vpop.eup %4480  ;;  %v1814_v63 = vadd.f32 1.0, %v4479_v61 }
 0xd8a   :  { %4484 = vrcp.f32 %v1921_v58  ;;  %v1922_v2 = vadd.f32 1.0, %v4481_v62 }
 0xd8b   :  { %4486 = vrcp.f32 %v1814_v63 }
 0xd8c   :  { %4488 = vrcp.f32 %v1922_v2 }
 0xd93   :  { %v5707_v59 = vpop.eup %4482 }
 0xd94   :  { %v4485_v3 = vpop.eup %4484  ;;  %v1823_v9 = vmul.f32 0.0, %v5707_v59 }
 0xd95   :  { %v4487_v4 = vpop.eup %4486  ;;  %v1929_v10 = vmul.f32 0.0, %v4485_v3 }
 0xd96   :  { %v4489_v6 = vpop.eup %4488  ;;  %v1822_v15 = vmul.f32 0.0, %v4487_v4 }
 0xd97   :  { %v1930_v17 = vmul.f32 0.0, %v4489_v6 }
 0xdea   :  { %v1829_v60 = vpop.permute.xlu1 %1828 }
 0xdeb   :  { %v1833_v0 = vmul.f32 %v5707_v59, %v1829_v60 }
 0xded   :  { %1838 = vrot.lane.b32.xlu1 %v1833_v0, %s5084_s17 }
 0xdf6   :  { %v1934_v44 = vpop.permute.xlu0 %1933 }
 0xdf7   :  { %v1939_v42 = vmul.f32 %v4485_v3, %v1934_v44 }
 0xdf8   :  { %v1936_v7 = vpop.permute.xlu1 %1935 }
 0xdf9   :  { %1943 = vrot.lane.b32.xlu0 %v1939_v42, %s5084_s17  ;;  %v1940_v23 = vmul.f32 %v4489_v6, %v1936_v7 }
 0xdfa   :  { %v1827_v5 = vpop.permute.xlu0 %1826 }
 0xdfb   :  { %v1832_v8 = vmul.f32 %v4487_v4, %v1827_v5  ;;  %1945 = vrot.lane.b32.xlu1 %v1940_v23, %s5084_s17 }
 0xdfd   :  { %1836 = vrot.lane.b32.xlu0 %v1832_v8, %s5084_s17 }
 0xe5f   :  { %v1839_v39 = vpop.permute.xlu1 %1838 }
 0xe60   :  { %v1843_v43 = vadd.f32 %v1839_v39, %v1823_v9 }
 0xe62   :  { %4490 = vtanh.f32 %v1843_v43  ;;  %v1979_v34 = vrot.slane %v1843_v43, 7 }
 0xe6b   :  { %v1944_v12 = vpop.permute.xlu0 %1943 }
 0xe6c   :  { %v1949_v13 = vadd.f32 %v1944_v12, %v1929_v10  ;;  %v4491_v14 = vpop.eup %4490 }
 0xe6d   :  { %1850 = vrot.lane.b32.xlu1 %v4491_v14, %s5062_s1  ;;  %v1946_v19 = vpop.permute.xlu1 %1945 }
 0xe6e   :  { %4492 = vtanh.f32 %v1949_v13  ;;  %v2000_v21 = vrot.slane %v1949_v13, 7  ;;  %v1950_v33 = vadd.f32 %v1946_v19, %v1930_v17 }
 0xe6f   :  { %v1837_v18 = vpop.permute.xlu0 %1836 }
 0xe70   :  { %v1842_v20 = vadd.f32 %v1837_v18, %v1822_v15  ;;  %v2001_v22 = vrot.slane %v1950_v33, 6 }
 0xe72   :  { %4494 = vtanh.f32 %v1842_v20  ;;  %v2002_v24 = vsel %vm1971_vm10, %v2001_v22, %v2000_v21  ;;  %v1980_v36 = vsel %vm1971_vm10, %v1979_v34, %v1842_v20 }
 0xe73   :  { %4496 = vtanh.f32 %v1950_v33 }
 0xe78   :  { %v4493_v25 = vpop.eup %4492 }
 0xe79   :  { %1955 = vrot.lane.b32.xlu0 %v4493_v25, %s5062_s1 }
 0xe7c   :  { %v4495_v30 = vpop.eup %4494 }
 0xe7d   :  { %v4497_v31 = vpop.eup %4496  ;;  %1848 = vrot.lane.b32.xlu0 %v4495_v30, %s5062_s1 }
 0xe7e   :  { %1957 = vrot.lane.b32.xlu1 %v4497_v31, %s5062_s1 }
 0xe81   :  { %1986 = vperm.xlu0 %4406, %v5721_v32  }
 0xe82   :  { %1965 = vperm.xlu1 %4405, %v5721_v32  }
 0xe85   :  { %1981 = vrot.lane.b32.xlu0 %v1980_v36, %s5086_s14 }
 0xedf   :  { %v1851_v37 = vpop.permute.xlu1 %1850 }
 0xee0   :  { %v1855_v47 = vmul.f32 %v5707_v59, %v1851_v37 }
 0xee2   :  { %v1970_v51 = vrot.slane %v1855_v47, 7 }
 0xeeb   :  { %v1956_v46 = vpop.permute.xlu0 %1955 }
 0xeec   :  { %v1961_v49 = vmul.f32 %v4485_v3, %v1956_v46 }
 0xeee   :  { %v1991_v41 = vrot.slane %v1961_v49, 7 }
 0xeef   :  { %v1849_v50 = vpop.permute.xlu0 %1848 }
 0xef0   :  { %v1958_v52 = vpop.permute.xlu1 %1957  ;;  %v1854_v45 = vmul.f32 %v4487_v4, %v1849_v50 }
 0xef1   :  { %v1962_v48 = vmul.f32 %v4489_v6, %v1958_v52 }
 0xef2   :  { %v1972_v11 = vsel %vm1971_vm10, %v1970_v51, %v1854_v45 }
 0xef3   :  { %v1992_v55 = vrot.slane %v1962_v48, 6  ;;  %1973 = vrot.lane.b32.xlu1 %v1972_v11, %s5084_s17 }
 0xef5   :  { %v1993_v56 = vsel %vm1971_vm10, %v1992_v55, %v1991_v41 }
 0xef7   :  { %1994 = vrot.lane.b32.xlu1 %v1993_v56, %s5084_s17 }
 0xefb   :  { %2003 = vrot.lane.b32.xlu1 %v2002_v24, %s5086_s14 }
 0xf00   :  { %v5736_v61 = vpop.permute.xlu0 %1986 }
 0xf01   :  { %v5733_v57 = vpop.permute.xlu1 %1965  ;;  %vm1988_vm13 = vcmp.eq.s32.totalorder %v5736_v61, 1 }
 0xf02   :  { %vm1967_vm12 = vcmp.eq.s32.totalorder %v5733_v57, 1 }
 0xf04   :  { %v1982_v13 = vpop.permute.xlu0 %1981 }
 0xf05   :  { %v5772_v17 = vsel %vm1967_vm12, %v1982_v13, 0.0 }
 0xf06   :  { %v2074_v21 = vrot.slane %v5772_v17, 7 }
 0xf65   :  { %v1974_v58 = vpop.permute.xlu1 %1973 }
 0xf66   :  { %v5740_v62 = vsel %vm1967_vm12, %v1974_v58, 0.0 }
 0xf67   :  { %v2009_v59 = vpack.c.bf16 %v5740_v62, %v5740_v62 }
 0xf69   :  { %4247 = vmatmul.mubr.msk.bf16.vlgmr.msra.gmra.mrb[52].mxu0 %vm275_vm1, %v2009_v59  ;;  %v1995_v60 = vpop.permute.xlu1 %1994 }
 0xf6a   :  { %v5748_v63 = vsel %vm1988_vm13, %v1995_v60, 0.0  ;;  %4259 = vmatpush3.bf16.msra.mxu0 %v5639_v53  ;;  %4262 = vmatprep.mubr.msk.bf16.mxu0 %vm5076_vm0, %v5075_v1 }
 0xf6b   :  { %v2115_v0 = vpack.c.bf16 %v5748_v63, %v5748_v63  ;;  %4260 = vmatprep.subr.bf16.mxu0 %v5075_v1 }
 0xf6d   :  { %4255 = vmatmul.mubr.msk.bf16.vlgmr.msra.gmra.mrb[52].mxu1 %vm275_vm1, %v2115_v0  ;;  %v2004_v18 = vpop.permute.xlu1 %2003 }
 0xf6e   :  { %4267 = vmatpush3.bf16.msra.mxu1 %v5666_v35  ;;  %4261 = vmatpush3.bf16.msra.mxu0 %v5646_v54  ;;  %v5778_v20 = vsel %vm1988_vm13, %v2004_v18, 0.0 }
 0xf6f   :  { %4268 = vmatprep.subr.bf16.mxu1 %v5075_v1  ;;  %4270 = vmatprep.mubr.msk.bf16.mxu1 %vm5076_vm0, %v5075_v1  ;;  %v2181_v33 = vrot.slane %v5778_v20, 2  ;;  %v2182_v22 = vrot.slane %v5778_v20, 3 }
 0xf70   :  { %4274 = vmatprep.subr.bf16.mxu0 %v5075_v1 }
 0xf72   :  { %4269 = vmatpush3.bf16.msra.mxu1 %v5674_v40 }
 0xf73   :  { %4282 = vmatprep.subr.bf16.mxu1 %v5075_v1 }
0x103c   :  { %v2047_v2 = vpop.f32.mrb[52].mxu0 }
0x103d   :  { %v2054_v3 = vrot.slane %v2047_v2, 7  ;;  %v4248_v44 = vpop.f32.mrb[53].mxu0  ;;  %v2058_v10 = vadd.f32 %v2047_v2, %v5688_v16  ;;  %v5087_v2 = vmov 1  }
0x103e   :  { %v2050_v42 = vpop.f32.mrb[54].mxu0  ;;  %4407 = vset.pattern.permute.xlu0 %v5087_v2 }
0x103f   :  { %v2057_v4 = vadd.f32 %v2054_v3, %v5694_v26  ;;  %v4249_v5 = vpop.f32.mrb[55].mxu0  ;;  %v3913_v30 = vmul.f32 -1.442695, %v2058_v10  ;;  %v5088_v3 = vmov 6  }
0x1040   :  { %v2153_v6 = vpop.f32.mrb[52].mxu1  ;;  %4408 = vset.pattern.permute.xlu1 %v5088_v3 }
0x1041   :  { %v2160_v7 = vrot.slane %v2153_v6, 2  ;;  %v2161_v8 = vrot.slane %v2153_v6, 3  ;;  %v4256_v23 = vpop.f32.mrb[53].mxu1  ;;  %4498 = vtanh.f32 %v2057_v4  ;;  %v3912_v24 = vmul.f32 -1.442695, %v2057_v4 }
0x1042   :  { %v2156_v28 = vpop.f32.mrb[54].mxu1 }
0x1043   :  { %v2164_v9 = vadd.f32 %v2160_v7, %v5696_v27  ;;  %v2165_v39 = vadd.f32 %v2161_v8, %v5699_v38  ;;  %v4257_v43 = vpop.f32.mrb[55].mxu1 }
0x1045   :  { %4500 = vtanh.f32 %v2164_v9  ;;  %v3915_v25 = vmul.f32 -1.442695, %v2164_v9  ;;  %v3916_v29 = vmul.f32 -1.442695, %v2165_v39 }
0x1046   :  { %4502 = vtanh.f32 %v2165_v39 }
0x1047   :  { %4504 = vtanh.f32 %v2058_v10 }
0x1048   :  { %4506 = vpow2.f32 %v3912_v24 }
0x1049   :  { %4508 = vpow2.f32 %v3915_v25 }
0x104a   :  { %4510 = vpow2.f32 %v3916_v29 }
0x104b   :  { %v4499_v12 = vpop.eup %4498  ;;  %4512 = vpow2.f32 %v3913_v30 }
0x104c   :  { %2085 = vrot.lane.b32.xlu0 %v4499_v12, %s5062_s1 }
0x104f   :  { %v4501_v14 = vpop.eup %4500 }
0x1050   :  { %v4503_v15 = vpop.eup %4502  ;;  %2193 = vrot.lane.b32.xlu1 %v4501_v14, %s5062_s1 }
0x1051   :  { %2195 = vrot.lane.b32.xlu0 %v4503_v15, %s5062_s1  ;;  %v4505_v19 = vpop.eup %4504 }
0x1052   :  { %v4507_v31 = vpop.eup %4506 }
0x1053   :  { %v4509_v34 = vpop.eup %4508  ;;  %v2065_v36 = vadd.f32 1.0, %v4507_v31 }
0x1054   :  { %2087 = vrot.lane.b32.xlu1 %v4505_v19, %s5062_s1  ;;  %v4511_v37 = vpop.eup %4510  ;;  %v2172_v46 = vadd.f32 1.0, %v4509_v34 }
0x1055   :  { %2075 = vrot.lane.b32.xlu0 %v2074_v21, %s5084_s17  ;;  %v4513_v47 = vpop.eup %4512  ;;  %4514 = vrcp.f32 %v2065_v36  ;;  %v2173_v49 = vadd.f32 1.0, %v4511_v37 }
0x1056   :  { %v2066_v50 = vadd.f32 1.0, %v4513_v47  ;;  %4516 = vrcp.f32 %v2172_v46 }
0x1057   :  { %4518 = vrcp.f32 %v2173_v49 }
0x1058   :  { %2183 = vrot.lane.b32.xlu1 %v2181_v33, %s5084_s17  ;;  %4520 = vrcp.f32 %v2066_v50 }
0x1059   :  { %2185 = vrot.lane.b32.xlu0 %v2182_v22, %s5084_s17 }
0x105c   :  { %2077 = vrot.lane.b32.xlu1 %v5772_v17, %s5084_s17 }
0x105f   :  { %v4515_v51 = vpop.eup %4514 }
0x1060   :  { %v4517_v48 = vpop.eup %4516 }
0x1061   :  { %v4519_v11 = vpop.eup %4518 }
0x1062   :  { %v4521_v59 = vpop.eup %4520 }
0x10be   :  { %v2086_v52 = vpop.permute.xlu0 %2085 }
0x10bf   :  { %v2091_v45 = vmul.f32 %v4515_v51, %v2086_v52 }
0x10c1   :  { %2095 = vrot.lane.b32.xlu0 %v2091_v45, %s5084_s17 }
0x10c2   :  { %v2194_v41 = vpop.permute.xlu1 %2193 }
0x10c3   :  { %v2199_v55 = vmul.f32 %v4517_v48, %v2194_v41  ;;  %v2196_v56 = vpop.permute.xlu0 %2195 }
0x10c4   :  { %v2200_v58 = vmul.f32 %v4519_v11, %v2196_v56 }
0x10c5   :  { %2203 = vrot.lane.b32.xlu1 %v2199_v55, %s5084_s17 }
0x10c6   :  { %2205 = vrot.lane.b32.xlu0 %v2200_v58, %s5084_s17  ;;  %v2088_v60 = vpop.permute.xlu1 %2087 }
0x10c7   :  { %v2092_v0 = vmul.f32 %v4521_v59, %v2088_v60  ;;  %v2076_v44 = vpop.permute.xlu0 %2075 }
0x10c8   :  { %v2081_v5 = vmul.f32 %v4515_v51, %v2076_v44 }
0x10c9   :  { %2097 = vrot.lane.b32.xlu1 %v2092_v0, %s5084_s17 }
0x10ca   :  { %v2184_v42 = vpop.permute.xlu1 %2183 }
0x10cb   :  { %v2186_v4 = vpop.permute.xlu0 %2185  ;;  %v2189_v23 = vmul.f32 %v4517_v48, %v2184_v42 }
0x10cc   :  { %v2190_v28 = vmul.f32 %v4519_v11, %v2186_v4 }
0x10ce   :  { %v2078_v6 = vpop.permute.xlu1 %2077 }
0x10cf   :  { %v2082_v12 = vmul.f32 %v4521_v59, %v2078_v6 }
0x1133   :  { %v2096_v7 = vpop.permute.xlu0 %2095 }
0x1134   :  { %v2101_v8 = vadd.f32 %v2096_v7, %v2081_v5 }
0x1136   :  { %4522 = vtanh.f32 %v2101_v8  ;;  %v2237_v18 = vrot.slane %v2101_v8, 1 }
0x1137   :  { %v2204_v9 = vpop.permute.xlu1 %2203 }
0x1138   :  { %v2209_v39 = vadd.f32 %v2204_v9, %v2189_v23  ;;  %v2206_v43 = vpop.permute.xlu0 %2205 }
0x1139   :  { %v2210_v10 = vadd.f32 %v2206_v43, %v2190_v28 }
0x113a   :  { %4524 = vtanh.f32 %v2209_v39  ;;  %v2258_v13 = vrot.slane %v2209_v39, 6 }
0x113b   :  { %4526 = vtanh.f32 %v2210_v10  ;;  %v2259_v14 = vrot.slane %v2210_v10, 5  ;;  %v2098_v15 = vpop.permute.xlu1 %2097 }
0x113c   :  { %v2102_v19 = vadd.f32 %v2098_v15, %v2082_v12 }
0x113d   :  { %v2260_v21 = vsel %vm1971_vm10, %v2259_v14, %v2258_v13 }
0x113e   :  { %4528 = vtanh.f32 %v2102_v19  ;;  %v2238_v33 = vsel %vm1971_vm10, %v2102_v19, %v2237_v18 }
0x1140   :  { %v4523_v22 = vpop.eup %4522 }
0x1141   :  { %2107 = vrot.lane.b32.xlu0 %v4523_v22, %s5062_s1 }
0x1144   :  { %v4525_v24 = vpop.eup %4524 }
0x1145   :  { %v4527_v25 = vpop.eup %4526  ;;  %2215 = vrot.lane.b32.xlu1 %v4525_v24, %s5062_s1 }
0x1146   :  { %2217 = vrot.lane.b32.xlu0 %v4527_v25, %s5062_s1 }
0x1148   :  { %v4529_v29 = vpop.eup %4528 }
0x1149   :  { %2109 = vrot.lane.b32.xlu1 %v4529_v29, %s5062_s1 }
0x114a   :  { %2224 = vperm.xlu0 %4407, %v5721_v32  }
0x114d   :  { %2244 = vperm.xlu1 %4408, %v5721_v32  }
0x11b3   :  { %v2108_v30 = vpop.permute.xlu0 %2107 }
0x11b4   :  { %v2113_v34 = vmul.f32 %v4515_v51, %v2108_v30 }
0x11b6   :  { %v2229_v52 = vrot.slane %v2113_v34, 1 }
0x11b7   :  { %v2216_v31 = vpop.permute.xlu1 %2215 }
0x11b8   :  { %v2221_v36 = vmul.f32 %v4517_v48, %v2216_v31  ;;  %v2218_v37 = vpop.permute.xlu0 %2217 }
0x11b9   :  { %v2222_v46 = vmul.f32 %v4519_v11, %v2218_v37 }
0x11ba   :  { %v2249_v47 = vrot.slane %v2221_v36, 6 }
0x11bb   :  { %v2250_v49 = vrot.slane %v2222_v46, 5  ;;  %v2110_v50 = vpop.permute.xlu1 %2109 }
0x11bc   :  { %v2114_v45 = vmul.f32 %v4521_v59, %v2110_v50 }
0x11bd   :  { %v2251_v41 = vsel %vm1971_vm10, %v2250_v49, %v2249_v47 }
0x11be   :  { %2252 = vrot.lane.b32.xlu0 %v2251_v41, %s5084_s17  ;;  %v2230_v55 = vsel %vm1971_vm10, %v2114_v45, %v2229_v52 }
0x11bf   :  { %2231 = vrot.lane.b32.xlu1 %v2230_v55, %s5084_s17 }
0x11c2   :  { %2261 = vrot.lane.b32.xlu0 %v2260_v21, %s5086_s14 }
0x11c3   :  { %2239 = vrot.lane.b32.xlu1 %v2238_v33, %s5086_s14 }
0x11c9   :  { %v5807_v51 = vpop.permute.xlu0 %2224 }
0x11ca   :  { %vm2226_vm15 = vcmp.eq.s32.totalorder %v5807_v51, 1 }
0x11cc   :  { %v5809_v48 = vpop.permute.xlu1 %2244 }
0x11cd   :  { %vm2246_vm14 = vcmp.eq.s32.totalorder %v5809_v48, 1 }
0x1230   :  { %v5813_v11 = vpop.permute.xlu0 %2252 }
0x1231   :  { %v5819_v56 = vsel %vm2246_vm14, %v5813_v11, %v5748_v63  ;;  %v5821_v58 = vpop.permute.xlu1 %2231 }
0x1232   :  { %v2377_v59 = vpack.c.bf16 %v5819_v56, %v5819_v56  ;;  %v5829_v60 = vsel %vm2226_vm15, %v5821_v58, %v5740_v62 }
0x1233   :  { %v2269_v0 = vpack.c.bf16 %v5829_v60, %v5829_v60 }
0x1234   :  { %4271 = vmatmul.mubr.msk.bf16.vlgmr.msra.gmra.mrb[56].mxu1 %vm275_vm1, %v2377_v59  ;;  %v2262_v33 = vpop.permute.xlu0 %2261 }
0x1235   :  { %4263 = vmatmul.mubr.msk.bf16.vlgmr.msra.gmra.mrb[56].mxu0 %vm275_vm1, %v2269_v0  ;;  %4283 = vmatpush3.bf16.msra.mxu1 %v5666_v35  ;;  %v2240_v15 = vpop.permute.xlu1 %2239  ;;  %v5864_v24 = vsel %vm2246_vm14, %v2262_v33, %v5778_v20 }
0x1236   :  { %4275 = vmatpush3.bf16.msra.mxu0 %v5639_v53  ;;  %4278 = vmatprep.mubr.msk.bf16.mxu0 %vm5076_vm0, %v5075_v1  ;;  %v5856_v19 = vsel %vm2226_vm15, %v2240_v15, %v5772_v17  ;;  %v2443_v17 = vrot.slane %v5864_v24, 3  ;;  %v2444_v29 = vrot.slane %v5864_v24, 4 }
0x1237   :  { %4276 = vmatprep.subr.bf16.mxu0 %v5075_v1  ;;  %4284 = vmatprep.subr.bf16.mxu1 %v5075_v1  ;;  %v2335_v22 = vrot.slane %v5856_v19, 6  ;;  %v2336_v25 = vrot.slane %v5856_v19, 7 }
0x1238   :  { %4286 = vmatprep.mubr.msk.bf16.mxu1 %vm5076_vm0, %v5075_v1 }
0x1239   :  { %4285 = vmatpush3.bf16.msra.mxu1 %v5674_v40 }
0x123a   :  { %4277 = vmatpush3.bf16.msra.mxu0 %v5646_v54  ;;  %4298 = vmatprep.subr.bf16.mxu1 %v5075_v1 }
0x123b   :  { %4290 = vmatprep.subr.bf16.mxu0 %v5075_v1 }
0x1307   :  { %v2415_v2 = vpop.f32.mrb[56].mxu1 }
0x1308   :  { %v4272_v3 = vpop.f32.mrb[57].mxu1  ;;  %v2307_v44 = vpop.f32.mrb[56].mxu0  ;;  %v2422_v28 = vrot.slane %v2415_v2, 3  ;;  %v2423_v39 = vrot.slane %v2415_v2, 4 }
0x1309   :  { %v2418_v42 = vpop.f32.mrb[58].mxu1  ;;  %v4264_v4 = vpop.f32.mrb[57].mxu0  ;;  %v2314_v5 = vrot.slane %v2307_v44, 6  ;;  %v2315_v8 = vrot.slane %v2307_v44, 7 }
0x130a   :  { %v4273_v6 = vpop.f32.mrb[59].mxu1  ;;  %v2310_v7 = vpop.f32.mrb[58].mxu0  ;;  %v2426_v10 = vadd.f32 %v2422_v28, %v5696_v27  ;;  %v2427_v12 = vadd.f32 %v2423_v39, %v5699_v38 }
0x130b   :  { %v4265_v23 = vpop.f32.mrb[59].mxu0  ;;  %v2318_v9 = vadd.f32 %v2314_v5, %v5694_v26  ;;  %v2319_v43 = vadd.f32 %v2315_v8, %v5688_v16  ;;  %v5089_v8 = vmov 5  }
0x130c   :  { %v3921_v34 = vmul.f32 -1.442695, %v2426_v10  ;;  %v3922_v20 = vmul.f32 -1.442695, %v2427_v12  ;;  %4410 = vset.pattern.permute.xlu0 %v5089_v8  ;;  %v5090_v23 = vmov 2  }
0x130d   :  { %4530 = vtanh.f32 %v2318_v9  ;;  %v3918_v30 = vmul.f32 -1.442695, %v2318_v9  ;;  %v3919_v31 = vmul.f32 -1.442695, %v2319_v43  ;;  %4409 = vset.pattern.permute.xlu1 %v5090_v23 }
0x130e   :  { %4532 = vtanh.f32 %v2319_v43 }
0x130f   :  { %4534 = vtanh.f32 %v2426_v10 }
0x1310   :  { %4536 = vtanh.f32 %v2427_v12 }
0x1311   :  { %4538 = vpow2.f32 %v3918_v30 }
0x1312   :  { %4540 = vpow2.f32 %v3919_v31 }
0x1313   :  { %4542 = vpow2.f32 %v3921_v34 }
0x1314   :  { %4544 = vpow2.f32 %v3922_v20 }
0x1317   :  { %v4531_v13 = vpop.eup %4530 }
0x1318   :  { %v4533_v14 = vpop.eup %4532  ;;  %2347 = vrot.lane.b32.xlu1 %v4531_v13, %s5062_s1 }
0x1319   :  { %2349 = vrot.lane.b32.xlu0 %v4533_v14, %s5062_s1  ;;  %v4535_v18 = vpop.eup %4534 }
0x131a   :  { %v4537_v21 = vpop.eup %4536 }
0x131b   :  { %v4539_v36 = vpop.eup %4538 }
0x131c   :  { %2455 = vrot.lane.b32.xlu1 %v4535_v18, %s5062_s1  ;;  %v4541_v37 = vpop.eup %4540  ;;  %v2326_v46 = vadd.f32 1.0, %v4539_v36 }
0x131d   :  { %2457 = vrot.lane.b32.xlu0 %v4537_v21, %s5062_s1  ;;  %v4543_v47 = vpop.eup %4542  ;;  %v2327_v49 = vadd.f32 1.0, %v4541_v37 }
0x131e   :  { %v4545_v50 = vpop.eup %4544  ;;  %v2434_v52 = vadd.f32 1.0, %v4543_v47  ;;  %4546 = vrcp.f32 %v2326_v46 }
0x131f   :  { %v2435_v45 = vadd.f32 1.0, %v4545_v50  ;;  %4548 = vrcp.f32 %v2327_v49 }
0x1320   :  { %2337 = vrot.lane.b32.xlu1 %v2335_v22, %s5084_s17  ;;  %4550 = vrcp.f32 %v2434_v52 }
0x1321   :  { %2339 = vrot.lane.b32.xlu0 %v2336_v25, %s5084_s17  ;;  %4552 = vrcp.f32 %v2435_v45 }
0x1324   :  { %2445 = vrot.lane.b32.xlu1 %v2443_v17, %s5084_s17 }
0x1325   :  { %2447 = vrot.lane.b32.xlu0 %v2444_v29, %s5084_s17 }
0x1328   :  { %v4547_v41 = vpop.eup %4546 }
0x1329   :  { %v4549_v59 = vpop.eup %4548 }
0x132a   :  { %v4551_v44 = vpop.eup %4550 }
0x132b   :  { %v4553_v4 = vpop.eup %4552 }
0x138a   :  { %v2348_v55 = vpop.permute.xlu1 %2347 }
0x138b   :  { %v2350_v0 = vpop.permute.xlu0 %2349  ;;  %v2353_v2 = vmul.f32 %v4547_v41, %v2348_v55 }
0x138c   :  { %v2354_v3 = vmul.f32 %v4549_v59, %v2350_v0 }
0x138d   :  { %2357 = vrot.lane.b32.xlu1 %v2353_v2, %s5084_s17 }
0x138e   :  { %2359 = vrot.lane.b32.xlu0 %v2354_v3, %s5084_s17  ;;  %v2456_v42 = vpop.permute.xlu1 %2455 }
0x138f   :  { %v2458_v5 = vpop.permute.xlu0 %2457  ;;  %v2461_v6 = vmul.f32 %v4551_v44, %v2456_v42 }
0x1390   :  { %v2462_v7 = vmul.f32 %v4553_v4, %v2458_v5 }
0x1391   :  { %2465 = vrot.lane.b32.xlu1 %v2461_v6, %s5084_s17 }
0x1392   :  { %2467 = vrot.lane.b32.xlu0 %v2462_v7, %s5084_s17  ;;  %v2338_v28 = vpop.permute.xlu1 %2337 }
0x1393   :  { %v2340_v9 = vpop.permute.xlu0 %2339  ;;  %v2343_v10 = vmul.f32 %v4547_v41, %v2338_v28 }
0x1394   :  { %v2344_v12 = vmul.f32 %v4549_v59, %v2340_v9 }
0x1396   :  { %v2446_v39 = vpop.permute.xlu1 %2445 }
0x1397   :  { %v2448_v43 = vpop.permute.xlu0 %2447  ;;  %v2451_v21 = vmul.f32 %v4551_v44, %v2446_v39 }
0x1398   :  { %v2452_v33 = vmul.f32 %v4553_v4, %v2448_v43 }
0x13ff   :  { %v2358_v13 = vpop.permute.xlu1 %2357 }
0x1400   :  { %v2360_v14 = vpop.permute.xlu0 %2359  ;;  %v2363_v15 = vadd.f32 %v2358_v13, %v2343_v10 }
0x1401   :  { %v2364_v18 = vadd.f32 %v2360_v14, %v2344_v12 }
0x1402   :  { %4554 = vtanh.f32 %v2363_v15  ;;  %v2500_v49 = vrot.slane %v2363_v15, 2 }
0x1403   :  { %4556 = vtanh.f32 %v2364_v18  ;;  %v2466_v22 = vpop.permute.xlu1 %2465  ;;  %v2501_v47 = vrot.slane %v2364_v18, 1 }
0x1404   :  { %v2468_v25 = vpop.permute.xlu0 %2467  ;;  %v2471_v17 = vadd.f32 %v2466_v22, %v2451_v21 }
0x1405   :  { %v2472_v29 = vadd.f32 %v2468_v25, %v2452_v33  ;;  %v2502_v50 = vsel %vm1971_vm10, %v2501_v47, %v2500_v49 }
0x1406   :  { %4558 = vtanh.f32 %v2471_v17  ;;  %v2522_v30 = vrot.slane %v2471_v17, 5 }
0x1407   :  { %4560 = vtanh.f32 %v2472_v29  ;;  %v2523_v31 = vrot.slane %v2472_v29, 4 }
0x1409   :  { %v2524_v34 = vsel %vm1971_vm10, %v2523_v31, %v2522_v30 }
0x140c   :  { %v4555_v20 = vpop.eup %4554 }
0x140d   :  { %v4557_v36 = vpop.eup %4556  ;;  %2369 = vrot.lane.b32.xlu1 %v4555_v20, %s5062_s1 }
0x140e   :  { %2371 = vrot.lane.b32.xlu0 %v4557_v36, %s5062_s1 }
0x1410   :  { %v4559_v37 = vpop.eup %4558 }
0x1411   :  { %v4561_v46 = vpop.eup %4560  ;;  %2477 = vrot.lane.b32.xlu1 %v4559_v37, %s5062_s1 }
0x1412   :  { %2479 = vrot.lane.b32.xlu0 %v4561_v46, %s5062_s1 }
0x1415   :  { %2486 = vperm.xlu1 %4409, %v5721_v32  }
0x1416   :  { %2508 = vperm.xlu0 %4410, %v5721_v32  }
0x141a   :  { %2503 = vrot.lane.b32.xlu0 %v2502_v50, %s5086_s14 }
0x147f   :  { %v2370_v52 = vpop.permute.xlu1 %2369 }
0x1480   :  { %v2372_v45 = vpop.permute.xlu0 %2371  ;;  %v2375_v55 = vmul.f32 %v4547_v41, %v2370_v52 }
0x1481   :  { %v2376_v0 = vmul.f32 %v4549_v59, %v2372_v45 }
0x1482   :  { %v2491_v2 = vrot.slane %v2375_v55, 2 }
0x1483   :  { %v2492_v3 = vrot.slane %v2376_v0, 1  ;;  %v2478_v42 = vpop.permute.xlu1 %2477 }
0x1484   :  { %v2480_v5 = vpop.permute.xlu0 %2479  ;;  %v2483_v6 = vmul.f32 %v4551_v44, %v2478_v42 }
0x1485   :  { %v2484_v7 = vmul.f32 %v4553_v4, %v2480_v5  ;;  %v2493_v8 = vsel %vm1971_vm10, %v2492_v3, %v2491_v2 }
0x1486   :  { %v2513_v23 = vrot.slane %v2483_v6, 5  ;;  %2494 = vrot.lane.b32.xlu1 %v2493_v8, %s5084_s17 }
0x1487   :  { %v2514_v28 = vrot.slane %v2484_v7, 4 }
0x1489   :  { %v2515_v9 = vsel %vm1971_vm10, %v2514_v28, %v2513_v23 }
0x148a   :  { %2516 = vrot.lane.b32.xlu1 %v2515_v9, %s5084_s17 }
0x148e   :  { %2525 = vrot.lane.b32.xlu1 %v2524_v34, %s5086_s14 }
0x1494   :  { %v5891_v41 = vpop.permute.xlu1 %2486 }
0x1495   :  { %vm2488_vm2 = vcmp.eq.s32.totalorder %v5891_v41, 1  ;;  %v5896_v44 = vpop.permute.xlu0 %2508 }
0x1496   :  { %vm2510_vm3 = vcmp.eq.s32.totalorder %v5896_v44, 1 }
0x1499   :  { %v2504_v34 = vpop.permute.xlu0 %2503 }
0x149a   :  { %v5940_v36 = vsel %vm2488_vm2, %v2504_v34, %v5856_v19 }
0x149b   :  { %v2599_v47 = vrot.slane %v5940_v36, 5  ;;  %v2600_v49 = vrot.slane %v5940_v36, 6 }
0x14f8   :  { %v5894_v59 = vpop.permute.xlu1 %2494 }
0x14f9   :  { %v5902_v4 = vsel %vm2488_vm2, %v5894_v59, %v5829_v60 }
0x14fa   :  { %v2533_v39 = vpack.c.bf16 %v5902_v4, %v5902_v4 }
0x14fc   :  { %4279 = vmatmul.mubr.msk.bf16.vlgmr.msra.gmra.mrb[60].mxu0 %vm275_vm1, %v2533_v39  ;;  %v5908_v43 = vpop.permute.xlu1 %2516 }
0x14fd   :  { %v5914_v10 = vsel %vm2510_vm3, %v5908_v43, %v5819_v56  ;;  %4291 = vmatpush3.bf16.msra.mxu0 %v5639_v53  ;;  %4294 = vmatprep.mubr.msk.bf16.mxu0 %vm5076_vm0, %v5075_v1 }
0x14fe   :  { %v2641_v60 = vpack.c.bf16 %v5914_v10, %v5914_v10  ;;  %4292 = vmatprep.subr.bf16.mxu0 %v5075_v1 }
0x1500   :  { %4287 = vmatmul.mubr.msk.bf16.vlgmr.msra.gmra.mrb[60].mxu1 %vm275_vm1, %v2641_v60  ;;  %v2526_v46 = vpop.permute.xlu1 %2525 }
0x1501   :  { %4293 = vmatpush3.bf16.msra.mxu0 %v5646_v54  ;;  %4299 = vmatpush3.bf16.msra.mxu1 %v5666_v35  ;;  %v5949_v50 = vsel %vm2510_vm3, %v2526_v46, %v5864_v24 }
0x1502   :  { %4300 = vmatprep.subr.bf16.mxu1 %v5075_v1  ;;  %4302 = vmatprep.mubr.msk.bf16.mxu1 %vm5076_vm0, %v5075_v1  ;;  %v2707_v19 = vrot.slane %v5949_v50, 4  ;;  %v2708_v52 = vrot.slane %v5949_v50, 5 }
0x1503   :  { %4306 = vmatprep.subr.bf16.mxu0 %v5075_v1 }
0x1505   :  { %4301 = vmatpush3.bf16.msra.mxu1 %v5674_v40 }
0x1506   :  { %4314 = vmatprep.subr.bf16.mxu1 %v5075_v1 }
0x15cf   :  { %v2571_v53 = vpop.f32.mrb[60].mxu0 }
0x15d0   :  { %v2578_v56 = vrot.slane %v2571_v53, 5  ;;  %v2579_v12 = vrot.slane %v2571_v53, 6  ;;  %v4280_v13 = vpop.f32.mrb[61].mxu0 }
0x15d1   :  { %v2574_v14 = vpop.f32.mrb[62].mxu0 }
0x15d2   :  { %v2582_v54 = vadd.f32 %v2578_v56, %v5694_v26  ;;  %v2583_v35 = vadd.f32 %v2579_v12, %v5688_v16  ;;  %v4281_v15 = vpop.f32.mrb[63].mxu0 }
0x15d3   :  { %v2679_v18 = vpop.f32.mrb[60].mxu1 }
0x15d4   :  { %4562 = vtanh.f32 %v2582_v54  ;;  %v2686_v21 = vrot.slane %v2679_v18, 4  ;;  %v4288_v33 = vpop.f32.mrb[61].mxu1  ;;  %v2687_v22 = vrot.slane %v2679_v18, 5  ;;  %v3924_v45 = vmul.f32 -1.442695, %v2582_v54 }
0x15d5   :  { %4564 = vtanh.f32 %v2583_v35  ;;  %v2682_v25 = vpop.f32.mrb[62].mxu1  ;;  %v3925_v55 = vmul.f32 -1.442695, %v2583_v35  ;;  %v5091_v18 = vmov 4  }
0x15d6   :  { %v2690_v40 = vadd.f32 %v2686_v21, %v5696_v27  ;;  %v4289_v17 = vpop.f32.mrb[63].mxu1  ;;  %v2691_v29 = vadd.f32 %v2687_v22, %v5699_v38  ;;  %4412 = vset.pattern.permute.xlu1 %v5091_v18  ;;  %v5092_v21 = vmov 3  }
0x15d7   :  { %4411 = vset.pattern.permute.xlu0 %v5092_v21 }
0x15d8   :  { %4566 = vtanh.f32 %v2690_v40  ;;  %v3927_v0 = vmul.f32 -1.442695, %v2690_v40  ;;  %v3928_v2 = vmul.f32 -1.442695, %v2691_v29 }
0x15d9   :  { %4568 = vtanh.f32 %v2691_v29 }
0x15da   :  { %4570 = vpow2.f32 %v3924_v45 }
0x15db   :  { %4572 = vpow2.f32 %v3925_v55 }
0x15dc   :  { %4574 = vpow2.f32 %v3927_v0 }
0x15dd   :  { %4576 = vpow2.f32 %v3928_v2 }
0x15de   :  { %v4563_v30 = vpop.eup %4562 }
0x15df   :  { %v4565_v31 = vpop.eup %4564  ;;  %2611 = vrot.lane.b32.xlu0 %v4563_v30, %s5062_s1 }
0x15e0   :  { %2613 = vrot.lane.b32.xlu1 %v4565_v31, %s5062_s1 }
0x15e2   :  { %v4567_v20 = vpop.eup %4566 }
0x15e3   :  { %v4569_v37 = vpop.eup %4568  ;;  %2719 = vrot.lane.b32.xlu0 %v4567_v20, %s5062_s1 }
0x15e4   :  { %2721 = vrot.lane.b32.xlu1 %v4569_v37, %s5062_s1  ;;  %v4571_v24 = vpop.eup %4570 }
0x15e5   :  { %v4573_v3 = vpop.eup %4572  ;;  %v2590_v42 = vadd.f32 1.0, %v4571_v24 }
0x15e6   :  { %v4575_v5 = vpop.eup %4574  ;;  %v2591_v6 = vadd.f32 1.0, %v4573_v3 }
0x15e7   :  { %2601 = vrot.lane.b32.xlu0 %v2599_v47, %s5084_s17  ;;  %v4577_v7 = vpop.eup %4576  ;;  %4578 = vrcp.f32 %v2590_v42  ;;  %v2698_v8 = vadd.f32 1.0, %v4575_v5 }
0x15e8   :  { %2603 = vrot.lane.b32.xlu1 %v2600_v49, %s5084_s17  ;;  %4580 = vrcp.f32 %v2591_v6  ;;  %v2699_v23 = vadd.f32 1.0, %v4577_v7 }
0x15e9   :  { %4582 = vrcp.f32 %v2698_v8 }
0x15ea   :  { %4584 = vrcp.f32 %v2699_v23 }
0x15eb   :  { %2709 = vrot.lane.b32.xlu0 %v2707_v19, %s5084_s17 }
0x15ec   :  { %2711 = vrot.lane.b32.xlu1 %v2708_v52, %s5084_s17 }
0x15f1   :  { %v4579_v28 = vpop.eup %4578 }
0x15f2   :  { %v4581_v39 = vpop.eup %4580 }
0x15f3   :  { %v4583_v12 = vpop.eup %4582 }
0x15f4   :  { %v4585_v14 = vpop.eup %4584 }
0x1651   :  { %v2612_v9 = vpop.permute.xlu0 %2611 }
0x1652   :  { %v2614_v60 = vpop.permute.xlu1 %2613  ;;  %v2617_v53 = vmul.f32 %v4579_v28, %v2612_v9 }
0x1653   :  { %v2618_v56 = vmul.f32 %v4581_v39, %v2614_v60 }
0x1654   :  { %2621 = vrot.lane.b32.xlu0 %v2617_v53, %s5084_s17 }
0x1655   :  { %2623 = vrot.lane.b32.xlu1 %v2618_v56, %s5084_s17  ;;  %v2720_v13 = vpop.permute.xlu0 %2719 }
0x1656   :  { %v2722_v54 = vpop.permute.xlu1 %2721  ;;  %v2725_v35 = vmul.f32 %v4583_v12, %v2720_v13 }
0x1657   :  { %v2726_v15 = vmul.f32 %v4585_v14, %v2722_v54 }
0x1658   :  { %2729 = vrot.lane.b32.xlu0 %v2725_v35, %s5084_s17 }
0x1659   :  { %2731 = vrot.lane.b32.xlu1 %v2726_v15, %s5084_s17  ;;  %v2602_v33 = vpop.permute.xlu0 %2601 }
0x165a   :  { %v2604_v22 = vpop.permute.xlu1 %2603  ;;  %v2607_v17 = vmul.f32 %v4579_v28, %v2602_v33 }
0x165b   :  { %v2608_v29 = vmul.f32 %v4581_v39, %v2604_v22 }
0x165d   :  { %v2710_v25 = vpop.permute.xlu0 %2709 }
0x165e   :  { %v2712_v40 = vpop.permute.xlu1 %2711  ;;  %v2715_v37 = vmul.f32 %v4583_v12, %v2710_v25 }
0x165f   :  { %v2716_v47 = vmul.f32 %v4585_v14, %v2712_v40 }
0x16c6   :  { %v2622_v30 = vpop.permute.xlu0 %2621 }
0x16c7   :  { %v2624_v31 = vpop.permute.xlu1 %2623  ;;  %v2627_v34 = vadd.f32 %v2622_v30, %v2607_v17  ;;  %v6000_v17 = vld [vmem:[#allocation20] sm:$0xff]   ;;  %v6025_v30 = vld [vmem:[%s6324_s16 + $0x8] sm:$0xff]  }
0x16c8   :  { %v2628_v20 = vadd.f32 %v2624_v31, %v2608_v29  ;;  %v6009_v29 = vld [vmem:[#allocation20 + $0x8] sm:$0xff]  }
0x16c9   :  { %4586 = vtanh.f32 %v2627_v34  ;;  %v2764_v46 = vrot.slane %v2627_v34, 3 }
0x16ca   :  { %4588 = vtanh.f32 %v2628_v20  ;;  %v2765_v49 = vrot.slane %v2628_v20, 2  ;;  %v2730_v19 = vpop.permute.xlu0 %2729 }
0x16cb   :  { %v2732_v52 = vpop.permute.xlu1 %2731  ;;  %v2735_v45 = vadd.f32 %v2730_v19, %v2715_v37 }
0x16cc   :  { %v2736_v55 = vadd.f32 %v2732_v52, %v2716_v47  ;;  %v2766_v0 = vsel %vm1971_vm10, %v2765_v49, %v2764_v46 }
0x16cd   :  { %4590 = vtanh.f32 %v2735_v45  ;;  %v2786_v2 = vrot.slane %v2735_v45, 4 }
0x16ce   :  { %4592 = vtanh.f32 %v2736_v55  ;;  %v2787_v24 = vrot.slane %v2736_v55, 3 }
0x16d0   :  { %v2788_v3 = vsel %vm1971_vm10, %v2787_v24, %v2786_v2 }
0x16d3   :  { %v4587_v42 = vpop.eup %4586 }
0x16d4   :  { %v4589_v5 = vpop.eup %4588  ;;  %2633 = vrot.lane.b32.xlu0 %v4587_v42, %s5062_s1 }
0x16d5   :  { %2635 = vrot.lane.b32.xlu1 %v4589_v5, %s5062_s1 }
0x16d7   :  { %v4591_v6 = vpop.eup %4590 }
0x16d8   :  { %v4593_v7 = vpop.eup %4592  ;;  %2741 = vrot.lane.b32.xlu0 %v4591_v6, %s5062_s1 }
0x16d9   :  { %2743 = vrot.lane.b32.xlu1 %v4593_v7, %s5062_s1 }
0x16dc   :  { %2750 = vperm.xlu0 %4411, %v5721_v32  }
0x16dd   :  { %2772 = vperm.xlu1 %4412, %v5721_v32  }
0x16e0   :  { %4413 = vset.pattern.permute.xlu0 %v5091_v18 }
0x1746   :  { %v2634_v8 = vpop.permute.xlu0 %2633 }
0x1747   :  { %v2636_v23 = vpop.permute.xlu1 %2635  ;;  %v2639_v9 = vmul.f32 %v4579_v28, %v2634_v8 }
0x1748   :  { %v2640_v60 = vmul.f32 %v4581_v39, %v2636_v23 }
0x1749   :  { %v2755_v53 = vrot.slane %v2639_v9, 3 }
0x174a   :  { %v2756_v56 = vrot.slane %v2640_v60, 2  ;;  %v2742_v13 = vpop.permute.xlu0 %2741 }
0x174b   :  { %v2744_v54 = vpop.permute.xlu1 %2743  ;;  %v2747_v35 = vmul.f32 %v4583_v12, %v2742_v13 }
0x174c   :  { %v2748_v15 = vmul.f32 %v4585_v14, %v2744_v54  ;;  %v2757_v21 = vsel %vm1971_vm10, %v2756_v56, %v2755_v53 }
0x174d   :  { %v2777_v33 = vrot.slane %v2747_v35, 4  ;;  %2758 = vrot.lane.b32.xlu1 %v2757_v21, %s5084_s17 }
0x174e   :  { %v2778_v22 = vrot.slane %v2748_v15, 3 }
0x1750   :  { %v2779_v25 = vsel %vm1971_vm10, %v2778_v22, %v2777_v33 }
0x1751   :  { %2767 = vrot.lane.b32.xlu1 %v2766_v0, %s5086_s14  ;;  %2780 = vrot.lane.b32.xlu0 %v2779_v25, %s5084_s17 }
0x1755   :  { %2789 = vrot.lane.b32.xlu0 %v2788_v3, %s5086_s14 }
0x175b   :  { %v5977_v28 = vpop.permute.xlu0 %2750 }
0x175c   :  { %v5975_v32 = vpop.permute.xlu1 %2772  ;;  %vm2752_vm4 = vcmp.eq.s32.totalorder %v5977_v28, 1 }
0x175d   :  { %vm2774_vm5 = vcmp.eq.s32.totalorder %v5975_v32, 1 }
0x17bf   :  { %v5980_v39 = vpop.permute.xlu1 %2758 }
0x17c0   :  { %v5986_v12 = vsel %vm2752_vm4, %v5980_v39, %v5902_v4 }
0x17c1   :  { %v2797_v14 = vpack.c.bf16 %v5986_v12, %v5986_v12 }
0x17c3   :  { %4295 = vmatmul.mubr.msk.bf16.vlgmr.msra.gmra.mrb[64].mxu0 %vm275_vm1, %v2797_v14  ;;  %v5992_v18 = vpop.permute.xlu0 %2780  ;;  %v2768_v7 = vpop.permute.xlu1 %2767 }
0x17c4   :  { %v5998_v40 = vsel %vm2774_vm5, %v5992_v18, %v5914_v10  ;;  %4307 = vmatpush3.bf16.msra.mxu0 %v6000_v17  ;;  %4310 = vmatprep.mubr.msk.bf16.mxu0 %vm5076_vm0, %v5075_v1  ;;  %v6015_v10 = vld [vmem:[%s6324_s16] sm:$0xff]   ;;  %v6038_v23 = vsel %vm2752_vm4, %v2768_v7, %v5940_v36 }
0x17c5   :  { %v2905_v4 = vpack.c.bf16 %v5998_v40, %v5998_v40  ;;  %4308 = vmatprep.subr.bf16.mxu0 %v5075_v1  ;;  %v2863_v53 = vrot.slane %v6038_v23, 4  ;;  %v2864_v56 = vrot.slane %v6038_v23, 5 }
0x17c7   :  { %4303 = vmatmul.mubr.msk.bf16.vlgmr.msra.gmra.mrb[64].mxu1 %vm275_vm1, %v2905_v4  ;;  %v2790_v60 = vpop.permute.xlu0 %2789 }
0x17c8   :  { %4309 = vmatpush3.bf16.msra.mxu0 %v6009_v29  ;;  %4315 = vmatpush3.bf16.msra.mxu1 %v6015_v10  ;;  %v6047_v13 = vsel %vm2774_vm5, %v2790_v60, %v5949_v50 }
0x17c9   :  { %4316 = vmatprep.subr.bf16.mxu1 %v5075_v1  ;;  %4318 = vmatprep.mubr.msk.bf16.mxu1 %vm5076_vm0, %v5075_v1  ;;  %v2971_v36 = vrot.slane %v6047_v13, 5  ;;  %v2972_v54 = vrot.slane %v6047_v13, 6 }
0x17ca   :  { %4322 = vmatprep.subr.bf16.mxu0 %v5075_v1 }
0x17cc   :  { %4317 = vmatpush3.bf16.msra.mxu1 %v6025_v30 }
0x17cd   :  { %4330 = vmatprep.subr.bf16.mxu1 %v5075_v1 }
0x1896   :  { %v2835_v31 = vpop.f32.mrb[64].mxu0 }
0x1897   :  { %v2842_v34 = vrot.slane %v2835_v31, 4  ;;  %v2843_v20 = vrot.slane %v2835_v31, 5  ;;  %v4296_v37 = vpop.f32.mrb[65].mxu0 }
0x1898   :  { %v2838_v46 = vpop.f32.mrb[66].mxu0 }
0x1899   :  { %v2846_v47 = vadd.f32 %v2842_v34, %v5694_v26  ;;  %v2847_v49 = vadd.f32 %v2843_v20, %v5688_v16  ;;  %v4297_v19 = vpop.f32.mrb[67].mxu0 }
0x189a   :  { %v2943_v52 = vpop.f32.mrb[64].mxu1 }
0x189b   :  { %4594 = vtanh.f32 %v2846_v47  ;;  %v2950_v45 = vrot.slane %v2943_v52, 5  ;;  %v4304_v55 = vpop.f32.mrb[65].mxu1  ;;  %v2951_v0 = vrot.slane %v2943_v52, 6  ;;  %v3930_v35 = vmul.f32 -1.442695, %v2846_v47 }
0x189c   :  { %4596 = vtanh.f32 %v2847_v49  ;;  %v2946_v2 = vpop.f32.mrb[66].mxu1  ;;  %v3931_v15 = vmul.f32 -1.442695, %v2847_v49 }
0x189d   :  { %v2954_v24 = vadd.f32 %v2950_v45, %v5696_v27  ;;  %v4305_v3 = vpop.f32.mrb[67].mxu1  ;;  %v2955_v42 = vadd.f32 %v2951_v0, %v5699_v38 }
0x189f   :  { %4598 = vtanh.f32 %v2954_v24  ;;  %v3933_v21 = vmul.f32 -1.442695, %v2954_v24  ;;  %v3934_v33 = vmul.f32 -1.442695, %v2955_v42 }
0x18a0   :  { %4600 = vtanh.f32 %v2955_v42 }
0x18a1   :  { %4602 = vpow2.f32 %v3930_v35 }
0x18a2   :  { %4604 = vpow2.f32 %v3931_v15 }
0x18a3   :  { %4606 = vpow2.f32 %v3933_v21 }
0x18a4   :  { %4608 = vpow2.f32 %v3934_v33 }
0x18a5   :  { %v4595_v5 = vpop.eup %4594 }
0x18a6   :  { %v4597_v6 = vpop.eup %4596  ;;  %2875 = vrot.lane.b32.xlu1 %v4595_v5, %s5062_s1 }
0x18a7   :  { %2877 = vrot.lane.b32.xlu0 %v4597_v6, %s5062_s1 }
0x18a9   :  { %v4599_v8 = vpop.eup %4598 }
0x18aa   :  { %v4601_v9 = vpop.eup %4600  ;;  %2983 = vrot.lane.b32.xlu1 %v4599_v8, %s5062_s1 }
0x18ab   :  { %2985 = vrot.lane.b32.xlu0 %v4601_v9, %s5062_s1  ;;  %v4603_v50 = vpop.eup %4602 }
0x18ac   :  { %v4605_v22 = vpop.eup %4604  ;;  %v2854_v25 = vadd.f32 1.0, %v4603_v50 }
0x18ad   :  { %v4607_v14 = vpop.eup %4606  ;;  %v2855_v4 = vadd.f32 1.0, %v4605_v22 }
0x18ae   :  { %2865 = vrot.lane.b32.xlu1 %v2863_v53, %s5084_s17  ;;  %v4609_v31 = vpop.eup %4608  ;;  %4610 = vrcp.f32 %v2854_v25  ;;  %v2962_v34 = vadd.f32 1.0, %v4607_v14 }
0x18af   :  { %2867 = vrot.lane.b32.xlu0 %v2864_v56, %s5084_s17  ;;  %4612 = vrcp.f32 %v2855_v4  ;;  %v2963_v20 = vadd.f32 1.0, %v4609_v31 }
0x18b0   :  { %4614 = vrcp.f32 %v2962_v34 }
0x18b1   :  { %4616 = vrcp.f32 %v2963_v20 }
0x18b2   :  { %2973 = vrot.lane.b32.xlu1 %v2971_v36, %s5084_s17 }
0x18b3   :  { %2975 = vrot.lane.b32.xlu0 %v2972_v54, %s5084_s17 }
0x18b8   :  { %v4611_v37 = vpop.eup %4610 }
0x18b9   :  { %v4613_v47 = vpop.eup %4612 }
0x18ba   :  { %v4615_v45 = vpop.eup %4614 }
0x18bb   :  { %v4617_v0 = vpop.eup %4616 }
0x1918   :  { %v2876_v46 = vpop.permute.xlu1 %2875 }
0x1919   :  { %v2878_v49 = vpop.permute.xlu0 %2877  ;;  %v2881_v19 = vmul.f32 %v4611_v37, %v2876_v46 }
0x191a   :  { %v2882_v52 = vmul.f32 %v4613_v47, %v2878_v49 }
0x191b   :  { %2885 = vrot.lane.b32.xlu1 %v2881_v19, %s5084_s17 }
0x191c   :  { %2887 = vrot.lane.b32.xlu0 %v2882_v52, %s5084_s17  ;;  %v2984_v55 = vpop.permute.xlu1 %2983 }
0x191d   :  { %v2986_v2 = vpop.permute.xlu0 %2985  ;;  %v2989_v24 = vmul.f32 %v4615_v45, %v2984_v55 }
0x191e   :  { %v2990_v3 = vmul.f32 %v4617_v0, %v2986_v2 }
0x191f   :  { %2993 = vrot.lane.b32.xlu1 %v2989_v24, %s5084_s17 }
0x1920   :  { %2995 = vrot.lane.b32.xlu0 %v2990_v3, %s5084_s17  ;;  %v2866_v42 = vpop.permute.xlu1 %2865 }
0x1921   :  { %v2868_v5 = vpop.permute.xlu0 %2867  ;;  %v2871_v8 = vmul.f32 %v4611_v37, %v2866_v42 }
0x1922   :  { %v2872_v9 = vmul.f32 %v4613_v47, %v2868_v5 }
0x1924   :  { %v2974_v6 = vpop.permute.xlu1 %2973 }
0x1925   :  { %v2976_v7 = vpop.permute.xlu0 %2975  ;;  %v2979_v54 = vmul.f32 %v4615_v45, %v2974_v6 }
0x1926   :  { %v2980_v15 = vmul.f32 %v4617_v0, %v2976_v7 }
0x198d   :  { %v2886_v60 = vpop.permute.xlu1 %2885 }
0x198e   :  { %v2888_v53 = vpop.permute.xlu0 %2887  ;;  %v2891_v56 = vadd.f32 %v2886_v60, %v2871_v8 }
0x198f   :  { %v2892_v36 = vadd.f32 %v2888_v53, %v2872_v9 }
0x1990   :  { %4618 = vtanh.f32 %v2891_v56  ;;  %v3024_v35 = vrot.slane %v2891_v56, 4 }
0x1991   :  { %4620 = vtanh.f32 %v2892_v36  ;;  %v3025_v21 = vrot.slane %v2892_v36, 3  ;;  %v2994_v33 = vpop.permute.xlu1 %2993  ;;  %v2793_v36 = vsel %vm2752_vm4, %v5980_v39, 0.0 }
0x1992   :  { %v2996_v50 = vpop.permute.xlu0 %2995  ;;  %v2999_v22 = vadd.f32 %v2994_v33, %v2979_v54 }
0x1993   :  { %v3000_v25 = vadd.f32 %v2996_v50, %v2980_v15  ;;  %v3026_v14 = vsel %vm1971_vm10, %v3025_v21, %v3024_v35  ;;  %v2531_v35 = vsel %vm2510_vm3, %v5908_v43, 0.0 }
0x1994   :  { %4622 = vtanh.f32 %v2999_v22  ;;  %v3042_v4 = vrot.slane %v2999_v22, 3 }
0x1995   :  { %4624 = vtanh.f32 %v3000_v25  ;;  %v3043_v31 = vrot.slane %v3000_v25, 2 }
0x1997   :  { %v3044_v34 = vsel %vm1971_vm10, %v3043_v31, %v3042_v4 }
0x199a   :  { %v4619_v20 = vpop.eup %4618 }
0x199b   :  { %v4621_v46 = vpop.eup %4620  ;;  %2897 = vrot.lane.b32.xlu1 %v4619_v20, %s5062_s1 }
0x199c   :  { %2899 = vrot.lane.b32.xlu0 %v4621_v46, %s5062_s1 }
0x199e   :  { %v4623_v49 = vpop.eup %4622 }
0x199f   :  { %v4625_v19 = vpop.eup %4624  ;;  %3005 = vrot.lane.b32.xlu1 %v4623_v49, %s5062_s1 }
0x19a0   :  { %3007 = vrot.lane.b32.xlu0 %v4625_v19, %s5062_s1 }
0x1a0d   :  { %v2898_v52 = vpop.permute.xlu1 %2897 }
0x1a0e   :  { %v2900_v55 = vpop.permute.xlu0 %2899  ;;  %v2903_v2 = vmul.f32 %v4611_v37, %v2898_v52  ;;  %v2265_v37 = vsel %vm2226_vm15, %v5821_v58, 0.0 }
0x1a0f   :  { %v2904_v24 = vmul.f32 %v4613_v47, %v2900_v55  ;;  %v2529_v47 = vsel %vm2488_vm2, %v5894_v59, 0.0 }
0x1a10   :  { %v3015_v3 = vrot.slane %v2903_v2, 4 }
0x1a11   :  { %v3016_v42 = vrot.slane %v2904_v24, 3  ;;  %v3006_v5 = vpop.permute.xlu1 %3005 }
0x1a12   :  { %v3008_v6 = vpop.permute.xlu0 %3007  ;;  %v3011_v7 = vmul.f32 %v4615_v45, %v3006_v5  ;;  %v2266_v45 = vadd.f32 %v2265_v37, %v5740_v62  ;;  %v2795_v62 = vsel %vm2774_vm5, %v5992_v18, 0.0 }
0x1a13   :  { %v3012_v8 = vmul.f32 %v4617_v0, %v3008_v6  ;;  %v3017_v9 = vsel %vm1971_vm10, %v3016_v42, %v3015_v3  ;;  %v2267_v0 = vsel %vm2246_vm14, %v5813_v11, 0.0 }
0x1a14   :  { %v3033_v60 = vrot.slane %v3011_v7, 3  ;;  %3018 = vrot.lane.b32.xlu1 %v3017_v9, %s5084_s17  ;;  %v2530_v54 = vadd.f32 %v2529_v47, %v2266_v45  ;;  %v2268_v58 = vadd.f32 %v2267_v0, %v5748_v63 }
0x1a15   :  { %v3034_v53 = vrot.slane %v3012_v8, 2 }
0x1a16   :  { %v2794_v15 = vadd.f32 %v2793_v36, %v2530_v54  ;;  %v2532_v39 = vadd.f32 %v2531_v35, %v2268_v58 }
0x1a17   :  { %v3035_v56 = vsel %vm1971_vm10, %v3034_v53, %v3033_v60 }
0x1a18   :  { %3027 = vrot.lane.b32.xlu1 %v3026_v14, %s5086_s14  ;;  %3036 = vrot.lane.b32.xlu0 %v3035_v56, %s5084_s17  ;;  %v2796_v43 = vadd.f32 %v2795_v62, %v2532_v39 }
0x1a1c   :  { %3045 = vrot.lane.b32.xlu0 %v3044_v34, %s5086_s14 }
0x1a86   :  { %v3019_v21 = vpop.permute.xlu1 %3018 }
0x1a87   :  { %v6094_v11 = vsel %vm2774_vm5, %v3019_v21, %v5986_v12  ;;  %v3049_v59 = vsel %vm2774_vm5, %v3019_v21, 0.0 }
0x1a88   :  { %v6098_v33 = vadd.f32 %v3049_v59, %v2794_v15  ;;  %v3053_v63 = vpack.c.bf16 %v6094_v11, %v6094_v11 }
0x1a8a   :  { %v3037_v50 = vpop.permute.xlu0 %3036  ;;  %4311 = vmatmul.mubr.msk.bf16.vlgmr.msra.gmra.mrb[68].mxu0 %vm275_vm1, %v3053_v63  ;;  %v3028_v8 = vpop.permute.xlu1 %3027 }
0x1a8b   :  { %v6106_v18 = vsel %vm2752_vm4, %v3037_v50, %v5998_v40  ;;  %v3051_v12 = vsel %vm2752_vm4, %v3037_v50, 0.0  ;;  %4323 = vmatpush3.bf16.msra.mxu0 %v6000_v17  ;;  %4326 = vmatprep.mubr.msk.bf16.mxu0 %vm5076_vm0, %v5075_v1  ;;  %v6136_v60 = vsel %vm2774_vm5, %v3028_v8, %v6038_v23 }
0x1a8c   :  { %v6113_v22 = vadd.f32 %v3051_v12, %v2796_v43  ;;  %v3161_v25 = vpack.c.bf16 %v6106_v18, %v6106_v18  ;;  %4324 = vmatprep.subr.bf16.mxu0 %v5075_v1  ;;  %v3119_v37 = vrot.slane %v6136_v60, 3  ;;  %v3120_v47 = vrot.slane %v6136_v60, 4 }
0x1a8e   :  { %4319 = vmatmul.mubr.msk.bf16.vlgmr.msra.gmra.mrb[68].mxu1 %vm275_vm1, %v3161_v25  ;;  %v3046_v56 = vpop.permute.xlu0 %3045 }
0x1a8f   :  { %4325 = vmatpush3.bf16.msra.mxu0 %v6009_v29  ;;  %4331 = vmatpush3.bf16.msra.mxu1 %v6015_v10  ;;  %v6145_v45 = vsel %vm2752_vm4, %v3046_v56, %v6047_v13 }
0x1a90   :  { %4332 = vmatprep.subr.bf16.mxu1 %v5075_v1  ;;  %4334 = vmatprep.mubr.msk.bf16.mxu1 %vm5076_vm0, %v5075_v1  ;;  %v3227_v32 = vrot.slane %v6145_v45, 6  ;;  %v3228_v23 = vrot.slane %v6145_v45, 7 }
0x1a91   :  { %4338 = vmatprep.subr.bf16.mxu0 %v5075_v1 }
0x1a93   :  { %4333 = vmatpush3.bf16.msra.mxu1 %v6025_v30 }
0x1a94   :  { %4346 = vmatprep.subr.bf16.mxu1 %v5075_v1 }
0x1b5d   :  { %v3091_v40 = vpop.f32.mrb[68].mxu0 }
0x1b5e   :  { %v3098_v14 = vrot.slane %v3091_v40, 3  ;;  %v3099_v4 = vrot.slane %v3091_v40, 4  ;;  %v4312_v31 = vpop.f32.mrb[69].mxu0 }
0x1b5f   :  { %v3094_v34 = vpop.f32.mrb[70].mxu0 }
0x1b60   :  { %v3102_v20 = vadd.f32 %v3098_v14, %v5694_v26  ;;  %v3103_v46 = vadd.f32 %v3099_v4, %v5688_v16  ;;  %v4313_v49 = vpop.f32.mrb[71].mxu0 }
0x1b61   :  { %v3199_v19 = vpop.f32.mrb[68].mxu1 }
0x1b62   :  { %4626 = vtanh.f32 %v3102_v20  ;;  %v3206_v52 = vrot.slane %v3199_v19, 6  ;;  %v4320_v55 = vpop.f32.mrb[69].mxu1  ;;  %v3207_v2 = vrot.slane %v3199_v19, 7  ;;  %v3936_v0 = vmul.f32 -1.442695, %v3102_v20 }
0x1b63   :  { %4628 = vtanh.f32 %v3103_v46  ;;  %v3202_v24 = vpop.f32.mrb[70].mxu1  ;;  %v3937_v36 = vmul.f32 -1.442695, %v3103_v46 }
0x1b64   :  { %v3210_v3 = vadd.f32 %v3206_v52, %v5696_v27  ;;  %v4321_v42 = vpop.f32.mrb[71].mxu1  ;;  %v3211_v5 = vadd.f32 %v3207_v2, %v5699_v38 }
0x1b66   :  { %4630 = vtanh.f32 %v3210_v3  ;;  %v3939_v54 = vmul.f32 -1.442695, %v3210_v3  ;;  %v3940_v28 = vmul.f32 -1.442695, %v3211_v5 }
0x1b67   :  { %4632 = vtanh.f32 %v3211_v5 }
0x1b68   :  { %4634 = vpow2.f32 %v3936_v0 }
0x1b69   :  { %4636 = vpow2.f32 %v3937_v36 }
0x1b6a   :  { %4638 = vpow2.f32 %v3939_v54 }
0x1b6b   :  { %4640 = vpow2.f32 %v3940_v28 }
0x1b6c   :  { %v4627_v6 = vpop.eup %4626 }
0x1b6d   :  { %v4629_v7 = vpop.eup %4628  ;;  %3131 = vrot.lane.b32.xlu1 %v4627_v6, %s5062_s1 }
0x1b6e   :  { %3133 = vrot.lane.b32.xlu0 %v4629_v7, %s5062_s1 }
0x1b70   :  { %v4631_v9 = vpop.eup %4630 }
0x1b71   :  { %v4633_v53 = vpop.eup %4632  ;;  %3239 = vrot.lane.b32.xlu1 %v4631_v9, %s5062_s1 }
0x1b72   :  { %3241 = vrot.lane.b32.xlu0 %v4633_v53, %s5062_s1  ;;  %v4635_v13 = vpop.eup %4634 }
0x1b73   :  { %v4637_v35 = vpop.eup %4636  ;;  %v3110_v58 = vadd.f32 1.0, %v4635_v13 }
0x1b74   :  { %v4639_v15 = vpop.eup %4638  ;;  %v3111_v21 = vadd.f32 1.0, %v4637_v35 }
0x1b75   :  { %3121 = vrot.lane.b32.xlu1 %v3119_v37, %s5084_s17  ;;  %v4641_v62 = vpop.eup %4640  ;;  %4642 = vrcp.f32 %v3110_v58  ;;  %v3218_v59 = vadd.f32 1.0, %v4639_v15 }
0x1b76   :  { %3123 = vrot.lane.b32.xlu0 %v3120_v47, %s5084_s17  ;;  %4644 = vrcp.f32 %v3111_v21  ;;  %v3219_v39 = vadd.f32 1.0, %v4641_v62 }
0x1b77   :  { %4646 = vrcp.f32 %v3218_v59 }
0x1b78   :  { %4648 = vrcp.f32 %v3219_v39 }
0x1b79   :  { %3229 = vrot.lane.b32.xlu1 %v3227_v32, %s5084_s17 }
0x1b7a   :  { %3231 = vrot.lane.b32.xlu0 %v3228_v23, %s5084_s17 }
0x1b7f   :  { %v4643_v63 = vpop.eup %4642 }
0x1b80   :  { %v4645_v50 = vpop.eup %4644 }
0x1b81   :  { %v4647_v14 = vpop.eup %4646 }
0x1b82   :  { %v4649_v31 = vpop.eup %4648 }
0x1bdf   :  { %v3132_v43 = vpop.permute.xlu1 %3131 }
0x1be0   :  { %v3134_v12 = vpop.permute.xlu0 %3133  ;;  %v3137_v25 = vmul.f32 %v4643_v63, %v3132_v43 }
0x1be1   :  { %v3138_v40 = vmul.f32 %v4645_v50, %v3134_v12 }
0x1be2   :  { %3141 = vrot.lane.b32.xlu1 %v3137_v25, %s5084_s17 }
0x1be3   :  { %3143 = vrot.lane.b32.xlu0 %v3138_v40, %s5084_s17  ;;  %v3240_v4 = vpop.permute.xlu1 %3239 }
0x1be4   :  { %v3242_v34 = vpop.permute.xlu0 %3241  ;;  %v3245_v20 = vmul.f32 %v4647_v14, %v3240_v4 }
0x1be5   :  { %v3246_v46 = vmul.f32 %v4649_v31, %v3242_v34 }
0x1be6   :  { %3249 = vrot.lane.b32.xlu1 %v3245_v20, %s5084_s17 }
0x1be7   :  { %3251 = vrot.lane.b32.xlu0 %v3246_v46, %s5084_s17  ;;  %v3122_v49 = vpop.permute.xlu1 %3121 }
0x1be8   :  { %v3124_v19 = vpop.permute.xlu0 %3123  ;;  %v3127_v2 = vmul.f32 %v4643_v63, %v3122_v49 }
0x1be9   :  { %v3128_v24 = vmul.f32 %v4645_v50, %v3124_v19 }
0x1beb   :  { %v3230_v52 = vpop.permute.xlu1 %3229 }
0x1bec   :  { %v3232_v55 = vpop.permute.xlu0 %3231  ;;  %v3235_v7 = vmul.f32 %v4647_v14, %v3230_v52 }
0x1bed   :  { %v3236_v9 = vmul.f32 %v4649_v31, %v3232_v55 }
0x1c54   :  { %v3142_v3 = vpop.permute.xlu1 %3141 }
0x1c55   :  { %v3144_v42 = vpop.permute.xlu0 %3143  ;;  %v3147_v5 = vadd.f32 %v3142_v3, %v3127_v2 }
0x1c56   :  { %v3148_v6 = vadd.f32 %v3144_v42, %v3128_v24 }
0x1c57   :  { %4650 = vtanh.f32 %v3147_v5  ;;  %v3280_v8 = vrot.slane %v3147_v5, 5 }
0x1c58   :  { %4652 = vtanh.f32 %v3148_v6  ;;  %v3281_v53 = vrot.slane %v3148_v6, 4  ;;  %v3250_v56 = vpop.permute.xlu1 %3249 }
0x1c59   :  { %v3252_v37 = vpop.permute.xlu0 %3251  ;;  %v3255_v47 = vadd.f32 %v3250_v56, %v3235_v7 }
0x1c5a   :  { %v3256_v32 = vadd.f32 %v3252_v37, %v3236_v9  ;;  %v3282_v23 = vsel %vm1971_vm10, %v3281_v53, %v3280_v8 }
0x1c5b   :  { %4654 = vtanh.f32 %v3255_v47  ;;  %v3298_v0 = vrot.slane %v3255_v47, 2 }
0x1c5c   :  { %4656 = vtanh.f32 %v3256_v32  ;;  %v3299_v36 = vrot.slane %v3256_v32, 1 }
0x1c5e   :  { %v3300_v54 = vsel %vm1971_vm10, %v3299_v36, %v3298_v0 }
0x1c61   :  { %v4651_v28 = vpop.eup %4650 }
0x1c62   :  { %v4653_v13 = vpop.eup %4652  ;;  %3153 = vrot.lane.b32.xlu1 %v4651_v28, %s5062_s1 }
0x1c63   :  { %3155 = vrot.lane.b32.xlu0 %v4653_v13, %s5062_s1 }
0x1c65   :  { %v4655_v35 = vpop.eup %4654 }
0x1c66   :  { %v4657_v58 = vpop.eup %4656  ;;  %3261 = vrot.lane.b32.xlu1 %v4655_v35, %s5062_s1 }
0x1c67   :  { %3263 = vrot.lane.b32.xlu0 %v4657_v58, %s5062_s1 }
0x1cd4   :  { %v3154_v15 = vpop.permute.xlu1 %3153 }
0x1cd5   :  { %v3156_v21 = vpop.permute.xlu0 %3155  ;;  %v3159_v62 = vmul.f32 %v4643_v63, %v3154_v15 }
0x1cd6   :  { %v3160_v59 = vmul.f32 %v4645_v50, %v3156_v21 }
0x1cd7   :  { %v3271_v39 = vrot.slane %v3159_v62, 5 }
0x1cd8   :  { %v3272_v43 = vrot.slane %v3160_v59, 4  ;;  %v3262_v12 = vpop.permute.xlu1 %3261 }
0x1cd9   :  { %v3264_v25 = vpop.permute.xlu0 %3263  ;;  %v3267_v40 = vmul.f32 %v4647_v14, %v3262_v12 }
0x1cda   :  { %v3268_v4 = vmul.f32 %v4649_v31, %v3264_v25  ;;  %v3273_v34 = vsel %vm1971_vm10, %v3272_v43, %v3271_v39 }
0x1cdb   :  { %v3289_v20 = vrot.slane %v3267_v40, 2  ;;  %3274 = vrot.lane.b32.xlu1 %v3273_v34, %s5084_s17 }
0x1cdc   :  { %v3290_v46 = vrot.slane %v3268_v4, 1 }
0x1cde   :  { %v3291_v49 = vsel %vm1971_vm10, %v3290_v46, %v3289_v20 }
0x1cdf   :  { %3283 = vrot.lane.b32.xlu1 %v3282_v23, %s5086_s14  ;;  %3292 = vrot.lane.b32.xlu0 %v3291_v49, %s5084_s17 }
0x1ce3   :  { %3301 = vrot.lane.b32.xlu0 %v3300_v54, %s5086_s14 }
0x1d4d   :  { %v3275_v63 = vpop.permute.xlu1 %3274 }
0x1d4e   :  { %v6172_v50 = vsel %vm2510_vm3, %v3275_v63, %v6094_v11  ;;  %v3305_v14 = vsel %vm2510_vm3, %v3275_v63, 0.0 }
0x1d4f   :  { %v6177_v31 = vadd.f32 %v3305_v14, %v6098_v33  ;;  %v3309_v19 = vpack.c.bf16 %v6172_v50, %v6172_v50 }
0x1d51   :  { %v3293_v52 = vpop.permute.xlu0 %3292  ;;  %4327 = vmatmul.mubr.msk.bf16.vlgmr.msra.gmra.mrb[72].mxu0 %vm275_vm1, %v3309_v19  ;;  %v3284_v37 = vpop.permute.xlu1 %3283 }
0x1d52   :  { %v6185_v55 = vsel %vm2488_vm2, %v3293_v52, %v6106_v18  ;;  %v3307_v11 = vsel %vm2488_vm2, %v3293_v52, 0.0  ;;  %4339 = vmatpush3.bf16.msra.mxu0 %v6000_v17  ;;  %4342 = vmatprep.mubr.msk.bf16.mxu0 %vm5076_vm0, %v5075_v1  ;;  %v6214_v32 = vsel %vm2510_vm3, %v3284_v37, %v6136_v60 }
0x1d53   :  { %v6193_v33 = vadd.f32 %v3307_v11, %v6113_v22  ;;  %v3417_v2 = vpack.c.bf16 %v6185_v55, %v6185_v55  ;;  %4340 = vmatprep.subr.bf16.mxu0 %v5075_v1  ;;  %v3375_v36 = vrot.slane %v6214_v32, 2  ;;  %v3376_v28 = vrot.slane %v6214_v32, 3 }
0x1d55   :  { %4335 = vmatmul.mubr.msk.bf16.vlgmr.msra.gmra.mrb[72].mxu1 %vm275_vm1, %v3417_v2  ;;  %v3302_v23 = vpop.permute.xlu0 %3301 }
0x1d56   :  { %4341 = vmatpush3.bf16.msra.mxu0 %v6009_v29  ;;  %4347 = vmatpush3.bf16.msra.mxu1 %v6015_v10  ;;  %v6221_v54 = vsel %vm2488_vm2, %v3302_v23, %v6145_v45 }
0x1d57   :  { %4348 = vmatprep.subr.bf16.mxu1 %v5075_v1  ;;  %4350 = vmatprep.mubr.msk.bf16.mxu1 %vm5076_vm0, %v5075_v1  ;;  %v3482_v44 = vrot.slane %v6221_v54, 7  ;;  %vm3794_vm0 = vcmask 58368  }
0x1d5a   :  { %4349 = vmatpush3.bf16.msra.mxu1 %v6025_v30 }
0x1e24   :  { %v3347_v17 = vpop.f32.mrb[72].mxu0 }
0x1e25   :  { %v3354_v18 = vrot.slane %v3347_v17, 2  ;;  %v3355_v22 = vrot.slane %v3347_v17, 3  ;;  %v4328_v24 = vpop.f32.mrb[73].mxu0 }
0x1e26   :  { %v3350_v3 = vpop.f32.mrb[74].mxu0 }
0x1e27   :  { %v3358_v42 = vadd.f32 %v3354_v18, %v5694_v26  ;;  %v3359_v5 = vadd.f32 %v3355_v22, %v5688_v16  ;;  %v4329_v6 = vpop.f32.mrb[75].mxu0 }
0x1e28   :  { %v3455_v29 = vpop.f32.mrb[72].mxu1 }
0x1e29   :  { %4658 = vtanh.f32 %v3358_v42  ;;  %v3462_v10 = vrot.slane %v3455_v29, 7  ;;  %v4336_v7 = vpop.f32.mrb[73].mxu1  ;;  %v3466_v30 = vadd.f32 %v3455_v29, %v5699_v38  ;;  %v3942_v60 = vmul.f32 -1.442695, %v3358_v42 }
0x1e2a   :  { %4660 = vtanh.f32 %v3359_v5  ;;  %v3458_v8 = vpop.f32.mrb[74].mxu1  ;;  %v3943_v13 = vmul.f32 -1.442695, %v3359_v5 }
0x1e2b   :  { %v3465_v1 = vadd.f32 %v3462_v10, %v5696_v27  ;;  %v4337_v9 = vpop.f32.mrb[75].mxu1  ;;  %v3946_v45 = vmul.f32 -1.442695, %v3466_v30 }
0x1e2d   :  { %4662 = vtanh.f32 %v3465_v1  ;;  %v3945_v41 = vmul.f32 -1.442695, %v3465_v1 }
0x1e2e   :  { %4664 = vtanh.f32 %v3466_v30 }
0x1e2f   :  { %4666 = vpow2.f32 %v3942_v60 }
0x1e30   :  { %4668 = vpow2.f32 %v3943_v13 }
0x1e31   :  { %4670 = vpow2.f32 %v3945_v41 }
0x1e32   :  { %4672 = vpow2.f32 %v3946_v45 }
0x1e33   :  { %v4659_v53 = vpop.eup %4658 }
0x1e34   :  { %v4661_v56 = vpop.eup %4660  ;;  %3387 = vrot.lane.b32.xlu1 %v4659_v53, %s5062_s1 }
0x1e35   :  { %3389 = vrot.lane.b32.xlu0 %v4661_v56, %s5062_s1 }
0x1e37   :  { %v4663_v47 = vpop.eup %4662 }
0x1e38   :  { %3493 = vrot.lane.b32.xlu1 %v4663_v47, %s5062_s1  ;;  %v4665_v0 = vpop.eup %4664 }
0x1e39   :  { %3495 = vrot.lane.b32.xlu0 %v4665_v0, %s5062_s1  ;;  %v4667_v35 = vpop.eup %4666 }
0x1e3a   :  { %v4669_v58 = vpop.eup %4668  ;;  %v3366_v15 = vadd.f32 1.0, %v4667_v35 }
0x1e3b   :  { %v4671_v21 = vpop.eup %4670  ;;  %v3367_v62 = vadd.f32 1.0, %v4669_v58 }
0x1e3c   :  { %3377 = vrot.lane.b32.xlu1 %v3375_v36, %s5084_s17  ;;  %v4673_v59 = vpop.eup %4672  ;;  %4674 = vrcp.f32 %v3366_v15  ;;  %v3473_v39 = vadd.f32 1.0, %v4671_v21 }
0x1e3d   :  { %3379 = vrot.lane.b32.xlu0 %v3376_v28, %s5084_s17  ;;  %4676 = vrcp.f32 %v3367_v62  ;;  %v3474_v43 = vadd.f32 1.0, %v4673_v59 }
0x1e3e   :  { %4678 = vrcp.f32 %v3473_v39 }
0x1e3f   :  { %4680 = vrcp.f32 %v3474_v43 }
0x1e40   :  { %3483 = vrot.lane.b32.xlu1 %v3482_v44, %s5084_s17 }
0x1e41   :  { %3485 = vrot.lane.b32.xlu0 %v6221_v54, %s5084_s17 }
0x1e46   :  { %v4675_v12 = vpop.eup %4674 }
0x1e47   :  { %v4677_v40 = vpop.eup %4676 }
0x1e48   :  { %v4679_v46 = vpop.eup %4678 }
0x1e49   :  { %v4681_v14 = vpop.eup %4680 }
0x1ea6   :  { %v3388_v25 = vpop.permute.xlu1 %3387 }
0x1ea7   :  { %v3390_v4 = vpop.permute.xlu0 %3389  ;;  %v3393_v34 = vmul.f32 %v4675_v12, %v3388_v25 }
0x1ea8   :  { %v3394_v20 = vmul.f32 %v4677_v40, %v3390_v4 }
0x1ea9   :  { %3397 = vrot.lane.b32.xlu0 %v3393_v34, %s5084_s17 }
0x1eaa   :  { %3399 = vrot.lane.b32.xlu1 %v3394_v20, %s5084_s17  ;;  %v3494_v49 = vpop.permute.xlu1 %3493 }
0x1eab   :  { %v3499_v63 = vmul.f32 %v4679_v46, %v3494_v49  ;;  %v3496_v19 = vpop.permute.xlu0 %3495 }
0x1eac   :  { %v3500_v52 = vmul.f32 %v4681_v14, %v3496_v19 }
0x1eae   :  { %3503 = vrot.lane.b32.xlu1 %v3499_v63, %s5084_s17  ;;  %3505 = vrot.lane.b32.xlu0 %v3500_v52, %s5084_s17  ;;  %v3378_v2 = vpop.permute.xlu1 %3377 }
0x1eaf   :  { %v3380_v11 = vpop.permute.xlu0 %3379  ;;  %v3383_v22 = vmul.f32 %v4675_v12, %v3378_v2 }
0x1eb0   :  { %v3384_v24 = vmul.f32 %v4677_v40, %v3380_v11 }
0x1eb2   :  { %v3484_v18 = vpop.permute.xlu1 %3483 }
0x1eb3   :  { %v3486_v17 = vpop.permute.xlu0 %3485  ;;  %v3489_v10 = vmul.f32 %v4679_v46, %v3484_v18 }
0x1eb4   :  { %v3490_v1 = vmul.f32 %v4681_v14, %v3486_v17 }
0x1f1b   :  { %v3398_v3 = vpop.permute.xlu0 %3397 }
0x1f1c   :  { %v3400_v42 = vpop.permute.xlu1 %3399  ;;  %v3403_v5 = vadd.f32 %v3398_v3, %v3383_v22 }
0x1f1d   :  { %v3404_v6 = vadd.f32 %v3400_v42, %v3384_v24 }
0x1f1e   :  { %4682 = vtanh.f32 %v3403_v5  ;;  %v3534_v29 = vrot.slane %v3403_v5, 6 }
0x1f1f   :  { %4684 = vtanh.f32 %v3404_v6  ;;  %v3535_v7 = vrot.slane %v3404_v6, 5 }
0x1f20   :  { %v3504_v8 = vpop.permute.xlu1 %3503  ;;  %v3506_v53 = vpop.permute.xlu0 %3505 }
0x1f21   :  { %v3509_v9 = vadd.f32 %v3504_v8, %v3489_v10  ;;  %v3536_v30 = vsel %vm1971_vm10, %v3535_v7, %v3534_v29  ;;  %v3510_v37 = vadd.f32 %v3506_v53, %v3490_v1 }
0x1f23   :  { %4686 = vtanh.f32 %v3509_v9  ;;  %v3551_v56 = vrot.slane %v3509_v9, 1 }
0x1f24   :  { %4688 = vtanh.f32 %v3510_v37 }
0x1f25   :  { %v3552_v47 = vsel %vm1971_vm10, %v3510_v37, %v3551_v56 }
0x1f28   :  { %v4683_v23 = vpop.eup %4682 }
0x1f29   :  { %v4685_v0 = vpop.eup %4684  ;;  %3409 = vrot.lane.b32.xlu1 %v4683_v23, %s5062_s1 }
0x1f2a   :  { %3411 = vrot.lane.b32.xlu0 %v4685_v0, %s5062_s1 }
0x1f2d   :  { %v4687_v36 = vpop.eup %4686 }
0x1f2e   :  { %3515 = vrot.lane.b32.xlu1 %v4687_v36, %s5062_s1  ;;  %v4689_v28 = vpop.eup %4688 }
0x1f2f   :  { %3517 = vrot.lane.b32.xlu0 %v4689_v28, %s5062_s1 }
0x1f9b   :  { %v3410_v44 = vpop.permute.xlu1 %3409 }
0x1f9c   :  { %v3412_v60 = vpop.permute.xlu0 %3411  ;;  %v3415_v13 = vmul.f32 %v4675_v12, %v3410_v44 }
0x1f9d   :  { %v3416_v41 = vmul.f32 %v4677_v40, %v3412_v60 }
0x1f9e   :  { %v3525_v45 = vrot.slane %v3415_v13, 6 }
0x1f9f   :  { %v3526_v35 = vrot.slane %v3416_v41, 5 }
0x1fa0   :  { %v3516_v58 = vpop.permute.xlu1 %3515 }
0x1fa1   :  { %v3521_v15 = vmul.f32 %v4679_v46, %v3516_v58  ;;  %v3527_v21 = vsel %vm1971_vm10, %v3526_v35, %v3525_v45  ;;  %v3518_v62 = vpop.permute.xlu0 %3517 }
0x1fa2   :  { %3528 = vrot.lane.b32.xlu1 %v3527_v21, %s5084_s17  ;;  %v3522_v59 = vmul.f32 %v4681_v14, %v3518_v62 }
0x1fa3   :  { %v3543_v39 = vrot.slane %v3521_v15, 1 }
0x1fa5   :  { %v3544_v43 = vsel %vm1971_vm10, %v3522_v59, %v3543_v39 }
0x1fa6   :  { %3537 = vrot.lane.b32.xlu1 %v3536_v30, %s5086_s14  ;;  %3545 = vrot.lane.b32.xlu0 %v3544_v43, %s5084_s17 }
0x1faa   :  { %3553 = vrot.lane.b32.xlu0 %v3552_v47, %s5086_s14 }
0x2014   :  { %v3529_v12 = vpop.permute.xlu1 %3528 }
0x2015   :  { %v3531_v25 = vsel %vm2246_vm14, %v3529_v12, %v6172_v50  ;;  %v3557_v40 = vsel %vm2246_vm14, %v3529_v12, 0.0 }
0x2016   :  { %v6253_v4 = vadd.f32 %v3557_v40, %v6177_v31  ;;  %v3561_v34 = vpack.c.bf16 %v3531_v25, %v3531_v25 }
0x2018   :  { %v3546_v20 = vpop.permute.xlu0 %3545  ;;  %4343 = vmatmul.mubr.msk.bf16.vlgmr.msra.gmra.mrb[76].mxu0 %vm275_vm1, %v3561_v34 }
0x2019   :  { %v3548_v46 = vsel %vm2226_vm15, %v3546_v20, %v6185_v55  ;;  %v3559_v49 = vsel %vm2226_vm15, %v3546_v20, 0.0 }
0x201a   :  { %v6262_v63 = vadd.f32 %v3559_v49, %v6193_v33  ;;  %v3669_v50 = vpack.c.bf16 %v3548_v46, %v3548_v46 }
0x201c   :  { %4351 = vmatmul.mubr.msk.bf16.vlgmr.msra.gmra.mrb[76].mxu1 %vm275_vm1, %v3669_v50  ;;  %v3554_v8 = vpop.permute.xlu0 %3553  ;;  %vm3810_vm1 = vcmask 254976  }
0x201d   :  { %v3556_v1 = vsel %vm2226_vm15, %v3554_v8, %v6221_v54 }
0x201e   :  { %v3734_v9 = vrot.slane %v3556_v1, 1 }
0x20eb   :  { %v3599_v14 = vpop.f32.mrb[76].mxu0 }
0x20ec   :  { %v3606_v31 = vrot.slane %v3599_v14, 1  ;;  %v3607_v19 = vrot.slane %v3599_v14, 2  ;;  %v4344_v52 = vpop.f32.mrb[77].mxu0 }
0x20ed   :  { %v3602_v11 = vpop.f32.mrb[78].mxu0 }
0x20ee   :  { %v3610_v2 = vadd.f32 %v3606_v31, %v5694_v26  ;;  %v3611_v17 = vadd.f32 %v3607_v19, %v5688_v16  ;;  %v4345_v18 = vpop.f32.mrb[79].mxu0  ;;  %v3538_v26 = vpop.permute.xlu1 %3537 }
0x20ef   :  { %v3707_v55 = vpop.f32.mrb[76].mxu1  ;;  %v3540_v10 = vsel %vm2246_vm14, %v3538_v26, %v6214_v32 }
0x20f0   :  { %4690 = vtanh.f32 %v3610_v2  ;;  %v3714_v22 = vrot.slane %v3707_v55, 1  ;;  %v4352_v24 = vpop.f32.mrb[77].mxu1  ;;  %v3717_v33 = vadd.f32 %v3707_v55, %v5696_v27  ;;  %v3628_v7 = vrot.slane %v3540_v10, 2 }
0x20f1   :  { %4692 = vtanh.f32 %v3611_v17  ;;  %v3710_v3 = vpop.f32.mrb[78].mxu1  ;;  %v3948_v48 = vmul.f32 -1.442695, %v3610_v2  ;;  %v3949_v32 = vmul.f32 -1.442695, %v3611_v17 }
0x20f2   :  { %v4353_v42 = vpop.f32.mrb[79].mxu1  ;;  %v3718_v5 = vadd.f32 %v3714_v22, %v5699_v38  ;;  %4694 = vtanh.f32 %v3717_v33  ;;  %v3627_v38 = vrot.slane %v3540_v10, 1  ;;  %v3951_v30 = vmul.f32 -1.442695, %v3717_v33  ;;  %v4732_v24 = vld [vmem:[#allocation5] sm:$0x3] }
0x20f3   :  { %v3795_v33 = vsel %vm3794_vm0, %v4732_v24, 0.0 }
0x20f4   :  { %4696 = vtanh.f32 %v3718_v5  ;;  %v3952_v53 = vmul.f32 -1.442695, %v3718_v5 }
0x20f5   :  { %4698 = vpow2.f32 %v3948_v48 }
0x20f6   :  { %4700 = vpow2.f32 %v3949_v32 }
0x20f7   :  { %4702 = vpow2.f32 %v3951_v30 }
0x20f8   :  { %4704 = vpow2.f32 %v3952_v53 }
0x20fa   :  { %v4691_v6 = vpop.eup %4690 }
0x20fb   :  { %v4693_v29 = vpop.eup %4692  ;;  %3639 = vrot.lane.b32.xlu1 %v4691_v6, %s5062_s1 }
0x20fc   :  { %3641 = vrot.lane.b32.xlu0 %v4693_v29, %s5062_s1  ;;  %v4695_v16 = vpop.eup %4694 }
0x20fe   :  { %v4697_v27 = vpop.eup %4696 }
0x20ff   :  { %3747 = vrot.lane.b32.xlu1 %v4697_v27, %s5062_s1  ;;  %v4699_v56 = vpop.eup %4698 }
0x2100   :  { %3745 = vrot.lane.b32.xlu0 %v4695_v16, %s5062_s1  ;;  %v4701_v37 = vpop.eup %4700  ;;  %v3618_v47 = vadd.f32 1.0, %v4699_v56 }
0x2101   :  { %v3619_v51 = vadd.f32 1.0, %v4701_v37  ;;  %v4703_v54 = vpop.eup %4702 }
0x2102   :  { %v4705_v23 = vpop.eup %4704  ;;  %4706 = vrcp.f32 %v3618_v47  ;;  %v3725_v0 = vadd.f32 1.0, %v4703_v54 }
0x2103   :  { %3629 = vrot.lane.b32.xlu1 %v3627_v38, %s5084_s17  ;;  %4708 = vrcp.f32 %v3619_v51  ;;  %v3726_v36 = vadd.f32 1.0, %v4705_v23 }
0x2104   :  { %3631 = vrot.lane.b32.xlu0 %v3628_v7, %s5084_s17  ;;  %4710 = vrcp.f32 %v3725_v0 }
0x2105   :  { %4712 = vrcp.f32 %v3726_v36 }
0x2107   :  { %3737 = vrot.lane.b32.xlu1 %v3734_v9, %s5084_s17  ;;  %v3953_v9 = vld [vmem:[%s6326_s18] ss:$0 sm:$0xff] }
0x2108   :  { %3735 = vrot.lane.b32.xlu0 %v3556_v1, %s5084_s17 }
0x210c   :  { %v4707_v28 = vpop.eup %4706 }
0x210d   :  { %v4709_v60 = vpop.eup %4708 }
0x210e   :  { %v4711_v35 = vpop.eup %4710 }
0x210f   :  { %v4713_v21 = vpop.eup %4712 }
0x216d   :  { %v3640_v44 = vpop.permute.xlu1 %3639 }
0x216e   :  { %v3642_v13 = vpop.permute.xlu0 %3641  ;;  %v3645_v41 = vmul.f32 %v4707_v28, %v3640_v44 }
0x216f   :  { %v3646_v45 = vmul.f32 %v4709_v60, %v3642_v13 }
0x2170   :  { %3649 = vrot.lane.b32.xlu0 %v3645_v41, %s5084_s17  ;;  %v3954_v41 = vld [vmem:[#allocation2] ss:$0 sm:$0xff] }
0x2171   :  { %3651 = vrot.lane.b32.xlu1 %v3646_v45, %s5084_s17  ;;  %v3748_v62 = vpop.permute.xlu1 %3747 }
0x2172   :  { %v3746_v58 = vpop.permute.xlu0 %3745  ;;  %v3752_v59 = vmul.f32 %v4713_v21, %v3748_v62 }
0x2173   :  { %v3751_v15 = vmul.f32 %v4711_v35, %v3746_v58 }
0x2175   :  { %3755 = vrot.lane.b32.xlu0 %v3751_v15, %s5084_s17  ;;  %3757 = vrot.lane.b32.xlu1 %v3752_v59, %s5084_s17  ;;  %v3630_v43 = vpop.permute.xlu1 %3629 }
0x2176   :  { %v3632_v39 = vpop.permute.xlu0 %3631  ;;  %v3635_v40 = vmul.f32 %v4707_v28, %v3630_v43 }
0x2177   :  { %v3636_v34 = vmul.f32 %v4709_v60, %v3632_v39 }
0x2179   :  { %v3738_v25 = vpop.permute.xlu1 %3737 }
0x217a   :  { %v3736_v12 = vpop.permute.xlu0 %3735  ;;  %v3742_v19 = vmul.f32 %v4713_v21, %v3738_v25 }
0x217b   :  { %v3741_v14 = vmul.f32 %v4711_v35, %v3736_v12 }
0x21e2   :  { %v3650_v20 = vpop.permute.xlu0 %3649 }
0x21e3   :  { %v3652_v46 = vpop.permute.xlu1 %3651  ;;  %v3655_v49 = vadd.f32 %v3650_v20, %v3635_v40 }
0x21e4   :  { %v3656_v50 = vadd.f32 %v3652_v46, %v3636_v34 }
0x21e5   :  { %4714 = vtanh.f32 %v3655_v49 }
0x21e6   :  { %4716 = vtanh.f32 %v3656_v50 }
0x21e7   :  { %v3756_v31 = vpop.permute.xlu0 %3755  ;;  %v3758_v11 = vpop.permute.xlu1 %3757 }
0x21e8   :  { %v3761_v52 = vadd.f32 %v3756_v31, %v3741_v14  ;;  %v3762_v2 = vadd.f32 %v3758_v11, %v3742_v19 }
0x21ea   :  { %4718 = vtanh.f32 %v3761_v52 }
0x21eb   :  { %4720 = vtanh.f32 %v3762_v2 }
0x21ef   :  { %v4715_v17 = vpop.eup %4714 }
0x21f0   :  { %v4717_v18 = vpop.eup %4716  ;;  %3661 = vrot.lane.b32.xlu1 %v4715_v17, %s5062_s1 }
0x21f1   :  { %3663 = vrot.lane.b32.xlu0 %v4717_v18, %s5062_s1 }
0x21f4   :  { %v4719_v55 = vpop.eup %4718 }
0x21f5   :  { %3767 = vrot.lane.b32.xlu0 %v4719_v55, %s5062_s1  ;;  %v4721_v22 = vpop.eup %4720 }
0x21f6   :  { %3769 = vrot.lane.b32.xlu1 %v4721_v22, %s5062_s1 }
0x221a   :  { %3796 = vadd.xlane.f32.xlu1 %v3795_v33 }
0x2262   :  { %v3662_v3 = vpop.permute.xlu1 %3661 }
0x2263   :  { %v3664_v42 = vpop.permute.xlu0 %3663  ;;  %v3667_v5 = vmul.f32 %v4707_v28, %v3662_v3 }
0x2264   :  { %v3668_v6 = vmul.f32 %v4709_v60, %v3664_v42 }
0x2265   :  { %v3777_v29 = vrot.slane %v3667_v5, 7 }
0x2266   :  { %v3778_v26 = vrot.slane %v3668_v6, 6 }
0x2267   :  { %v3768_v10 = vpop.permute.xlu0 %3767 }
0x2268   :  { %v3779_v16 = vsel %vm1971_vm10, %v3778_v26, %v3777_v29  ;;  %v3770_v27 = vpop.permute.xlu1 %3769  ;;  %v3773_v8 = vmul.f32 %v4711_v35, %v3768_v10 }
0x2269   :  { %3780 = vrot.lane.b32.xlu0 %v3779_v16, %s5084_s17  ;;  %v3774_v7 = vmul.f32 %v4713_v21, %v3770_v27 }
0x226b   :  { %v3787_v38 = vrot.slane %v3774_v7, 7 }
0x226d   :  { %v3788_v1 = vsel %vm1971_vm10, %v3787_v38, %v3773_v8 }
0x226e   :  { %3789 = vrot.lane.b32.xlu0 %v3788_v1, %s5084_s17 }
0x2272   :  { %3814 = vrot.lane.b32.xlu0 %v3953_v9, %s5086_s14 }
0x22a7   :  { %v3797_v48 = vpop.xlane.xlu1 %3796 }
0x22a8   :  { %v3798_v32 = vmax.f32 %v3797_v48, 1.0 }
0x22aa   :  { %4722 = vrcp.f32 %v3798_v32 }
0x22b4   :  { %v4723_v53 = vpop.eup %4722 }
0x22db   :  { %v3781_v30 = vpop.permute.xlu0 %3780 }
0x22dc   :  { %v3783_v56 = vsel %vm1988_vm13, %v3781_v30, 0.0 }
0x22dd   :  { %v3784_v37 = vadd.f32 %v3783_v56, %v6253_v4 }
0x22df   :  { %v3800_v47 = vmul.f32 %v4723_v53, %v3784_v37 }
0x22e0   :  { %v3790_v51 = vpop.permute.xlu0 %3789 }
0x22e1   :  { %v3809_v54 = vmul.f32 %v3953_v9, %v3800_v47  ;;  %v3792_v23 = vsel %vm1967_vm12, %v3790_v51, 0.0 }
0x22e2   :  { %v3793_v0 = vadd.f32 %v3792_v23, %v6262_v63 }
0x22e3   :  { %v3811_v36 = vsel %vm3810_vm1, %v3809_v54, 0.0 }
0x22e4   :  { %3812 = vadd.xlane.f32.xlu0 %v3811_v36  ;;  %v3815_v28 = vpop.permute.xlu0 %3814  ;;  %v3801_v44 = vmul.f32 %v4723_v53, %v3793_v0 }
0x22e6   :  { %v3817_v60 = vmul.f32 %v3815_v28, %v3801_v44 }
0x22e8   :  { %v3818_v13 = vsel %vm3810_vm1, %v3817_v60, 0.0 }
0x22e9   :  { %3819 = vadd.xlane.f32.xlu1 %v3818_v13 }
0x2371   :  { %v3813_v61 = vpop.xlane.xlu0 %3812 }
0x2376   :  { %v3820_v45 = vpop.xlane.xlu1 %3819 }
0x2377   :  { %v3821_v4 = vadd.f32 %v3820_v45, %v3813_v61 }
0x2379   :  { %v3829_v35 = vadd.f32 %v3954_v41, %v3821_v4 }
0x237b   :  { %v3955_v58 = vmul.f32 -1.442695, %v3829_v35 }
0x237d   :  { %4724 = vpow2.f32 %v3955_v58 }
0x2387   :  { %v4725_v15 = vpop.eup %4724 }
0x2388   :  { %v3833_v21 = vadd.f32 1.0, %v4725_v15 }
0x238a   :  { %4726 = vrcp.f32 %v3833_v21 }
0x2394   :  { %v4727_v57 = vpop.eup %4726 }
0x2395   :  { %3837 = vst.msk [vmem:[%s6328_s20] sm:$0x3] %vm3836_vm6, %v4727_v57 }
0x2396   :  { %3842 = vsyncpa [#allocation4], 1 }
0x2397   :  { %3843 = vsyncpa [#allocation6], 1 }
0x2398   :  { %3844 = vsyncpa [#allocation9], 1 }
0x2399   :  { %3845 = vsyncpa [#allocation12], 1 }
0x239a   :  { %3846 = vsyncpa [#allocation15], 1 }
0x239b   :  { %3847 = vsyncpa [#allocation18], 1 }
0x239c   :  { %3848 = vsyncpa [#allocation21], 1 }
0x239d   :  { %3849 = vsyncpa [#allocation24], 1 }

</bundles_post_ra>
